<compile_context>
chip_gen: v6e
topology: v6e:2x2x1
jax: 0.10.0
libtpu: 0.0.40
codegen_flags: <defaults>
</compile_context>

<pallas_src>
import jax
import jax.numpy as jnp
import numpy as np
from jax.experimental import pallas as pl
from jax.experimental.pallas import tpu as pltpu

LN_EPS = 1e-5  # torch.nn.LayerNorm default eps

# Rows of the packed (16, 512) vector slab:
#   0: b1   1: g1   2: be1        (l1 bias, bn1 gamma/beta)
#   3: b2   4: g2   5: be2        (l2 bias, bn2 gamma/beta)
#   6: b5   7: g3   8: be3        (l5 bias, bn3 gamma/beta)
#   9: b6  10: g4  11: be4        (l6 bias, bn4 gamma/beta)
#  12: b3 (256, zero-padded)  13: b7 (256, zero-padded)
#  14: l4 weight row (256, zero-padded)  15: l8 weight row (256, zero-padded)


def critic_kernel(state_ref, act_ref,
                  w1s_ref, w1a_ref, w2_ref, w3_ref,
                  w5s_ref, w5a_ref, w6_ref, w7_ref,
                  vec_ref, hb_ref,
                  q1_ref, q2_ref):
    xs = state_ref[...].astype(jnp.bfloat16)   # (TB, state_dim)
    xa = act_ref[...].astype(jnp.bfloat16)     # (TB, A)

    def ln_relu(h, gamma, beta):
        # Fused single-pass LayerNorm statistics: var = E[x^2] - E[x]^2.
        inv_d = 1.0 / h.shape[-1]
        mean = jnp.sum(h, axis=-1, keepdims=True) * inv_d
        meansq = jnp.sum(h * h, axis=-1, keepdims=True) * inv_d
        var = meansq - mean * mean
        hn = (h - mean) * jax.lax.rsqrt(var + LN_EPS)
        return jnp.maximum(hn * gamma + beta, 0.0)

    def mm(h_f32, w_ref):
        # Downcast LHS at the MXU boundary only; accumulate in f32.
        return jnp.dot(h_f32.astype(jnp.bfloat16), w_ref[...],
                       preferred_element_type=jnp.float32)

    # ---------------- Q1 branch ----------------
    h1 = (jnp.dot(xs, w1s_ref[...], preferred_element_type=jnp.float32)
          + jnp.dot(xa, w1a_ref[...], preferred_element_type=jnp.float32)
          + vec_ref[0:1, :])
    h1 = ln_relu(h1, vec_ref[1:2, :], vec_ref[2:3, :])
    h1 = ln_relu(mm(h1, w2_ref) + vec_ref[3:4, :],
                 vec_ref[4:5, :], vec_ref[5:6, :]) + h1
    h1 = jnp.maximum(mm(h1, w3_ref) + vec_ref[12:13, 0:256], 0.0)
    q1_ref[...] = (jnp.sum(h1 * vec_ref[14:15, 0:256], axis=-1, keepdims=True)
                   + hb_ref[0])

    # ---------------- Q2 branch ----------------
    h2 = (jnp.dot(xs, w5s_ref[...], preferred_element_type=jnp.float32)
          + jnp.dot(xa, w5a_ref[...], preferred_element_type=jnp.float32)
          + vec_ref[6:7, :])
    h2 = ln_relu(h2, vec_ref[7:8, :], vec_ref[8:9, :])
    h2 = ln_relu(mm(h2, w6_ref) + vec_ref[9:10, :],
                 vec_ref[10:11, :], vec_ref[11:12, :]) + h2
    h2 = jnp.maximum(mm(h2, w7_ref) + vec_ref[13:14, 0:256], 0.0)
    q2_ref[...] = (jnp.sum(h2 * vec_ref[15:16, 0:256], axis=-1, keepdims=True)
                   + hb_ref[1])


def init_params(key, state_dim, action_seq_dim):
    """PyTorch-Linear-style fan-in uniform init; weights stored [in, out]."""
    def linear(k, din, dout):
        kw, kb = jax.random.split(k)
        bound = 1.0 / np.sqrt(din)
        w = jax.random.uniform(kw, (din, dout), jnp.float32, -bound, bound)
        b = jax.random.uniform(kb, (dout,), jnp.float32, -bound, bound)
        return w, b

    keys = jax.random.split(key, 12)
    sa = state_dim + action_seq_dim
    p = {
        'l1': linear(keys[0], sa, 512),
        'l2': linear(keys[1], 512, 512),
        'l3': linear(keys[2], 512, 256),
        'l4': linear(keys[3], 256, 1),
        'l5': linear(keys[4], sa, 512),
        'l6': linear(keys[5], 512, 512),
        'l7': linear(keys[6], 512, 256),
        'l8': linear(keys[7], 256, 1),
    }
    # LayerNorm affine params (PyTorch default is gamma=1/beta=0; perturbed
    # here so the affine path is actually exercised by the test).
    for i, name in enumerate(['bn1', 'bn2', 'bn3', 'bn4']):
        kg, kb = jax.random.split(keys[8 + i])
        p[name] = (1.0 + 0.1 * jax.random.normal(kg, (512,), jnp.float32),
                   0.1 * jax.random.normal(kb, (512,), jnp.float32))
    return p


def critic_forward(state, action_seq, params, tb=None):
    """Wrapper: pack params, build batch-tiled grid, one pallas_call."""
    state = state.astype(jnp.float32)
    B = state.shape[0]
    state_dim = state.shape[1]
    act_flat = action_seq.reshape(B, -1).astype(jnp.float32)   # .view(B, -1)
    A = act_flat.shape[1]

    if tb is None:
        tb = min(B, 128)
    assert B % tb == 0, "batch must be divisible by the batch tile"
    assert tb == B or tb % 8 == 0, "batch tile must be a multiple of 8"

    w1, b1 = params['l1']; w2, b2 = params['l2']
    w3, b3 = params['l3']; w4, b4 = params['l4']
    w5, b5 = params['l5']; w6, b6 = params['l6']
    w7, b7 = params['l7']; w8, b8 = params['l8']
    g1, be1 = params['bn1']; g2, be2 = params['bn2']
    g3, be3 = params['bn3']; g4, be4 = params['bn4']

    # Split the concat-consuming layers into state/action halves (bf16).
    w1s = w1[:state_dim].astype(jnp.bfloat16)
    w1a = w1[state_dim:].astype(jnp.bfloat16)
    w5s = w5[:state_dim].astype(jnp.bfloat16)
    w5a = w5[state_dim:].astype(jnp.bfloat16)
    w2b = w2.astype(jnp.bfloat16)
    w3b = w3.astype(jnp.bfloat16)
    w6b = w6.astype(jnp.bfloat16)
    w7b = w7.astype(jnp.bfloat16)

    def pad512(v):
        return jnp.pad(v, (0, 512 - v.shape[0]))

    vec_slab = jnp.stack([
        b1, g1, be1,
        b2, g2, be2,
        b5, g3, be3,
        b6, g4, be4,
        pad512(b3), pad512(b7),
        pad512(w4[:, 0]), pad512(w8[:, 0]),
    ], axis=0).astype(jnp.float32)                            # (16, 512)

    head_bias = jnp.stack([b4[0], b8[0]]).astype(jnp.float32)  # (2,) -> SMEM

    def resident(shape):
        # Weight blocks: same block index every grid step -> stay in VMEM.
        return pl.BlockSpec(shape, lambda i: (0, 0))

    grid_spec = pltpu.PrefetchScalarGridSpec(
        num_scalar_prefetch=0,
        grid=(B // tb,),
        in_specs=[
            pl.BlockSpec((tb, state_dim), lambda i: (i, 0)),
            pl.BlockSpec((tb, A), lambda i: (i, 0)),
            resident(w1s.shape), resident(w1a.shape),
            resident(w2b.shape), resident(w3b.shape),
            resident(w5s.shape), resident(w5a.shape),
            resident(w6b.shape), resident(w7b.shape),
            resident(vec_slab.shape),
            pl.BlockSpec(memory_space=pltpu.MemorySpace.SMEM),
        ],
        out_specs=(
            pl.BlockSpec((tb, 1), lambda i: (i, 0)),
            pl.BlockSpec((tb, 1), lambda i: (i, 0)),
        ),
    )

    # Advisory cost hint for the XLA scheduler.
    sa = state_dim + A
    matmul_flops = 2 * B * 2 * (sa * 512 + 512 * 512 + 512 * 256 + 256 * 1)
    weight_bytes = 2 * (sa * 512 + 512 * 512 + 512 * 256 + 256) * 2   # bf16
    io_bytes = (state.size + act_flat.size + vec_slab.size + 2 + 2 * B) * 4
    cost = pl.CostEstimate(flops=int(matmul_flops),
                           transcendentals=int(4 * B),        # rsqrt per LN row
                           bytes_accessed=int(weight_bytes + io_bytes))

    q1, q2 = pl.pallas_call(
        critic_kernel,
        out_shape=(jax.ShapeDtypeStruct((B, 1), jnp.float32),
                   jax.ShapeDtypeStruct((B, 1), jnp.float32)),
        grid_spec=grid_spec,
        compiler_params=pltpu.CompilerParams(
            dimension_semantics=("parallel",),
            vmem_limit_bytes=32 * 1024 * 1024),
        cost_estimate=cost,
    )(state, act_flat,
      w1s, w1a, w2b, w3b,
      w5s, w5a, w6b, w7b,
      vec_slab, head_bias)
    return q1, q2


def critic_reference(state, action_seq, params):
    """Pure-JAX f32 reference mirroring the PyTorch forward."""
    B = state.shape[0]
    sa = jnp.concatenate([state, action_seq.reshape(B, -1)], axis=1)

    def ln(h, g, b):
        mu = jnp.mean(h, axis=-1, keepdims=True)
        var = jnp.mean(jnp.square(h - mu), axis=-1, keepdims=True)
        return (h - mu) * jax.lax.rsqrt(var + LN_EPS) * g + b

    w1, b1 = params['l1']; w2, b2 = params['l2']
    w3, b3 = params['l3']; w4, b4 = params['l4']
    w5, b5 = params['l5']; w6, b6 = params['l6']
    w7, b7 = params['l7']; w8, b8 = params['l8']

    q1 = jax.nn.relu(ln(sa @ w1 + b1, *params['bn1']))
    q1 = jax.nn.relu(ln(q1 @ w2 + b2, *params['bn2'])) + q1
    q1 = jax.nn.relu(q1 @ w3 + b3)
    q1 = q1 @ w4 + b4

    q2 = jax.nn.relu(ln(sa @ w5 + b5, *params['bn3']))
    q2 = jax.nn.relu(ln(q2 @ w6 + b6, *params['bn4'])) + q2
    q2 = jax.nn.relu(q2 @ w7 + b7)
    q2 = q2 @ w8 + b8
    return q1, q2


if __name__ == "__main__":
    # Small, module-consistent shapes.
    state_dim = 16
    action_dim = 4
    horizon = 8
    action_seq_dim = horizon * action_dim   # 32
    batch = 16                              # two batch tiles of 8 -> grid=(2,)

    key = jax.random.PRNGKey(0)
    key, k_state, k_act, k_params = jax.random.split(key, 4)

    state = jax.random.normal(k_state, (batch, state_dim), jnp.float32)
    action_seq = jax.random.normal(k_act, (batch, horizon, action_dim), jnp.float32)
    params = init_params(k_params, state_dim, action_seq_dim)

    q1, q2 = critic_forward(state, action_seq, params, tb=8)
    q1, q2 = jax.block_until_ready((q1, q2))

    r1, r2 = critic_reference(state, action_seq, params)
    np.testing.assert_allclose(np.asarray(q1), np.asarray(r1), rtol=2e-2, atol=2e-2)
    np.testing.assert_allclose(np.asarray(q2), np.asarray(r2), rtol=2e-2, atol=2e-2)
    assert q1.shape == (batch, 1) and q2.shape == (batch, 1)
    print("KERNEL_OK")
</pallas_src>

<mosaic_0001>
module attributes {stable_mosaic.version = 11 : i64} {
  func.func @critic_kernel(%arg0: i32, %arg1: memref<8x16xf32, #tpu.memory_space<vmem>>, %arg2: memref<8x32xf32, #tpu.memory_space<vmem>>, %arg3: memref<16x512xbf16, #tpu.memory_space<vmem>>, %arg4: memref<32x512xbf16, #tpu.memory_space<vmem>>, %arg5: memref<512x512xbf16, #tpu.memory_space<vmem>>, %arg6: memref<512x256xbf16, #tpu.memory_space<vmem>>, %arg7: memref<16x512xbf16, #tpu.memory_space<vmem>>, %arg8: memref<32x512xbf16, #tpu.memory_space<vmem>>, %arg9: memref<512x512xbf16, #tpu.memory_space<vmem>>, %arg10: memref<512x256xbf16, #tpu.memory_space<vmem>>, %arg11: memref<16x512xf32, #tpu.memory_space<vmem>>, %arg12: memref<2xf32, #tpu.memory_space<smem>>, %arg13: memref<8x1xf32, #tpu.memory_space<vmem>>, %arg14: memref<8x1xf32, #tpu.memory_space<vmem>>) attributes {dimension_semantics = [#tpu.dimension_semantics<parallel>], iteration_bounds = array<i64: 2>, scalar_prefetch = 0 : i64, scratch_operands = 0 : i64, tpu.core_type = #tpu.core_type<tc>, window_params = [{transform_indices = @transform_0, window_bounds = array<i64: 8, 16>}, {transform_indices = @transform_1, window_bounds = array<i64: 8, 32>}, {pipeline_mode = #tpu.pipeline_mode<synchronous>, transform_indices = @transform_2, window_bounds = array<i64: 16, 512>}, {pipeline_mode = #tpu.pipeline_mode<synchronous>, transform_indices = @transform_3, window_bounds = array<i64: 32, 512>}, {pipeline_mode = #tpu.pipeline_mode<synchronous>, transform_indices = @transform_4, window_bounds = array<i64: 512, 512>}, {pipeline_mode = #tpu.pipeline_mode<synchronous>, transform_indices = @transform_5, window_bounds = array<i64: 512, 256>}, {pipeline_mode = #tpu.pipeline_mode<synchronous>, transform_indices = @transform_6, window_bounds = array<i64: 16, 512>}, {pipeline_mode = #tpu.pipeline_mode<synchronous>, transform_indices = @transform_7, window_bounds = array<i64: 32, 512>}, {pipeline_mode = #tpu.pipeline_mode<synchronous>, transform_indices = @transform_8, window_bounds = array<i64: 512, 512>}, {pipeline_mode = #tpu.pipeline_mode<synchronous>, transform_indices = @transform_9, window_bounds = array<i64: 512, 256>}, {pipeline_mode = #tpu.pipeline_mode<synchronous>, transform_indices = @transform_10, window_bounds = array<i64: 16, 512>}, {transform_indices = @transform_11, window_bounds = array<i64: 2>}, {transform_indices = @transform_12, window_bounds = array<i64: 8, 1>}, {transform_indices = @transform_13, window_bounds = array<i64: 8, 1>}]} {
    %c0 = arith.constant 0 : index
    %c0_0 = arith.constant 0 : index
    %0 = vector.load %arg1[%c0, %c0_0] : memref<8x16xf32, #tpu.memory_space<vmem>>, vector<8x16xf32>
    %1 = arith.truncf %0 : vector<8x16xf32> to vector<8x16xbf16>
    %c0_1 = arith.constant 0 : index
    %c0_2 = arith.constant 0 : index
    %2 = vector.load %arg2[%c0_1, %c0_2] : memref<8x32xf32, #tpu.memory_space<vmem>>, vector<8x32xf32>
    %3 = arith.truncf %2 : vector<8x32xf32> to vector<8x32xbf16>
    %c0_3 = arith.constant 0 : index
    %c0_4 = arith.constant 0 : index
    %4 = vector.load %arg3[%c0_3, %c0_4] : memref<16x512xbf16, #tpu.memory_space<vmem>>, vector<16x512xbf16>
    %cst = arith.constant dense<0.000000e+00> : vector<8x512xf32>
    %5 = tpu.matmul %1, %4, %cst {dimension_numbers = #tpu.dot_dimension_numbers<[1], [0], [0], [1], [0, 0, 1, 1], [], []>} : vector<8x16xbf16>, vector<16x512xbf16>, vector<8x512xf32> -> vector<8x512xf32>
    %c0_5 = arith.constant 0 : index
    %c0_6 = arith.constant 0 : index
    %6 = vector.load %arg4[%c0_5, %c0_6] : memref<32x512xbf16, #tpu.memory_space<vmem>>, vector<32x512xbf16>
    %cst_7 = arith.constant dense<0.000000e+00> : vector<8x512xf32>
    %7 = tpu.matmul %3, %6, %cst_7 {dimension_numbers = #tpu.dot_dimension_numbers<[1], [0], [0], [1], [0, 0, 1, 1], [], []>} : vector<8x32xbf16>, vector<32x512xbf16>, vector<8x512xf32> -> vector<8x512xf32>
    %8 = arith.addf %5, %7 : vector<8x512xf32>
    %c0_8 = arith.constant 0 : index
    %c0_9 = arith.constant 0 : index
    %9 = vector.load %arg11[%c0_8, %c0_9] : memref<16x512xf32, #tpu.memory_space<vmem>>, vector<1x512xf32>
    %10 = vector.broadcast %9 : vector<1x512xf32> to vector<8x512xf32>
    %11 = arith.addf %8, %10 : vector<8x512xf32>
    %c1 = arith.constant 1 : index
    %c0_10 = arith.constant 0 : index
    %12 = vector.load %arg11[%c1, %c0_10] : memref<16x512xf32, #tpu.memory_space<vmem>>, vector<1x512xf32>
    %c2 = arith.constant 2 : index
    %c0_11 = arith.constant 0 : index
    %13 = vector.load %arg11[%c2, %c0_11] : memref<16x512xf32, #tpu.memory_space<vmem>>, vector<1x512xf32>
    %cst_12 = arith.constant dense<0.000000e+00> : vector<8xf32>
    %14 = vector.multi_reduction <add>, %11, %cst_12 [1] : vector<8x512xf32> to vector<8xf32>
    %15 = vector.shape_cast %14 : vector<8xf32> to vector<8x1xf32>
    %cst_13 = arith.constant 0.001953125 : f32
    %16 = vector.broadcast %cst_13 : f32 to vector<8x1xf32>
    %17 = arith.mulf %15, %16 : vector<8x1xf32>
    %18 = arith.mulf %11, %11 : vector<8x512xf32>
    %cst_14 = arith.constant dense<0.000000e+00> : vector<8xf32>
    %19 = vector.multi_reduction <add>, %18, %cst_14 [1] : vector<8x512xf32> to vector<8xf32>
    %20 = vector.shape_cast %19 : vector<8xf32> to vector<8x1xf32>
    %cst_15 = arith.constant 0.001953125 : f32
    %21 = vector.broadcast %cst_15 : f32 to vector<8x1xf32>
    %22 = arith.mulf %20, %21 : vector<8x1xf32>
    %23 = arith.mulf %17, %17 : vector<8x1xf32>
    %24 = arith.subf %22, %23 : vector<8x1xf32>
    %25 = vector.broadcast %17 : vector<8x1xf32> to vector<8x512xf32>
    %26 = arith.subf %11, %25 : vector<8x512xf32>
    %cst_16 = arith.constant 9.99999974E-6 : f32
    %27 = vector.broadcast %cst_16 : f32 to vector<8x1xf32>
    %28 = arith.addf %24, %27 : vector<8x1xf32>
    %29 = math.rsqrt %28 : vector<8x1xf32>
    %30 = vector.broadcast %29 : vector<8x1xf32> to vector<8x512xf32>
    %31 = arith.mulf %26, %30 : vector<8x512xf32>
    %32 = vector.broadcast %12 : vector<1x512xf32> to vector<8x512xf32>
    %33 = arith.mulf %31, %32 : vector<8x512xf32>
    %34 = vector.broadcast %13 : vector<1x512xf32> to vector<8x512xf32>
    %35 = arith.addf %33, %34 : vector<8x512xf32>
    %cst_17 = arith.constant 0.000000e+00 : f32
    %36 = vector.broadcast %cst_17 : f32 to vector<8x512xf32>
    %37 = arith.maximumf %35, %36 : vector<8x512xf32>
    %38 = arith.truncf %37 : vector<8x512xf32> to vector<8x512xbf16>
    %c0_18 = arith.constant 0 : index
    %c0_19 = arith.constant 0 : index
    %39 = vector.load %arg5[%c0_18, %c0_19] : memref<512x512xbf16, #tpu.memory_space<vmem>>, vector<512x512xbf16>
    %cst_20 = arith.constant dense<0.000000e+00> : vector<8x512xf32>
    %40 = tpu.matmul %38, %39, %cst_20 {dimension_numbers = #tpu.dot_dimension_numbers<[1], [0], [0], [1], [0, 0, 1, 1], [], []>} : vector<8x512xbf16>, vector<512x512xbf16>, vector<8x512xf32> -> vector<8x512xf32>
    %c3 = arith.constant 3 : index
    %c0_21 = arith.constant 0 : index
    %41 = vector.load %arg11[%c3, %c0_21] : memref<16x512xf32, #tpu.memory_space<vmem>>, vector<1x512xf32>
    %42 = vector.broadcast %41 : vector<1x512xf32> to vector<8x512xf32>
    %43 = arith.addf %40, %42 : vector<8x512xf32>
    %c4 = arith.constant 4 : index
    %c0_22 = arith.constant 0 : index
    %44 = vector.load %arg11[%c4, %c0_22] : memref<16x512xf32, #tpu.memory_space<vmem>>, vector<1x512xf32>
    %c5 = arith.constant 5 : index
    %c0_23 = arith.constant 0 : index
    %45 = vector.load %arg11[%c5, %c0_23] : memref<16x512xf32, #tpu.memory_space<vmem>>, vector<1x512xf32>
    %cst_24 = arith.constant dense<0.000000e+00> : vector<8xf32>
    %46 = vector.multi_reduction <add>, %43, %cst_24 [1] : vector<8x512xf32> to vector<8xf32>
    %47 = vector.shape_cast %46 : vector<8xf32> to vector<8x1xf32>
    %cst_25 = arith.constant 0.001953125 : f32
    %48 = vector.broadcast %cst_25 : f32 to vector<8x1xf32>
    %49 = arith.mulf %47, %48 : vector<8x1xf32>
    %50 = arith.mulf %43, %43 : vector<8x512xf32>
    %cst_26 = arith.constant dense<0.000000e+00> : vector<8xf32>
    %51 = vector.multi_reduction <add>, %50, %cst_26 [1] : vector<8x512xf32> to vector<8xf32>
    %52 = vector.shape_cast %51 : vector<8xf32> to vector<8x1xf32>
    %cst_27 = arith.constant 0.001953125 : f32
    %53 = vector.broadcast %cst_27 : f32 to vector<8x1xf32>
    %54 = arith.mulf %52, %53 : vector<8x1xf32>
    %55 = arith.mulf %49, %49 : vector<8x1xf32>
    %56 = arith.subf %54, %55 : vector<8x1xf32>
    %57 = vector.broadcast %49 : vector<8x1xf32> to vector<8x512xf32>
    %58 = arith.subf %43, %57 : vector<8x512xf32>
    %cst_28 = arith.constant 9.99999974E-6 : f32
    %59 = vector.broadcast %cst_28 : f32 to vector<8x1xf32>
    %60 = arith.addf %56, %59 : vector<8x1xf32>
    %61 = math.rsqrt %60 : vector<8x1xf32>
    %62 = vector.broadcast %61 : vector<8x1xf32> to vector<8x512xf32>
    %63 = arith.mulf %58, %62 : vector<8x512xf32>
    %64 = vector.broadcast %44 : vector<1x512xf32> to vector<8x512xf32>
    %65 = arith.mulf %63, %64 : vector<8x512xf32>
    %66 = vector.broadcast %45 : vector<1x512xf32> to vector<8x512xf32>
    %67 = arith.addf %65, %66 : vector<8x512xf32>
    %cst_29 = arith.constant 0.000000e+00 : f32
    %68 = vector.broadcast %cst_29 : f32 to vector<8x512xf32>
    %69 = arith.maximumf %67, %68 : vector<8x512xf32>
    %70 = arith.addf %69, %37 : vector<8x512xf32>
    %71 = arith.truncf %70 : vector<8x512xf32> to vector<8x512xbf16>
    %c0_30 = arith.constant 0 : index
    %c0_31 = arith.constant 0 : index
    %72 = vector.load %arg6[%c0_30, %c0_31] : memref<512x256xbf16, #tpu.memory_space<vmem>>, vector<512x256xbf16>
    %cst_32 = arith.constant dense<0.000000e+00> : vector<8x256xf32>
    %73 = tpu.matmul %71, %72, %cst_32 {dimension_numbers = #tpu.dot_dimension_numbers<[1], [0], [0], [1], [0, 0, 1, 1], [], []>} : vector<8x512xbf16>, vector<512x256xbf16>, vector<8x256xf32> -> vector<8x256xf32>
    %c12 = arith.constant 12 : index
    %c0_33 = arith.constant 0 : index
    %74 = vector.load %arg11[%c12, %c0_33] : memref<16x512xf32, #tpu.memory_space<vmem>>, vector<1x256xf32>
    %75 = vector.broadcast %74 : vector<1x256xf32> to vector<8x256xf32>
    %76 = arith.addf %73, %75 : vector<8x256xf32>
    %cst_34 = arith.constant 0.000000e+00 : f32
    %77 = vector.broadcast %cst_34 : f32 to vector<8x256xf32>
    %78 = arith.maximumf %76, %77 : vector<8x256xf32>
    %c14 = arith.constant 14 : index
    %c0_35 = arith.constant 0 : index
    %79 = vector.load %arg11[%c14, %c0_35] : memref<16x512xf32, #tpu.memory_space<vmem>>, vector<1x256xf32>
    %80 = vector.broadcast %79 : vector<1x256xf32> to vector<8x256xf32>
    %81 = arith.mulf %78, %80 : vector<8x256xf32>
    %cst_36 = arith.constant dense<0.000000e+00> : vector<8xf32>
    %82 = vector.multi_reduction <add>, %81, %cst_36 [1] : vector<8x256xf32> to vector<8xf32>
    %83 = vector.shape_cast %82 : vector<8xf32> to vector<8x1xf32>
    %c0_37 = arith.constant 0 : index
    %84 = memref.load %arg12[%c0_37] : memref<2xf32, #tpu.memory_space<smem>>
    %85 = vector.broadcast %84 : f32 to vector<8x1xf32>
    %86 = arith.addf %83, %85 : vector<8x1xf32>
    %c0_38 = arith.constant 0 : index
    %c0_39 = arith.constant 0 : index
    %87 = vector.load %arg13[%c0_38, %c0_39] : memref<8x1xf32, #tpu.memory_space<vmem>>, vector<8x1xf32>
    tpu.vector_store %arg13[%c0_38, %c0_39], %86 {strides = array<i32>} : memref<8x1xf32, #tpu.memory_space<vmem>>, vector<8x1xf32>,
    %c0_40 = arith.constant 0 : index
    %c0_41 = arith.constant 0 : index
    %88 = vector.load %arg7[%c0_40, %c0_41] : memref<16x512xbf16, #tpu.memory_space<vmem>>, vector<16x512xbf16>
    %cst_42 = arith.constant dense<0.000000e+00> : vector<8x512xf32>
    %89 = tpu.matmul %1, %88, %cst_42 {dimension_numbers = #tpu.dot_dimension_numbers<[1], [0], [0], [1], [0, 0, 1, 1], [], []>} : vector<8x16xbf16>, vector<16x512xbf16>, vector<8x512xf32> -> vector<8x512xf32>
    %c0_43 = arith.constant 0 : index
    %c0_44 = arith.constant 0 : index
    %90 = vector.load %arg8[%c0_43, %c0_44] : memref<32x512xbf16, #tpu.memory_space<vmem>>, vector<32x512xbf16>
    %cst_45 = arith.constant dense<0.000000e+00> : vector<8x512xf32>
    %91 = tpu.matmul %3, %90, %cst_45 {dimension_numbers = #tpu.dot_dimension_numbers<[1], [0], [0], [1], [0, 0, 1, 1], [], []>} : vector<8x32xbf16>, vector<32x512xbf16>, vector<8x512xf32> -> vector<8x512xf32>
    %92 = arith.addf %89, %91 : vector<8x512xf32>
    %c6 = arith.constant 6 : index
    %c0_46 = arith.constant 0 : index
    %93 = vector.load %arg11[%c6, %c0_46] : memref<16x512xf32, #tpu.memory_space<vmem>>, vector<1x512xf32>
    %94 = vector.broadcast %93 : vector<1x512xf32> to vector<8x512xf32>
    %95 = arith.addf %92, %94 : vector<8x512xf32>
    %c7 = arith.constant 7 : index
    %c0_47 = arith.constant 0 : index
    %96 = vector.load %arg11[%c7, %c0_47] : memref<16x512xf32, #tpu.memory_space<vmem>>, vector<1x512xf32>
    %c8 = arith.constant 8 : index
    %c0_48 = arith.constant 0 : index
    %97 = vector.load %arg11[%c8, %c0_48] : memref<16x512xf32, #tpu.memory_space<vmem>>, vector<1x512xf32>
    %cst_49 = arith.constant dense<0.000000e+00> : vector<8xf32>
    %98 = vector.multi_reduction <add>, %95, %cst_49 [1] : vector<8x512xf32> to vector<8xf32>
    %99 = vector.shape_cast %98 : vector<8xf32> to vector<8x1xf32>
    %cst_50 = arith.constant 0.001953125 : f32
    %100 = vector.broadcast %cst_50 : f32 to vector<8x1xf32>
    %101 = arith.mulf %99, %100 : vector<8x1xf32>
    %102 = arith.mulf %95, %95 : vector<8x512xf32>
    %cst_51 = arith.constant dense<0.000000e+00> : vector<8xf32>
    %103 = vector.multi_reduction <add>, %102, %cst_51 [1] : vector<8x512xf32> to vector<8xf32>
    %104 = vector.shape_cast %103 : vector<8xf32> to vector<8x1xf32>
    %cst_52 = arith.constant 0.001953125 : f32
    %105 = vector.broadcast %cst_52 : f32 to vector<8x1xf32>
    %106 = arith.mulf %104, %105 : vector<8x1xf32>
    %107 = arith.mulf %101, %101 : vector<8x1xf32>
    %108 = arith.subf %106, %107 : vector<8x1xf32>
    %109 = vector.broadcast %101 : vector<8x1xf32> to vector<8x512xf32>
    %110 = arith.subf %95, %109 : vector<8x512xf32>
    %cst_53 = arith.constant 9.99999974E-6 : f32
    %111 = vector.broadcast %cst_53 : f32 to vector<8x1xf32>
    %112 = arith.addf %108, %111 : vector<8x1xf32>
    %113 = math.rsqrt %112 : vector<8x1xf32>
    %114 = vector.broadcast %113 : vector<8x1xf32> to vector<8x512xf32>
    %115 = arith.mulf %110, %114 : vector<8x512xf32>
    %116 = vector.broadcast %96 : vector<1x512xf32> to vector<8x512xf32>
    %117 = arith.mulf %115, %116 : vector<8x512xf32>
    %118 = vector.broadcast %97 : vector<1x512xf32> to vector<8x512xf32>
    %119 = arith.addf %117, %118 : vector<8x512xf32>
    %cst_54 = arith.constant 0.000000e+00 : f32
    %120 = vector.broadcast %cst_54 : f32 to vector<8x512xf32>
    %121 = arith.maximumf %119, %120 : vector<8x512xf32>
    %122 = arith.truncf %121 : vector<8x512xf32> to vector<8x512xbf16>
    %c0_55 = arith.constant 0 : index
    %c0_56 = arith.constant 0 : index
    %123 = vector.load %arg9[%c0_55, %c0_56] : memref<512x512xbf16, #tpu.memory_space<vmem>>, vector<512x512xbf16>
    %cst_57 = arith.constant dense<0.000000e+00> : vector<8x512xf32>
    %124 = tpu.matmul %122, %123, %cst_57 {dimension_numbers = #tpu.dot_dimension_numbers<[1], [0], [0], [1], [0, 0, 1, 1], [], []>} : vector<8x512xbf16>, vector<512x512xbf16>, vector<8x512xf32> -> vector<8x512xf32>
    %c9 = arith.constant 9 : index
    %c0_58 = arith.constant 0 : index
    %125 = vector.load %arg11[%c9, %c0_58] : memref<16x512xf32, #tpu.memory_space<vmem>>, vector<1x512xf32>
    %126 = vector.broadcast %125 : vector<1x512xf32> to vector<8x512xf32>
    %127 = arith.addf %124, %126 : vector<8x512xf32>
    %c10 = arith.constant 10 : index
    %c0_59 = arith.constant 0 : index
    %128 = vector.load %arg11[%c10, %c0_59] : memref<16x512xf32, #tpu.memory_space<vmem>>, vector<1x512xf32>
    %c11 = arith.constant 11 : index
    %c0_60 = arith.constant 0 : index
    %129 = vector.load %arg11[%c11, %c0_60] : memref<16x512xf32, #tpu.memory_space<vmem>>, vector<1x512xf32>
    %cst_61 = arith.constant dense<0.000000e+00> : vector<8xf32>
    %130 = vector.multi_reduction <add>, %127, %cst_61 [1] : vector<8x512xf32> to vector<8xf32>
    %131 = vector.shape_cast %130 : vector<8xf32> to vector<8x1xf32>
    %cst_62 = arith.constant 0.001953125 : f32
    %132 = vector.broadcast %cst_62 : f32 to vector<8x1xf32>
    %133 = arith.mulf %131, %132 : vector<8x1xf32>
    %134 = arith.mulf %127, %127 : vector<8x512xf32>
    %cst_63 = arith.constant dense<0.000000e+00> : vector<8xf32>
    %135 = vector.multi_reduction <add>, %134, %cst_63 [1] : vector<8x512xf32> to vector<8xf32>
    %136 = vector.shape_cast %135 : vector<8xf32> to vector<8x1xf32>
    %cst_64 = arith.constant 0.001953125 : f32
    %137 = vector.broadcast %cst_64 : f32 to vector<8x1xf32>
    %138 = arith.mulf %136, %137 : vector<8x1xf32>
    %139 = arith.mulf %133, %133 : vector<8x1xf32>
    %140 = arith.subf %138, %139 : vector<8x1xf32>
    %141 = vector.broadcast %133 : vector<8x1xf32> to vector<8x512xf32>
    %142 = arith.subf %127, %141 : vector<8x512xf32>
    %cst_65 = arith.constant 9.99999974E-6 : f32
    %143 = vector.broadcast %cst_65 : f32 to vector<8x1xf32>
    %144 = arith.addf %140, %143 : vector<8x1xf32>
    %145 = math.rsqrt %144 : vector<8x1xf32>
    %146 = vector.broadcast %145 : vector<8x1xf32> to vector<8x512xf32>
    %147 = arith.mulf %142, %146 : vector<8x512xf32>
    %148 = vector.broadcast %128 : vector<1x512xf32> to vector<8x512xf32>
    %149 = arith.mulf %147, %148 : vector<8x512xf32>
    %150 = vector.broadcast %129 : vector<1x512xf32> to vector<8x512xf32>
    %151 = arith.addf %149, %150 : vector<8x512xf32>
    %cst_66 = arith.constant 0.000000e+00 : f32
    %152 = vector.broadcast %cst_66 : f32 to vector<8x512xf32>
    %153 = arith.maximumf %151, %152 : vector<8x512xf32>
    %154 = arith.addf %153, %121 : vector<8x512xf32>
    %155 = arith.truncf %154 : vector<8x512xf32> to vector<8x512xbf16>
    %c0_67 = arith.constant 0 : index
    %c0_68 = arith.constant 0 : index
    %156 = vector.load %arg10[%c0_67, %c0_68] : memref<512x256xbf16, #tpu.memory_space<vmem>>, vector<512x256xbf16>
    %cst_69 = arith.constant dense<0.000000e+00> : vector<8x256xf32>
    %157 = tpu.matmul %155, %156, %cst_69 {dimension_numbers = #tpu.dot_dimension_numbers<[1], [0], [0], [1], [0, 0, 1, 1], [], []>} : vector<8x512xbf16>, vector<512x256xbf16>, vector<8x256xf32> -> vector<8x256xf32>
    %c13 = arith.constant 13 : index
    %c0_70 = arith.constant 0 : index
    %158 = vector.load %arg11[%c13, %c0_70] : memref<16x512xf32, #tpu.memory_space<vmem>>, vector<1x256xf32>
    %159 = vector.broadcast %158 : vector<1x256xf32> to vector<8x256xf32>
    %160 = arith.addf %157, %159 : vector<8x256xf32>
    %cst_71 = arith.constant 0.000000e+00 : f32
    %161 = vector.broadcast %cst_71 : f32 to vector<8x256xf32>
    %162 = arith.maximumf %160, %161 : vector<8x256xf32>
    %c15 = arith.constant 15 : index
    %c0_72 = arith.constant 0 : index
    %163 = vector.load %arg11[%c15, %c0_72] : memref<16x512xf32, #tpu.memory_space<vmem>>, vector<1x256xf32>
    %164 = vector.broadcast %163 : vector<1x256xf32> to vector<8x256xf32>
    %165 = arith.mulf %162, %164 : vector<8x256xf32>
    %cst_73 = arith.constant dense<0.000000e+00> : vector<8xf32>
    %166 = vector.multi_reduction <add>, %165, %cst_73 [1] : vector<8x256xf32> to vector<8xf32>
    %167 = vector.shape_cast %166 : vector<8xf32> to vector<8x1xf32>
    %c1_74 = arith.constant 1 : index
    %168 = memref.load %arg12[%c1_74] : memref<2xf32, #tpu.memory_space<smem>>
    %169 = vector.broadcast %168 : f32 to vector<8x1xf32>
    %170 = arith.addf %167, %169 : vector<8x1xf32>
    %c0_75 = arith.constant 0 : index
    %c0_76 = arith.constant 0 : index
    %171 = vector.load %arg14[%c0_75, %c0_76] : memref<8x1xf32, #tpu.memory_space<vmem>>, vector<8x1xf32>
    tpu.vector_store %arg14[%c0_75, %c0_76], %170 {strides = array<i32>} : memref<8x1xf32, #tpu.memory_space<vmem>>, vector<8x1xf32>,
    return
  }
  func.func @transform_0(%arg0: i32) -> (i32, i32) {
    %c0_i32 = arith.constant 0 : i32
    %c0_i32_0 = arith.constant 0 : i32
    return %arg0, %c0_i32 : i32, i32
  }
  func.func @transform_1(%arg0: i32) -> (i32, i32) {
    %c0_i32 = arith.constant 0 : i32
    %c0_i32_0 = arith.constant 0 : i32
    return %arg0, %c0_i32 : i32, i32
  }
  func.func @transform_2(%arg0: i32) -> (i32, i32) {
    %c0_i32 = arith.constant 0 : i32
    %c0_i32_0 = arith.constant 0 : i32
    %c0_i32_1 = arith.constant 0 : i32
    return %c0_i32, %c0_i32_0 : i32, i32
  }
  func.func @transform_3(%arg0: i32) -> (i32, i32) {
    %c0_i32 = arith.constant 0 : i32
    %c0_i32_0 = arith.constant 0 : i32
    %c0_i32_1 = arith.constant 0 : i32
    return %c0_i32, %c0_i32_0 : i32, i32
  }
  func.func @transform_4(%arg0: i32) -> (i32, i32) {
    %c0_i32 = arith.constant 0 : i32
    %c0_i32_0 = arith.constant 0 : i32
    %c0_i32_1 = arith.constant 0 : i32
    return %c0_i32, %c0_i32_0 : i32, i32
  }
  func.func @transform_5(%arg0: i32) -> (i32, i32) {
    %c0_i32 = arith.constant 0 : i32
    %c0_i32_0 = arith.constant 0 : i32
    %c0_i32_1 = arith.constant 0 : i32
    return %c0_i32, %c0_i32_0 : i32, i32
  }
  func.func @transform_6(%arg0: i32) -> (i32, i32) {
    %c0_i32 = arith.constant 0 : i32
    %c0_i32_0 = arith.constant 0 : i32
    %c0_i32_1 = arith.constant 0 : i32
    return %c0_i32, %c0_i32_0 : i32, i32
  }
  func.func @transform_7(%arg0: i32) -> (i32, i32) {
    %c0_i32 = arith.constant 0 : i32
    %c0_i32_0 = arith.constant 0 : i32
    %c0_i32_1 = arith.constant 0 : i32
    return %c0_i32, %c0_i32_0 : i32, i32
  }
  func.func @transform_8(%arg0: i32) -> (i32, i32) {
    %c0_i32 = arith.constant 0 : i32
    %c0_i32_0 = arith.constant 0 : i32
    %c0_i32_1 = arith.constant 0 : i32
    return %c0_i32, %c0_i32_0 : i32, i32
  }
  func.func @transform_9(%arg0: i32) -> (i32, i32) {
    %c0_i32 = arith.constant 0 : i32
    %c0_i32_0 = arith.constant 0 : i32
    %c0_i32_1 = arith.constant 0 : i32
    return %c0_i32, %c0_i32_0 : i32, i32
  }
  func.func @transform_10(%arg0: i32) -> (i32, i32) {
    %c0_i32 = arith.constant 0 : i32
    %c0_i32_0 = arith.constant 0 : i32
    %c0_i32_1 = arith.constant 0 : i32
    return %c0_i32, %c0_i32_0 : i32, i32
  }
  func.func @transform_11(%arg0: i32) -> i32 {
    %c0_i32 = arith.constant 0 : i32
    %c0_i32_0 = arith.constant 0 : i32
    return %c0_i32 : i32
  }
  func.func @transform_12(%arg0: i32) -> (i32, i32) {
    %c0_i32 = arith.constant 0 : i32
    %c0_i32_0 = arith.constant 0 : i32
    return %arg0, %c0_i32 : i32, i32
  }
  func.func @transform_13(%arg0: i32) -> (i32, i32) {
    %c0_i32 = arith.constant 0 : i32
    %c0_i32_0 = arith.constant 0 : i32
    return %arg0, %c0_i32 : i32, i32
  }
}

</mosaic_0001>

<bundles_post_ra>
// kernel: tpu_custom_call.1
= control target key start
LH: loop header
LB: loop body
LE: loop exit
PB: predicated region body
PF: predicated region fallthrough
CT: control target
= control target key end

     0   :  { %s6921_s0 = inlined_call_operand.hbm [shape: f32[16,16], index: 0, kind: input, shape index: {}]   ;;  %s6922_s1 = inlined_call_operand.hbm [shape: f32[16,32], index: 1, kind: input, shape index: {}]   ;;  %s6923_s2 = inlined_call_operand.hbm [shape: bf16[16,512], index: 2, kind: input, shape index: {}]   ;;  %s6924_s3 = inlined_call_operand.hbm [shape: bf16[32,512], index: 3, kind: input, shape index: {}]   ;;  %s6925_s4 = inlined_call_operand.hbm [shape: bf16[512,512], index: 4, kind: input, shape index: {}]   ;;  %s6926_s5 = inlined_call_operand.hbm [shape: bf16[512,256], index: 5, kind: input, shape index: {}]   ;;  %s6927_s6 = inlined_call_operand.hbm [shape: bf16[16,512], index: 6, kind: input, shape index: {}]   ;;  %s6928_s7 = inlined_call_operand.hbm [shape: bf16[32,512], index: 7, kind: input, shape index: {}]   ;;  %s6929_s8 = inlined_call_operand.hbm [shape: bf16[512,512], index: 8, kind: input, shape index: {}]   ;;  %s6930_s9 = inlined_call_operand.hbm [shape: bf16[512,256], index: 9, kind: input, shape index: {}]   ;;  %s6931_s10 = inlined_call_operand.hbm [shape: f32[16,512], index: 10, kind: input, shape index: {}]   ;;  %s6932_s11 = inlined_call_operand.vmem [shape: f32[2], index: 11, kind: input, shape index: {}]   ;;  %s6933_s12 = inlined_call_operand.vmem [shape: f32[16,1], index: 12, kind: output, shape index: {0}]   ;;  %s6934_s13 = inlined_call_operand.vmem [shape: f32[16,1], index: 13, kind: output, shape index: {1}]  }
   0x1   :  { %6942 = sst [smem:[#allocation29_spill]] %s6923_s2 }
   0x2   :  { %6943 = sst [smem:[#allocation30_spill]] %s6924_s3 }
   0x3   :  { %6944 = sst [smem:[#allocation31_spill]] %s6925_s4 }
   0x4   :  { %6945 = sst [smem:[#allocation32_spill]] %s6926_s5 }
   0x5   :  { %6946 = sst [smem:[#allocation33_spill]] %s6927_s6 }
   0x6   :  { %6947 = sst [smem:[#allocation34_spill]] %s6928_s7 }
   0x7   :  { %6948 = sst [smem:[#allocation35_spill]] %s6929_s8 }
   0x8   :  { %19 = vsyncpa [#allocation3], 0 }
   0x9   :  { %21 = vsyncpa [#allocation3 + $0x1], 0 }
   0xa   :  { %22 = vsyncpa [#allocation6], 0 }
   0xb   :  { %24 = vsyncpa [#allocation6 + $0x1], 0 }
   0xc   :  { %25 = vsyncpa [#allocation9], 0 }
   0xd   :  { %26 = vsyncpa [#allocation12], 0 }
   0xe   :  { %27 = vsyncpa [#allocation15], 0 }
   0xf   :  { %28 = vsyncpa [#allocation18], 0 }
  0x10   :  { %29 = vsyncpa [#allocation4], 0  ;;  %s6368_s25 = smov 0   ;;  %s6370_s26 = smov 0  }
  0x11   :  { %s6372_s27 = smov 0   ;;  %s6374_s28 = smov 0  }
  0x12 LB: > { %s6279_s29 = smov [#allocation7]   ;;  %s6389_s14 = sadd.s32 4294967295, %s6277_s28   ;;  %s6277_s28 = sphi %s6374_s28, %s6980_s28   ;;  %s6273_s27 = sphi %s6372_s27, %s6979_s27   ;;  %s6269_s26 = sphi %s6370_s26, %s6978_s26   ;;  %s6265_s25 = sphi %s6368_s25, %s6977_s25  }
  0x13   : > { %s366_s30 = sshll.u32 %s6279_s29, 4  ;;  %p4688_p0 = scmp.ge.s32.totalorder %s6277_s28, 1  ;;  %s367_s30 = int_to_ptr.vmem [resolvable:$true] %s366_s30 }
  0x14   : > { %p6939_p1 = scmp.eq.s32.totalorder %s6389_s14, 0  ;;  %p354_p2 = scmp.lt.s32.totalorder %s6277_s28, 3 }
  0x15   : > { %s6280_s16 = smov [#allocation8]   ;;  %s6281_s19 = smov [#allocation11]  }
  0x16   : > { %p6394_p3 = pnand %p4688_p0, %p354_p2  ;;  %s379_s17 = sshll.u32 %s6280_s16, 4  ;;  %s6406_s17 = int_to_ptr.vmem [resolvable:$true] %s379_s17 }
  0x17   : > { %s405_s20 = sshll.u32 %s6281_s19, 4  ;;  %s5921_s22 = scalar_lea.vmem %s367_s30, 512  ;;  %s6408_s20 = int_to_ptr.vmem [resolvable:$true] %s405_s20 }
  0x18   : > { %s6949_s15 = scalar_select %p6394_p3, 1, 0 }
  0x19   : > { %p5182_p4 = pneg %p6394_p3  ;;  %p5922_p7 = scmp.ne.s32.totalorder %s367_s30, %s5921_s22 }
  0x1a   : > { %p5929_p10 = scmp.lt.s32.totalorder %s367_s30, %s367_s30  ;;  %p5930_p11 = scmp.lt.s32.totalorder %s5921_s22, %s5921_s22 }
  0x1b   : > { %p6402_p5 = pnand %p5182_p4, %p6939_p1 }
  0x1c   : > { %p5931_p12 = por %p5930_p11, %p5929_p10 }
  0x1d   : > { %p6412_p6 = pneg %p6402_p5 }
  0x1f   : > { %p5924_p8 = pnand %p5922_p7, %p6412_p6 }
  0x21   : > { %p5925_p9 = pneg %p5924_p8 }
  0x23   : > { %p5932_p13 = pnand %p5931_p12, %p5925_p9 }
  0x25   : > { %5935 = shalt.err (!%p5932_p13)
}
  0x26   : > { %s6935_s23 = smov 256   ;;  %s6937_s24 = smov 16  }
  0x27   : > { %s6952_s2 = sld [smem:[#allocation29_spill]]  ;;  %s5947_s19 = scalar_lea.vmem %s6406_s17, 1024 }
  0x28   : > { %p5948_p0 = scmp.ne.s32.totalorder %s6406_s17, %s5947_s19  ;;  %p5955_p7 = scmp.lt.s32.totalorder %s6406_s17, %s6406_s17 }
  0x29   : > { %p5956_p8 = scmp.lt.s32.totalorder %s5947_s19, %s5947_s19 }
  0x2a   : > { %p5950_p2 = pnand %p5948_p0, %p6412_p6 }
  0x2b   : > { %p5957_p9 = por %p5956_p8, %p5955_p7 }
  0x2c   : > { %p5951_p4 = pneg %p5950_p2 }
  0x2d   : > { %5185 = dma.hbm_to_vmem [thread:$0]  (!%p6402_p5), %s6952_s2, 512, %s367_s30, [#allocation6], %s6935_s23, %s6935_s23, %s6937_s24  }
  0x2e   : > { %p5958_p10 = pnand %p5957_p9, %p5951_p4 }
  0x30   : > { %5961 = shalt.err (!%p5958_p10)
}
  0x31   : > { %s6953_s3 = sld [smem:[#allocation30_spill]]  ;;  %s5973_s30 = scalar_lea.vmem %s6408_s20, 8192 }
  0x32   : > { %p5974_p11 = scmp.ne.s32.totalorder %s6408_s20, %s5973_s30  ;;  %p5981_p0 = scmp.lt.s32.totalorder %s6408_s20, %s6408_s20 }
  0x33   : > { %p5982_p2 = scmp.lt.s32.totalorder %s5973_s30, %s5973_s30 }
  0x34   : > { %p5976_p12 = pnand %p5974_p11, %p6412_p6 }
  0x35   : > { %p5983_p4 = por %p5982_p2, %p5981_p0 }
  0x36   : > { %p5977_p13 = pneg %p5976_p12 }
  0x37   : > { %5188 = dma.hbm_to_vmem [thread:$0]  (!%p6402_p5), %s6953_s3, 1024, %s6406_s17, [#allocation9], %s6935_s23, %s6935_s23, %s6937_s24  }
  0x38   : > { %p5984_p7 = pnand %p5983_p4, %p5977_p13 }
  0x3a   : > { %5987 = shalt.err (!%p5984_p7)
}
  0x3b   : > { %s6284_s16 = smov 128   ;;  %s6285_s19 = smov 8  }
  0x3c   : > { %s6954_s5 = sld [smem:[#allocation32_spill]]  ;;  %s6286_s29 = smov [#allocation14]  }
  0x3d   : > { %s431_s23 = sshll.u32 %s6286_s29, 4  ;;  %s6287_s30 = smov [#allocation17]   ;;  %s432_s23 = int_to_ptr.vmem [resolvable:$true] %s431_s23 }
  0x3e   : > { %s457_s24 = sshll.u32 %s6287_s30, 4  ;;  %s5999_s2 = scalar_lea.vmem %s432_s23, 1024  ;;  %s458_s24 = int_to_ptr.vmem [resolvable:$true] %s457_s24 }
  0x3f   : > { %p6000_p8 = scmp.ne.s32.totalorder %s432_s23, %s5999_s2  ;;  %p6007_p11 = scmp.lt.s32.totalorder %s432_s23, %s432_s23 }
  0x40   : > { %p6008_p12 = scmp.lt.s32.totalorder %s5999_s2, %s5999_s2 }
  0x41   : > { %p6002_p9 = pnand %p6000_p8, %p6412_p6 }
  0x42   : > { %5194 = dma.hbm_to_vmem [thread:$0]  (!%p6402_p5), %s6954_s5, 8192, %s6408_s20, [#allocation12], %s6284_s16, %s6284_s16, %s6285_s19  }
  0x43   : > { %p6003_p10 = pneg %p6002_p9  ;;  %p6009_p13 = por %p6008_p12, %p6007_p11 }
  0x45   : > { %p6010_p0 = pnand %p6009_p13, %p6003_p10 }
  0x47   : > { %6013 = shalt.err (!%p6010_p0)
}
  0x48   : > { %s6955_s3 = smov 16   ;;  %s6956_s17 = smov 256  }
  0x49   : > { %s6957_s7 = sld [smem:[#allocation34_spill]]  ;;  %s6025_s29 = scalar_lea.vmem %s458_s24, 8192 }
  0x4a   : > { %p6026_p2 = scmp.ne.s32.totalorder %s458_s24, %s6025_s29  ;;  %p6033_p8 = scmp.lt.s32.totalorder %s458_s24, %s458_s24 }
  0x4b   : > { %p6034_p9 = scmp.lt.s32.totalorder %s6025_s29, %s6025_s29 }
  0x4c   : > { %p6028_p4 = pnand %p6026_p2, %p6412_p6 }
  0x4d   : > { %p6035_p10 = por %p6034_p9, %p6033_p8 }
  0x4e   : > { %p6029_p7 = pneg %p6028_p4 }
  0x4f   : > { %5200 = dma.hbm_to_vmem [thread:$0]  (!%p6402_p5), %s6957_s7, 1024, %s432_s23, [#allocation15], %s6956_s17, %s6956_s17, %s6955_s3  }
  0x50   : > { %p6036_p11 = pnand %p6035_p10, %p6029_p7 }
  0x52   : > { %6039 = shalt.err (!%p6036_p11)
}
  0x53   : > { %5206 = dma.hbm_to_vmem [thread:$0]  (!%p6402_p5), %s6930_s9, 8192, %s458_s24, [#allocation18], %s6284_s16, %s6284_s16, %s6285_s19  }
  0x54   : > { %s6288_s23 = smov [#allocation10]   ;;  %s6289_s22 = smov [#allocation13]  }
  0x55   : > { %s392_s20 = sshll.u32 %s6288_s23, 4  ;;  %s418_s5 = sshll.u32 %s6289_s22, 4  ;;  %s393_s20 = int_to_ptr.vmem [resolvable:$true] %s392_s20  ;;  %s419_s5 = int_to_ptr.vmem [resolvable:$true] %s418_s5 }
  0x56   : > { %s6051_s7 = scalar_lea.vmem %s393_s20, 16384  ;;  %p6059_p2 = scmp.lt.s32.totalorder %s393_s20, %s393_s20 }
  0x57   : > { %p6052_p12 = scmp.ne.s32.totalorder %s393_s20, %s6051_s7  ;;  %p6060_p4 = scmp.lt.s32.totalorder %s6051_s7, %s6051_s7 }
  0x59   : > { %p6054_p13 = pnand %p6052_p12, %p6412_p6  ;;  %p6061_p7 = por %p6060_p4, %p6059_p2 }
  0x5b   : > { %p6055_p0 = pneg %p6054_p13 }
  0x5d   : > { %p6062_p8 = pnand %p6061_p7, %p6055_p0 }
  0x5f   : > { %6065 = shalt.err (!%p6062_p8)
}
  0x60   : > { %s6958_s4 = sld [smem:[#allocation31_spill]]  ;;  %s6077_s19 = scalar_lea.vmem %s419_s5, 512 }
  0x61   : > { %p6078_p9 = scmp.ne.s32.totalorder %s419_s5, %s6077_s19  ;;  %p6085_p12 = scmp.lt.s32.totalorder %s419_s5, %s419_s5 }
  0x62   : > { %p6086_p13 = scmp.lt.s32.totalorder %s6077_s19, %s6077_s19 }
  0x63   : > { %p6080_p10 = pnand %p6078_p9, %p6412_p6 }
  0x64   : > { %p6087_p0 = por %p6086_p13, %p6085_p12 }
  0x65   : > { %p6081_p11 = pneg %p6080_p10 }
  0x66   : > { %5191 = dma.hbm_to_vmem [thread:$0]  (!%p6402_p5), %s6958_s4, 16384, %s393_s20, [#allocation9], %s6956_s17, %s6956_s17, %s6955_s3  }
  0x67   : > { %p6088_p2 = pnand %p6087_p0, %p6081_p11 }
  0x69   : > { %6091 = shalt.err (!%p6088_p2)
}
  0x6a   : > { %s6959_s6 = sld [smem:[#allocation33_spill]]  ;;  %s6290_s2 = smov [#allocation16]  }
  0x6b   : > { %s444_s30 = sshll.u32 %s6290_s2, 4  ;;  %s6291_s23 = smov [#allocation19]   ;;  %s445_s30 = int_to_ptr.vmem [resolvable:$true] %s444_s30 }
  0x6c   : > { %s470_s20 = sshll.u32 %s6291_s23, 4  ;;  %s6103_s22 = scalar_lea.vmem %s445_s30, 16384  ;;  %s471_s20 = int_to_ptr.vmem [resolvable:$true] %s470_s20 }
  0x6d   : > { %p6104_p4 = scmp.ne.s32.totalorder %s445_s30, %s6103_s22  ;;  %p6111_p9 = scmp.lt.s32.totalorder %s445_s30, %s445_s30 }
  0x6e   : > { %p6112_p10 = scmp.lt.s32.totalorder %s6103_s22, %s6103_s22 }
  0x6f   : > { %p6106_p7 = pnand %p6104_p4, %p6412_p6 }
  0x70   : > { %5197 = dma.hbm_to_vmem [thread:$0]  (!%p6402_p5), %s6959_s6, 512, %s419_s5, [#allocation12], %s6956_s17, %s6956_s17, %s6955_s3  }
  0x71   : > { %p6107_p8 = pneg %p6106_p7  ;;  %p6113_p11 = por %p6112_p10, %p6111_p9 }
  0x73   : > { %p6114_p12 = pnand %p6113_p11, %p6107_p8 }
  0x75   : > { %6117 = shalt.err (!%p6114_p12)
}
  0x76   : > { %s6960_s8 = sld [smem:[#allocation35_spill]]  ;;  %s484_s7 = sshll.u32 %s6932_s11, 4  ;;  %s485_s7 = int_to_ptr.vmem [resolvable:$true] %s484_s7 }
  0x77   : > { %s6129_s29 = scalar_lea.vmem %s471_s20, 1024  ;;  %p6137_p4 = scmp.lt.s32.totalorder %s471_s20, %s471_s20 }
  0x78   : > { %p6130_p13 = scmp.ne.s32.totalorder %s471_s20, %s6129_s29  ;;  %p6138_p7 = scmp.lt.s32.totalorder %s6129_s29, %s6129_s29 }
  0x7a   : > { %p6132_p0 = pnand %p6130_p13, %p6412_p6  ;;  %p6139_p8 = por %p6138_p7, %p6137_p4 }
  0x7c   : > { %5203 = dma.hbm_to_vmem [thread:$0]  (!%p6402_p5), %s6960_s8, 16384, %s445_s30, [#allocation15], %s6956_s17, %s6956_s17, %s6955_s3  }
  0x7d   : > { %p6133_p2 = pneg %p6132_p0 }
  0x7f   : > { %p6140_p9 = pnand %p6139_p8, %p6133_p2 }
  0x81   : > { %6143 = shalt.err (!%p6140_p9)
}
  0x82   : > { %s6292_s2 = smov 512   ;;  %s6293_s23 = smov 32  }
  0x83   : > { %5209 = dma.hbm_to_vmem [thread:$0]  (!%p6402_p5), %s6931_s10, 1024, %s471_s20, [#allocation18], %s6292_s2, %s6292_s2, %s6293_s23  }
  0x84   : > { %s6144_s30 = scalar_lea.vmem %s485_s7, 16  ;;  %p6152_p13 = scmp.lt.s32.totalorder %s485_s7, %s485_s7 }
  0x85   : > { %p6145_p10 = scmp.ne.s32.totalorder %s485_s7, %s6144_s30  ;;  %p6153_p0 = scmp.lt.s32.totalorder %s6144_s30, %s6144_s30 }
  0x87   : > { %p6147_p11 = pnand %p6145_p10, %p6412_p6  ;;  %p6154_p4 = por %p6153_p0, %p6152_p13 }
  0x89   : > { %p6148_p12 = pneg %p6147_p11 }
  0x8b   : > { %p6155_p2 = pnand %p6154_p4, %p6148_p12 }
  0x8d   : > { %6158 = shalt.err (!%p6155_p2)
}
  0x8e   : > { %s6294_s22 = smov [#allocation20]   ;;  %s6521_s21 = sadd.s32 1, %s6277_s28  }
  0x8f   : > { %5212 = dma.vmem_to_smem (!%p6402_p5), %s485_s7, 16, %s6294_s22, [#allocation4]  }
  0x90   : > { %s42_s20 = sadd.s32 1, %s6273_s27  ;;  %s39_s5 = ssub.s32 %s6277_s28, %s6521_s21 }
  0x91   : > { %p49_p6 = scmp.ne.s32.totalorder %s6273_s27, %s6269_s26  ;;  %p40_p7 = scmp.eq.s32.totalorder %s39_s5, 0 }
  0x92   : > { %p50_p8 = scmp.eq.s32.totalorder %s6277_s28, 0  ;;  %p55_p9 = scmp.ne.s32.totalorder %s6269_s26, %s6265_s25 }
  0x93   : > { %p5230_p10 = scmp.lt.s32.totalorder %s6277_s28, 2  ;;  %s495_s16 = sand.u32 1, %s6273_s27  }
  0x94   : > { %s6533_s18 = scalar_select %p40_p7, %s6273_s27, %s42_s20  }
  0x95   : > { %p51_p11 = por %p50_p8, %p49_p6  ;;  %p6537_p12 = por %p6939_p1, %p55_p9 }
  0x96   : > { %s4701_s19 = sshll.u32 %s6277_s28, 7  ;;  %s6543_s7 = sshll.u32 %s495_s16, 3 }
  0x97   : > { %s6961_s24 = scalar_select %p6537_p12, 1, 0 }
  0x98   : > { %s6548_s23 = scalar_lea.hbm %s6921_s0, %s4701_s19  ;;  %s499_s25 = scalar_lea.vmem [#allocation2], %s6543_s7 }
  0x99   : > { %s506_s3 = sshll.u32 %s499_s25, 4  ;;  %p6551_p5 = pnand %p5230_p10, %p51_p11  ;;  %s507_s3 = int_to_ptr.vmem [resolvable:$true] %s506_s3 }
  0x9a   : > { %s6558_s20 = scalar_lea.hbm %s6922_s1, %s4701_s19  ;;  %s496_s5 = scalar_lea.sflag [#allocation3], %s495_s16 }
  0x9b   : > { %s6159_s29 = scalar_lea.hbm %s6548_s23, 128  ;;  %p6161_p0 = pneg %p6551_p5 }
  0x9c   : > { %p6160_p13 = scmp.ne.s32.totalorder %s6548_s23, %s6159_s29  ;;  %s6164_s4 = scalar_lea.hbm %s6921_s0, 256 }
  0x9d   : > { %p6165_p6 = scmp.lt.s32.totalorder %s6548_s23, %s6921_s0  ;;  %p6166_p7 = scmp.lt.s32.totalorder %s6164_s4, %s6159_s29 }
  0x9e   : > { %p6162_p4 = pnand %p6161_p0, %p6160_p13 }
  0x9f   : > { %p6167_p8 = por %p6166_p7, %p6165_p6 }
  0xa0   : > { %p6163_p2 = pneg %p6162_p4 }
  0xa2   : > { %p6168_p9 = pnand %p6167_p8, %p6163_p2 }
  0xa4   : > { %6171 = shalt.err (!%p6168_p9)
}
  0xa5   : > { %s6172_s16 = scalar_lea.vmem %s507_s3, 128  ;;  %s6295_s19 = smov [#allocation2]  }
  0xa6   : > { %p6173_p10 = scmp.ne.s32.totalorder %s507_s3, %s6172_s16  ;;  %s6177_s30 = sshll.u32 %s6295_s19, 4  ;;  %s6178_s30 = int_to_ptr.vmem [resolvable:$false] %s6177_s30 }
  0xa7   : > { %s6179_s22 = scalar_lea.vmem %s6178_s30, 256  ;;  %p6180_p4 = scmp.lt.s32.totalorder %s507_s3, %s6178_s30 }
  0xa8   : > { %p6175_p11 = pnand %p6173_p10, %p6161_p0  ;;  %p6181_p1 = scmp.lt.s32.totalorder %s6179_s22, %s6172_s16 }
  0xaa   : > { %p6176_p13 = pneg %p6175_p11  ;;  %p6182_p12 = por %p6181_p1, %p6180_p4 }
  0xac   : > { %p6183_p3 = pnand %p6182_p12, %p6176_p13 }
  0xae   : > { %6186 = shalt.err (!%p6183_p3)
}
  0xaf   : > { %5216 = dma.hbm_to_vmem [thread:$0]  (!%p6551_p5), %s6548_s23, 128, %s507_s3, %s496_s5  }
  0xb0   : > { %s513_s4 = sand.u32 1, %s6277_s28   ;;  %s517_s6 = scalar_lea.vmem [#allocation5], %s6543_s7 }
  0xb1   : > { %s524_s8 = sshll.u32 %s517_s6, 4  ;;  %s514_s29 = scalar_lea.sflag [#allocation6], %s513_s4  ;;  %s525_s8 = int_to_ptr.vmem [resolvable:$true] %s524_s8 }
  0xb2   : > { %s6187_s2 = scalar_lea.hbm %s6558_s20, 128  ;;  %s6192_s19 = scalar_lea.hbm %s6922_s1, 256 }
  0xb3   : > { %p6188_p2 = scmp.ne.s32.totalorder %s6558_s20, %s6187_s2  ;;  %p6193_p12 = scmp.lt.s32.totalorder %s6558_s20, %s6922_s1 }
  0xb4   : > { %p6194_p6 = scmp.lt.s32.totalorder %s6192_s19, %s6187_s2 }
  0xb5   : > { %p6190_p1 = pnand %p6188_p2, %p6161_p0 }
  0xb6   : > { %p6195_p7 = por %p6194_p6, %p6193_p12 }
  0xb7   : > { %p6191_p3 = pneg %p6190_p1 }
  0xb9   : > { %p6196_p8 = pnand %p6195_p7, %p6191_p3 }
  0xbb   : > { %6199 = shalt.err (!%p6196_p8)
}
  0xbc   : > { %s6200_s28 = scalar_lea.vmem %s525_s8, 128  ;;  %s6296_s7 = smov [#allocation5]  }
  0xbd   : > { %p6201_p9 = scmp.ne.s32.totalorder %s525_s8, %s6200_s28  ;;  %s6205_s23 = sshll.u32 %s6296_s7, 4  ;;  %s6206_s23 = int_to_ptr.vmem [resolvable:$false] %s6205_s23 }
  0xbe   : > { %s6207_s3 = scalar_lea.vmem %s6206_s23, 256  ;;  %p6208_p13 = scmp.lt.s32.totalorder %s525_s8, %s6206_s23 }
  0xbf   : > { %p6203_p10 = pnand %p6201_p9, %p6161_p0  ;;  %p6209_p4 = scmp.lt.s32.totalorder %s6207_s3, %s6200_s28 }
  0xc1   : > { %p6204_p11 = pneg %p6203_p10  ;;  %p6210_p2 = por %p6209_p4, %p6208_p13 }
  0xc3   : > { %p6211_p1 = pnand %p6210_p2, %p6204_p11 }
  0xc5   : > { %6214 = shalt.err (!%p6211_p1)
}
  0xc6   : > { %5219 = dma.hbm_to_vmem [thread:$0]  (!%p6551_p5), %s6558_s20, 128, %s525_s8, %s514_s29  }
  0xc7   : > { %p6963_p3 = scmp.ne.s32.totalorder %s6949_s15, 0 }
  0xc8   : > { %s535_s5 = sand.u32 (!%p6963_p3), 1, %s6269_s26   ;;  %p6964_p0 = scmp.ne.s32.totalorder (!%p6963_p3), %s6961_s24, 0 }
  0xc9   : > { %533 = sbr.rel (%p6963_p3) target bundleno = 2244 (0x8c4), region = 68  ;;  %s6603_s4 = sshll.u32 (!%p6963_p3), %s535_s5, 3 }
  0xca   : > { %s536_s6 = scalar_lea.sflag (!%p6963_p3), [#allocation3], %s535_s5  ;;  %s539_s2 = scalar_lea.vmem (!%p6963_p3), [#allocation2], %s6603_s4 }
  0xce   : > { %6232 = dma.done.wait (%p6964_p0), %s536_s6, 128  }
  0xcf   : > { %6234 = vsyncadd (%p6964_p0), %s536_s6, 4294967168  ;;  %s544_s17 = sand.u32 1, %s6389_s14   ;;  %s548_s15 = scalar_lea.vmem [#allocation5], %s6603_s4 }
  0xd0   : > { %s545_s20 = scalar_lea.sflag [#allocation6], %s544_s17 }
  0xd1   : > { %6236 = dma.done.wait (%p6964_p0), %s545_s20, 128  }
  0xd2   : > { %6238 = vsyncadd (%p6964_p0), %s545_s20, 4294967168  ;;  %p6965_p5 = scmp.eq.s32.totalorder %s6389_s14, 0 }
  0xd4   : > { %6240 = dma.done.wait (%p6965_p5), [#allocation6], 512   ;;  %p6966_p12 = pmov %p6965_p5 }
  0xd5   : > { %p6967_p6 = pmov %p6965_p5 }
  0xd6   : > { %6242 = vsyncadd (%p6966_p12), [#allocation6], 4294966784 }
  0xd7   : > { %6244 = dma.done.wait (%p6967_p6), [#allocation9], 17408   ;;  %p6968_p7 = pmov %p6965_p5 }
  0xd8   : > { %p6969_p8 = pmov %p6965_p5 }
  0xd9   : > { %6246 = vsyncadd (%p6968_p7), [#allocation9], 4294949888 }
  0xda   : > { %6248 = dma.done.wait (%p6969_p8), [#allocation12], 8704   ;;  %p6970_p9 = pmov %p6965_p5 }
  0xdb   : > { %p6971_p10 = pmov %p6965_p5 }
  0xdc   : > { %6250 = vsyncadd (%p6970_p9), [#allocation12], 4294958592 }
  0xdd   : > { %6252 = dma.done.wait (%p6971_p10), [#allocation15], 17408   ;;  %p6972_p11 = pmov %p6965_p5 }
  0xde   : > { %p6973_p13 = pmov %p6965_p5 }
  0xdf   : > { %6254 = vsyncadd (%p6972_p11), [#allocation15], 4294949888 }
  0xe0   : > { %6256 = dma.done.wait (%p6973_p13), [#allocation18], 9216   ;;  %p6974_p4 = pmov %p6965_p5 }
  0xe2   : > { %6258 = vsyncadd (%p6974_p4), [#allocation18], 4294958080  ;;  %p6975_p2 = pmov %p6974_p4 }
  0xe4   : > { %6260 = dma.done.wait (%p6975_p2), [#allocation4], 16   ;;  %p6976_p1 = pmov %p6975_p2 }
  0xe6   : > { %6262 = vsyncadd (%p6976_p1), [#allocation4], 4294967280 }
  0xe7   : > { %593 = sfence }
  0xe8   : > { %v5290_v0 = vld [vmem:[#allocation8 + $0x24] ss:$16 sps:$4 sm:$0xff]   ;;  %v5292_v1 = vld [vmem:[#allocation8 + $0x2c] ss:$16 sps:$4 sm:$0xff]   ;;  %v6297_v2 = vmov 0   ;;  %vm705_vm0 = vcmask 261120   ;;  %v899_v49 = vlaneseq }
  0xe9   : > { %741 = vmatprep.mubr.bf16.mxu0 %v6297_v2  ;;  %782 = vmatprep.mubr.bf16.mxu1 %v6297_v2  ;;  %v5294_v3 = vld [vmem:[#allocation8 + $0x20] ss:$16 sps:$4 sm:$0xff]   ;;  %v5295_v4 = vld [vmem:[#allocation8 + $0x28] ss:$16 sps:$4 sm:$0xff]   ;;  %v5296_v5 = vld [vmem:[#allocation8 + $0x4] ss:$16 sps:$4 sm:$0xff]  }
  0xea   : > { %721 = vmatprep.subr.bf16.mxu0 %v5290_v0  ;;  %762 = vmatprep.subr.bf16.mxu1 %v5292_v1  ;;  %v5298_v6 = vld [vmem:[#allocation8 + $0xc] ss:$16 sps:$4 sm:$0xff]   ;;  %v5300_v7 = vld [vmem:[#allocation8] ss:$16 sps:$4 sm:$0xff]   ;;  %v5301_v8 = vld [vmem:[#allocation8 + $0x8] ss:$16 sps:$4 sm:$0xff]  }
  0xeb   : > { %722 = vmatpush1.bf16.msra.mxu0 %v5294_v3  ;;  %763 = vmatpush1.bf16.msra.mxu1 %v5295_v4  ;;  %v651_v9 = vld [vmem:[%s548_s15] sm:$0xff]  ;;  %v649_v15 = vld [vmem:[%s539_s2] sm:$0xff]  ;;  %vm811_vm1 = vcmask 130048   ;;  %v900_v50 = vshrl.u32 %v899_v49, 7  ;;  %p640_p3 = scmp.lt.s32.totalorder %s6389_s14, 1  ;;  %s2561_s24 = sld [smem:[#allocation20]] }
  0xec   : > { %723 = vmatprep.subr.bf16.mxu0 %v5296_v5  ;;  %764 = vmatprep.subr.bf16.mxu1 %v5298_v6  ;;  %v5304_v10 = vld [vmem:[#allocation7 + $0x4] ss:$16 sps:$4 sm:$0xff]   ;;  %v6644_v11 = vpack.c.bf16 %v651_v9, %v651_v9  ;;  %v5302_v12 = vld [vmem:[#allocation7] ss:$16 sps:$4 sm:$0xff]   ;;  %v5305_v13 = vld [vmem:[#allocation7 + $0x8] ss:$16 sps:$4 sm:$0xff]   ;;  %v6654_v16 = vpack.c.bf16 %v649_v15, %v649_v15 }
  0xed   : > { %v5307_v14 = vld [vmem:[#allocation7 + $0xc] ss:$16 sps:$4 sm:$0xff]   ;;  %v5308_v17 = vld [vmem:[#allocation10 + $0xe0] ss:$16 sps:$4 sm:$0xff]   ;;  %v5310_v18 = vld [vmem:[#allocation10 + $0xe4] ss:$16 sps:$4 sm:$0xff]  }
  0xee   : > { %v5311_v19 = vld [vmem:[#allocation10 + $0x2e0] ss:$16 sps:$4 sm:$0xff]   ;;  %v5313_v20 = vld [vmem:[#allocation10 + $0x2e4] ss:$16 sps:$4 sm:$0xff]   ;;  %v6660_v55 = vsub.s32 0, %v900_v50  ;;  %v6662_v59 = vsub.s32 2, %v900_v50 }
  0xef   : > { %724 = vmatpush1.bf16.msra.mxu0 %v5300_v7  ;;  %765 = vmatpush1.bf16.msra.mxu1 %v5301_v8  ;;  %v5316_v21 = vld [vmem:[#allocation10 + $0xc4] ss:$16 sps:$4 sm:$0xff]   ;;  %v5314_v23 = vld [vmem:[#allocation10 + $0xc0] ss:$16 sps:$4 sm:$0xff]   ;;  %v6664_v60 = vsub.s32 1, %v900_v50  ;;  %v6669_v7 = vsub.s32 3, %v900_v50 }
  0xf0   : > { %829 = vmatprep.subr.bf16.mxu0 %v5304_v10  ;;  %870 = vmatprep.subr.bf16.mxu1 %v5307_v14  ;;  %v5319_v22 = vld [vmem:[#allocation10 + $0x2c4] ss:$16 sps:$4 sm:$0xff]   ;;  %v5317_v24 = vld [vmem:[#allocation10 + $0x2c0] ss:$16 sps:$4 sm:$0xff]   ;;  %s6982_s14 = smov (!%p640_p3, %s6389_s14), 1  ;;  %vm2564_vm2 = vcmask 7168  }
  0xf1   : > { %v5322_v25 = vld [vmem:[#allocation10 + $0xa4] ss:$16 sps:$4 sm:$0xff]   ;;  %v5320_v27 = vld [vmem:[#allocation10 + $0xa0] ss:$16 sps:$4 sm:$0xff]   ;;  %s4717_s8 = sshll.u32 %s6982_s14, 3  ;;  %s5135_s19 = sld [smem:[#allocation20 + $0x1]] }
  0xf2   : > { %4727 = vmatmul.mubr.msk.bf16.vlgmr.msra.gmra.mxu0 %vm705_vm0, %v6644_v11  ;;  %4728 = vmatmul.mubr.msk.bf16.vlgmr.msra.gmra.mxu1 %vm705_vm0, %v6644_v11  ;;  %v5325_v26 = vld [vmem:[#allocation10 + $0x2a4] ss:$16 sps:$4 sm:$0xff]   ;;  %v5323_v28 = vld [vmem:[#allocation10 + $0x2a0] ss:$16 sps:$4 sm:$0xff]   ;;  %s643_s16 = scalar_lea.vmem %s6933_s12, %s4717_s8  ;;  %s647_s28 = scalar_lea.vmem %s6934_s13, %s4717_s8 }
  0xf3   : > { %830 = vmatpush1.bf16.msra.mxu0 %v5302_v12  ;;  %871 = vmatpush1.bf16.msra.mxu1 %v5305_v13  ;;  %v5328_v29 = vld [vmem:[#allocation10 + $0x84] ss:$16 sps:$4 sm:$0xff]   ;;  %v5326_v30 = vld [vmem:[#allocation10 + $0x80] ss:$16 sps:$4 sm:$0xff]  }
  0xf4   : > { %847 = vmatprep.mubr.bf16.mxu0 %v6297_v2  ;;  %888 = vmatprep.mubr.bf16.mxu1 %v6297_v2  ;;  %v5331_v31 = vld [vmem:[#allocation10 + $0x284] ss:$16 sps:$4 sm:$0xff]   ;;  %v5329_v32 = vld [vmem:[#allocation10 + $0x280] ss:$16 sps:$4 sm:$0xff]  }
  0xf5   : > { %1804 = vmatprep.subr.bf16.mxu0 %v5310_v18  ;;  %1845 = vmatprep.subr.bf16.mxu1 %v5313_v20  ;;  %v5334_v33 = vld [vmem:[#allocation10 + $0x64] ss:$16 sps:$4 sm:$0xff]   ;;  %v5332_v35 = vld [vmem:[#allocation10 + $0x60] ss:$16 sps:$4 sm:$0xff]  }
  0xf6   : > { %v5337_v34 = vld [vmem:[#allocation10 + $0x264] ss:$16 sps:$4 sm:$0xff]   ;;  %v5335_v36 = vld [vmem:[#allocation10 + $0x260] ss:$16 sps:$4 sm:$0xff]  }
  0xf7   : > { %v5340_v37 = vld [vmem:[#allocation10 + $0x44] ss:$16 sps:$4 sm:$0xff]   ;;  %v5338_v39 = vld [vmem:[#allocation10 + $0x40] ss:$16 sps:$4 sm:$0xff]  }
  0xf8   : > { %v5343_v38 = vld [vmem:[#allocation10 + $0x244] ss:$16 sps:$4 sm:$0xff]   ;;  %v5341_v40 = vld [vmem:[#allocation10 + $0x240] ss:$16 sps:$4 sm:$0xff]  }
  0xf9   : > { %v5346_v41 = vld [vmem:[#allocation10 + $0x24] ss:$16 sps:$4 sm:$0xff]   ;;  %v5344_v43 = vld [vmem:[#allocation10 + $0x20] ss:$16 sps:$4 sm:$0xff]  }
  0xfa   : > { %4733 = vmatmul.mubr.msk.bf16.vlgmr.msra.gmra.mxu0 %vm811_vm1, %v6654_v16  ;;  %4734 = vmatmul.mubr.msk.bf16.vlgmr.msra.gmra.mxu1 %vm811_vm1, %v6654_v16  ;;  %v5349_v42 = vld [vmem:[#allocation10 + $0x224] ss:$16 sps:$4 sm:$0xff]   ;;  %v5347_v44 = vld [vmem:[#allocation10 + $0x220] ss:$16 sps:$4 sm:$0xff]  }
  0xfb   : > { %1805 = vmatpush1.bf16.msra.mxu0 %v5308_v17  ;;  %1846 = vmatpush1.bf16.msra.mxu1 %v5311_v19  ;;  %v5352_v45 = vld [vmem:[#allocation10 + $0x4] ss:$16 sps:$4 sm:$0xff]   ;;  %v5350_v47 = vld [vmem:[#allocation10] ss:$16 sps:$4 sm:$0xff]  }
  0xfc   : > { %1806 = vmatprep.subr.bf16.mxu0 %v5316_v21  ;;  %1847 = vmatprep.subr.bf16.mxu1 %v5319_v22  ;;  %v5355_v46 = vld [vmem:[#allocation10 + $0x204] ss:$16 sps:$4 sm:$0xff]   ;;  %v5353_v48 = vld [vmem:[#allocation10 + $0x200] ss:$16 sps:$4 sm:$0xff]  }
  0xfd   : > { %v897_v58 = vld [vmem:[#allocation19] ss:$8 sm:$0xf]  ;;  %v5382_v49 = vld [vmem:[#allocation10 + $0x164] ss:$16 sps:$4 sm:$0xff]  }
  0xfe   : > { %v902_v63 = vrot.slane %v897_v58, %v6660_v55  ;;  %v910_v3 = vrot.slane %v897_v58, %v6662_v59  ;;  %v906_v6 = vrot.slane %v897_v58, %v6664_v60  ;;  %v914_v19 = vrot.slane %v897_v58, %v6669_v7  ;;  %v5385_v50 = vld [vmem:[#allocation10 + $0x364] ss:$16 sps:$4 sm:$0xff]  }
  0xff   : > { %1807 = vmatpush1.bf16.msra.mxu0 %v5314_v23  ;;  %1848 = vmatpush1.bf16.msra.mxu1 %v5317_v24  ;;  %v5394_v58 = vld [vmem:[#allocation10 + $0x124] ss:$16 sps:$4 sm:$0xff]  }
 0x100   : > { %1808 = vmatprep.subr.bf16.mxu0 %v5322_v25  ;;  %1849 = vmatprep.subr.bf16.mxu1 %v5325_v26 }
 0x103   : > { %1809 = vmatpush1.bf16.msra.mxu0 %v5320_v27  ;;  %1850 = vmatpush1.bf16.msra.mxu1 %v5323_v28 }
 0x104   : > { %1810 = vmatprep.subr.bf16.mxu0 %v5328_v29  ;;  %1851 = vmatprep.subr.bf16.mxu1 %v5331_v31 }
 0x107   : > { %1811 = vmatpush1.bf16.msra.mxu0 %v5326_v30  ;;  %1852 = vmatpush1.bf16.msra.mxu1 %v5329_v32 }
 0x108   : > { %1812 = vmatprep.subr.bf16.mxu0 %v5334_v33  ;;  %1853 = vmatprep.subr.bf16.mxu1 %v5337_v34  ;;  %v5358_v33 = vld [vmem:[#allocation10 + $0x1e4] ss:$16 sps:$4 sm:$0xff]  }
 0x109   : > { %v5361_v34 = vld [vmem:[#allocation10 + $0x3e4] ss:$16 sps:$4 sm:$0xff]  }
 0x10b   : > { %1813 = vmatpush1.bf16.msra.mxu0 %v5332_v35  ;;  %1854 = vmatpush1.bf16.msra.mxu1 %v5335_v36  ;;  %v5356_v35 = vld [vmem:[#allocation10 + $0x1e0] ss:$16 sps:$4 sm:$0xff]  }
 0x10c   : > { %1814 = vmatprep.subr.bf16.mxu0 %v5340_v37  ;;  %1855 = vmatprep.subr.bf16.mxu1 %v5343_v38  ;;  %v5359_v36 = vld [vmem:[#allocation10 + $0x3e0] ss:$16 sps:$4 sm:$0xff]   ;;  %v5364_v37 = vld [vmem:[#allocation10 + $0x1c4] ss:$16 sps:$4 sm:$0xff]  }
 0x10d   : > { %v5367_v38 = vld [vmem:[#allocation10 + $0x3c4] ss:$16 sps:$4 sm:$0xff]  }
 0x10f   : > { %1815 = vmatpush1.bf16.msra.mxu0 %v5338_v39  ;;  %1856 = vmatpush1.bf16.msra.mxu1 %v5341_v40  ;;  %v5362_v39 = vld [vmem:[#allocation10 + $0x1c0] ss:$16 sps:$4 sm:$0xff]  }
 0x110   : > { %1816 = vmatprep.subr.bf16.mxu0 %v5346_v41  ;;  %1857 = vmatprep.subr.bf16.mxu1 %v5349_v42  ;;  %v5365_v40 = vld [vmem:[#allocation10 + $0x3c0] ss:$16 sps:$4 sm:$0xff]   ;;  %v5370_v41 = vld [vmem:[#allocation10 + $0x1a4] ss:$16 sps:$4 sm:$0xff]  }
 0x111   : > { %v5373_v42 = vld [vmem:[#allocation10 + $0x3a4] ss:$16 sps:$4 sm:$0xff]  }
 0x113   : > { %1817 = vmatpush1.bf16.msra.mxu0 %v5344_v43  ;;  %1858 = vmatpush1.bf16.msra.mxu1 %v5347_v44  ;;  %v5368_v43 = vld [vmem:[#allocation10 + $0x1a0] ss:$16 sps:$4 sm:$0xff]  }
 0x114   : > { %1818 = vmatprep.subr.bf16.mxu0 %v5352_v45  ;;  %1859 = vmatprep.subr.bf16.mxu1 %v5355_v46  ;;  %v5371_v44 = vld [vmem:[#allocation10 + $0x3a0] ss:$16 sps:$4 sm:$0xff]   ;;  %v5376_v45 = vld [vmem:[#allocation10 + $0x184] ss:$16 sps:$4 sm:$0xff]  }
 0x115   : > { %v5374_v46 = vld [vmem:[#allocation10 + $0x180] ss:$16 sps:$4 sm:$0xff]  }
 0x117   : > { %1819 = vmatpush1.bf16.msra.mxu0 %v5350_v47  ;;  %1860 = vmatpush1.bf16.msra.mxu1 %v5353_v48  ;;  %v5377_v47 = vld [vmem:[#allocation10 + $0x380] ss:$16 sps:$4 sm:$0xff]   ;;  %v5379_v48 = vld [vmem:[#allocation10 + $0x384] ss:$16 sps:$4 sm:$0xff]  }
 0x118   : > { %1820 = vmatprep.subr.bf16.mxu0 %v5358_v33  ;;  %1861 = vmatprep.subr.bf16.mxu1 %v5361_v34 }
 0x11b   : > { %1821 = vmatpush2.bf16.msra.mxu0 %v5356_v35  ;;  %1862 = vmatpush2.bf16.msra.mxu1 %v5359_v36 }
 0x11c   : > { %1822 = vmatprep.subr.bf16.mxu0 %v5364_v37  ;;  %1863 = vmatprep.subr.bf16.mxu1 %v5367_v38 }
 0x11f   : > { %1823 = vmatpush2.bf16.msra.mxu0 %v5362_v39  ;;  %1864 = vmatpush2.bf16.msra.mxu1 %v5365_v40 }
 0x120   : > { %1824 = vmatprep.subr.bf16.mxu0 %v5370_v41  ;;  %1865 = vmatprep.subr.bf16.mxu1 %v5373_v42 }
 0x123   : > { %1825 = vmatpush2.bf16.msra.mxu0 %v5368_v43  ;;  %1866 = vmatpush2.bf16.msra.mxu1 %v5371_v44 }
 0x124   : > { %1826 = vmatprep.subr.bf16.mxu0 %v5376_v45  ;;  %1867 = vmatprep.subr.bf16.mxu1 %v5379_v48 }
 0x127   : > { %1827 = vmatpush2.bf16.msra.mxu0 %v5374_v46  ;;  %1868 = vmatpush2.bf16.msra.mxu1 %v5377_v47 }
 0x128   : > { %1828 = vmatprep.subr.bf16.mxu0 %v5382_v49  ;;  %1869 = vmatprep.subr.bf16.mxu1 %v5385_v50  ;;  %v5404_v50 = vld [vmem:[#allocation10 + $0xe8] ss:$16 sps:$4 sm:$0xff]  }
 0x1b2   : > { %v743_v51 = vpop.f32.mrf.mxu0  ;;  %v784_v52 = vpop.f32.mrf.mxu1 }
 0x1b4   : > { %v745_v53 = vpop.f32.mrf.mxu0  ;;  %v786_v54 = vpop.f32.mrf.mxu1 }
 0x1b6   : > { %v747_v56 = vpop.f32.mrf.mxu0  ;;  %v788_v57 = vpop.f32.mrf.mxu1 }
 0x1b7   : > { %v5386_v56 = vld [vmem:[#allocation10 + $0x140] ss:$16 sps:$4 sm:$0xff]  }
 0x1b8   : > { %v748_v61 = vpop.f32.mrf.mxu0  ;;  %v789_v62 = vpop.f32.mrf.mxu1  ;;  %v5389_v57 = vld [vmem:[#allocation10 + $0x340] ss:$16 sps:$4 sm:$0xff]  }
 0x1b9   : > { %v5397_v61 = vld [vmem:[#allocation10 + $0x324] ss:$16 sps:$4 sm:$0xff]   ;;  %v5392_v62 = vld [vmem:[#allocation10 + $0x120] ss:$16 sps:$4 sm:$0xff]  }
 0x1ba   : > { %v849_v0 = vpop.f32.mrf.mxu0  ;;  %v890_v1 = vpop.f32.mrf.mxu1 }
 0x1bb   : > { %v850_v4 = vadd.f32 %v849_v0, %v743_v51  ;;  %v891_v5 = vadd.f32 %v890_v1, %v784_v52  ;;  %v5380_v51 = vld [vmem:[#allocation10 + $0x160] ss:$16 sps:$4 sm:$0xff]   ;;  %v5400_v0 = vld [vmem:[#allocation10 + $0x104] ss:$16 sps:$4 sm:$0xff]  }
 0x1bc   : > { %v851_v8 = vpop.f32.mrf.mxu0  ;;  %v892_v9 = vpop.f32.mrf.mxu1  ;;  %v5383_v52 = vld [vmem:[#allocation10 + $0x360] ss:$16 sps:$4 sm:$0xff]   ;;  %1829 = vmatpush2.bf16.msra.mxu0 %v5380_v51  ;;  %v5403_v1 = vld [vmem:[#allocation10 + $0x304] ss:$16 sps:$4 sm:$0xff]   ;;  %v5407_v51 = vld [vmem:[#allocation10 + $0x2e8] ss:$16 sps:$4 sm:$0xff]  }
 0x1bd   : > { %v6671_v10 = vadd.f32 %v902_v63, %v850_v4  ;;  %v852_v12 = vadd.f32 %v851_v8, %v745_v53  ;;  %v6673_v15 = vadd.f32 %v910_v3, %v891_v5  ;;  %v893_v18 = vadd.f32 %v892_v9, %v786_v54  ;;  %v5388_v53 = vld [vmem:[#allocation10 + $0x144] ss:$16 sps:$4 sm:$0xff]   ;;  %1870 = vmatpush2.bf16.msra.mxu1 %v5383_v52  ;;  %v5395_v63 = vld [vmem:[#allocation10 + $0x320] ss:$16 sps:$4 sm:$0xff]   ;;  %v5406_v5 = vld [vmem:[#allocation10 + $0xec] ss:$16 sps:$4 sm:$0xff]  }
 0x1be   : > { %v853_v13 = vpop.f32.mrf.mxu0  ;;  %v894_v14 = vpop.f32.mrf.mxu1  ;;  %v5391_v54 = vld [vmem:[#allocation10 + $0x344] ss:$16 sps:$4 sm:$0xff]   ;;  %1830 = vmatprep.subr.bf16.mxu0 %v5388_v53  ;;  %v5398_v3 = vld [vmem:[#allocation10 + $0x100] ss:$16 sps:$4 sm:$0xff]  }
 0x1bf   : > { %v6675_v17 = vadd.f32 %v906_v6, %v852_v12  ;;  %v933_v22 = vmul.f32 %v6671_v10, %v6671_v10  ;;  %v6684_v25 = vadd.f32 %v914_v19, %v893_v18  ;;  %v935_v27 = vmul.f32 %v6673_v15, %v6673_v15  ;;  %1871 = vmatprep.subr.bf16.mxu1 %v5391_v54  ;;  %v5401_v4 = vld [vmem:[#allocation10 + $0x300] ss:$16 sps:$4 sm:$0xff]   ;;  %v5409_v6 = vld [vmem:[#allocation10 + $0x2ec] ss:$16 sps:$4 sm:$0xff]  }
 0x1c0   : > { %v854_v20 = vpop.f32.mrf.mxu0  ;;  %v895_v21 = vpop.f32.mrf.mxu1  ;;  %1831 = vmatpush2.bf16.msra.mxu0 %v5386_v56  ;;  %v5412_v54 = vld [vmem:[#allocation10 + $0xcc] ss:$16 sps:$4 sm:$0xff]  }
 0x1c1   : > { %v934_v23 = vmul.f32 %v6675_v17, %v6675_v17  ;;  %v927_v24 = vadd.f32 %v6675_v17, %v6671_v10  ;;  %v936_v31 = vmul.f32 %v6684_v25, %v6684_v25  ;;  %1872 = vmatpush2.bf16.msra.mxu1 %v5389_v57  ;;  %1832 = vmatprep.subr.bf16.mxu0 %v5394_v58  ;;  %v924_v20 = vld [vmem:[#allocation19 + $0x1] ss:$8 sm:$0xf]  ;;  %v926_v21 = vld [vmem:[#allocation19 + $0x2] ss:$8 sm:$0xf] }
 0x1c2   : > { %1873 = vmatprep.subr.bf16.mxu1 %v5397_v61  ;;  %v996_v33 = vrot.slane %v926_v21, %v6669_v7  ;;  %v984_v34 = vrot.slane %v926_v21, %v6660_v55  ;;  %v992_v35 = vrot.slane %v926_v21, %v6662_v59  ;;  %v5415_v56 = vld [vmem:[#allocation10 + $0x2cc] ss:$16 sps:$4 sm:$0xff]   ;;  %v5410_v57 = vld [vmem:[#allocation10 + $0xc8] ss:$16 sps:$4 sm:$0xff]  }
 0x1c3   : > { %v928_v26 = vadd.f32 %v927_v24, %v6673_v15  ;;  %v937_v28 = vadd.f32 %v934_v23, %v933_v22  ;;  %v963_v22 = vrot.slane %v924_v20, %v6664_v60  ;;  %v971_v23 = vrot.slane %v924_v20, %v6669_v7  ;;  %v5413_v58 = vld [vmem:[#allocation10 + $0x2c8] ss:$16 sps:$4 sm:$0xff]   ;;  %v5418_v61 = vld [vmem:[#allocation10 + $0xac] ss:$16 sps:$4 sm:$0xff]  }
 0x1c4   : > { %1833 = vmatpush2.bf16.msra.mxu0 %v5392_v62  ;;  %v959_v24 = vrot.slane %v924_v20, %v6660_v55  ;;  %v5421_v62 = vld [vmem:[#allocation10 + $0x2ac] ss:$16 sps:$4 sm:$0xff]  }
 0x1c5   : > { %v929_v29 = vadd.f32 %v928_v26, %v6684_v25  ;;  %v938_v30 = vadd.f32 %v937_v28, %v935_v27  ;;  %1874 = vmatpush2.bf16.msra.mxu1 %v5395_v63  ;;  %1834 = vmatprep.subr.bf16.mxu0 %v5400_v0  ;;  %v967_v26 = vrot.slane %v924_v20, %v6662_v59  ;;  %v5416_v63 = vld [vmem:[#allocation10 + $0xa8] ss:$16 sps:$4 sm:$0xff]   ;;  %v5442_v20 = vld [vmem:[#allocation10 + $0x2c] ss:$16 sps:$4 sm:$0xff]  }
 0x1c6   : > { %1875 = vmatprep.subr.bf16.mxu1 %v5403_v1  ;;  %v5419_v0 = vld [vmem:[#allocation10 + $0x2a8] ss:$16 sps:$4 sm:$0xff]   ;;  %v5424_v1 = vld [vmem:[#allocation10 + $0x8c] ss:$16 sps:$4 sm:$0xff]  }
 0x1c7   : > { %930 = vadd.xlane.f32.xlu0 %v929_v29  ;;  %v939_v32 = vadd.f32 %v938_v30, %v936_v31 }
 0x1c8   : > { %1835 = vmatpush2.bf16.msra.mxu0 %v5398_v3  ;;  %v5427_v3 = vld [vmem:[#allocation10 + $0x28c] ss:$16 sps:$4 sm:$0xff]  }
 0x1c9   : > { %1876 = vmatpush2.bf16.msra.mxu1 %v5401_v4  ;;  %1886 = vmatprep.subr.bf16.mxu0 %v5406_v5  ;;  %v5422_v4 = vld [vmem:[#allocation10 + $0x88] ss:$16 sps:$4 sm:$0xff]  }
 0x1ca   : > { %1927 = vmatprep.subr.bf16.mxu1 %v5409_v6  ;;  %v5425_v5 = vld [vmem:[#allocation10 + $0x288] ss:$16 sps:$4 sm:$0xff]   ;;  %v5430_v6 = vld [vmem:[#allocation10 + $0x6c] ss:$16 sps:$4 sm:$0xff]  }
 0x1cb   : > { %940 = vadd.xlane.f32.xlu0 %v939_v32  ;;  %v988_v32 = vrot.slane %v926_v21, %v6664_v60  ;;  %v5445_v21 = vld [vmem:[#allocation10 + $0x22c] ss:$16 sps:$4 sm:$0xff]  }
 0x250   : > { %v931_v8 = vpop.xlane.xlu0 %930 }
 0x251   : > { %v932_v9 = vmul.f32 0.001953125, %v931_v8  ;;  %v5433_v8 = vld [vmem:[#allocation10 + $0x26c] ss:$16 sps:$4 sm:$0xff]  }
 0x253   : > { %v943_v13 = vmul.f32 %v932_v9, %v932_v9  ;;  %v945_v27 = vsub.f32 %v6671_v10, %v932_v9  ;;  %v947_v28 = vsub.f32 %v6673_v15, %v932_v9  ;;  %v946_v29 = vsub.f32 %v6675_v17, %v932_v9 }
 0x254   : > { %v941_v12 = vpop.xlane.xlu0 %940  ;;  %v948_v30 = vsub.f32 %v6684_v25, %v932_v9  ;;  %v5428_v9 = vld [vmem:[#allocation10 + $0x68] ss:$16 sps:$4 sm:$0xff]  }
 0x255   : > { %v942_v14 = vmul.f32 0.001953125, %v941_v12  ;;  %v5431_v12 = vld [vmem:[#allocation10 + $0x268] ss:$16 sps:$4 sm:$0xff]  }
 0x257   : > { %v944_v18 = vsub.f32 %v942_v14, %v943_v13  ;;  %v5436_v13 = vld [vmem:[#allocation10 + $0x4c] ss:$16 sps:$4 sm:$0xff]  }
 0x258   : > { %v5439_v14 = vld [vmem:[#allocation10 + $0x24c] ss:$16 sps:$4 sm:$0xff]  }
 0x259   : > { %v949_v19 = vadd.f32 1e-05, %v944_v18  ;;  %v5434_v18 = vld [vmem:[#allocation10 + $0x48] ss:$16 sps:$4 sm:$0xff]  }
 0x25b   : > { %5902 = vrsqrt.f32 %v949_v19  ;;  %v5437_v19 = vld [vmem:[#allocation10 + $0x248] ss:$16 sps:$4 sm:$0xff]  }
 0x268   : > { %v5903_v31 = vpop.eup %5902 }
 0x269   : > { %v952_v36 = vmul.f32 %v5903_v31, %v946_v29  ;;  %v954_v37 = vmul.f32 %v5903_v31, %v948_v30  ;;  %v951_v38 = vmul.f32 %v5903_v31, %v945_v27  ;;  %v953_v39 = vmul.f32 %v5903_v31, %v947_v28  ;;  %v5446_v27 = vld [vmem:[#allocation10 + $0x8] ss:$16 sps:$4 sm:$0xff]   ;;  %v5454_v29 = vld [vmem:[#allocation10 + $0x1ec] ss:$16 sps:$4 sm:$0xff]  }
 0x26a   : > { %v5449_v28 = vld [vmem:[#allocation10 + $0x208] ss:$16 sps:$4 sm:$0xff]   ;;  %v5457_v30 = vld [vmem:[#allocation10 + $0x3ec] ss:$16 sps:$4 sm:$0xff]  }
 0x26b   : > { %v977_v10 = vmul.f32 %v963_v22, %v952_v36  ;;  %v979_v40 = vmul.f32 %v971_v23, %v954_v37  ;;  %v976_v15 = vmul.f32 %v959_v24, %v951_v38  ;;  %v978_v41 = vmul.f32 %v967_v26, %v953_v39  ;;  %v5440_v22 = vld [vmem:[#allocation10 + $0x28] ss:$16 sps:$4 sm:$0xff]   ;;  %v5448_v24 = vld [vmem:[#allocation10 + $0xc] ss:$16 sps:$4 sm:$0xff]  }
 0x26c   : > { %v5443_v23 = vld [vmem:[#allocation10 + $0x228] ss:$16 sps:$4 sm:$0xff]   ;;  %v5451_v26 = vld [vmem:[#allocation10 + $0x20c] ss:$16 sps:$4 sm:$0xff]  }
 0x26d   : > { %v1002_v17 = vadd.f32 %v988_v32, %v977_v10  ;;  %v1004_v42 = vadd.f32 %v996_v33, %v979_v40  ;;  %v1001_v25 = vadd.f32 %v984_v34, %v976_v15  ;;  %v1003_v43 = vadd.f32 %v992_v35, %v978_v41  ;;  %v5452_v31 = vld [vmem:[#allocation10 + $0x1e8] ss:$16 sps:$4 sm:$0xff]   ;;  %v5460_v33 = vld [vmem:[#allocation10 + $0x1cc] ss:$16 sps:$4 sm:$0xff]  }
 0x26e   : > { %v5455_v32 = vld [vmem:[#allocation10 + $0x3e8] ss:$16 sps:$4 sm:$0xff]   ;;  %v5463_v34 = vld [vmem:[#allocation10 + $0x3cc] ss:$16 sps:$4 sm:$0xff]  }
 0x26f   : > { %v6704_v44 = vmax.f32 %v1002_v17, 0.0  ;;  %v6706_v45 = vmax.f32 %v1004_v42, 0.0  ;;  %v6708_v46 = vmax.f32 %v1001_v25, 0.0  ;;  %v6710_v47 = vmax.f32 %v1003_v43, 0.0  ;;  %v5458_v35 = vld [vmem:[#allocation10 + $0x1c8] ss:$16 sps:$4 sm:$0xff]  }
 0x270   : > { %v5461_v36 = vld [vmem:[#allocation10 + $0x3c8] ss:$16 sps:$4 sm:$0xff]   ;;  %v5466_v37 = vld [vmem:[#allocation10 + $0x1ac] ss:$16 sps:$4 sm:$0xff]  }
 0x271   : > { %v1010_v48 = vpack.c.bf16 %v6704_v44, %v6704_v44  ;;  %v1012_v49 = vpack.c.bf16 %v6706_v45, %v6706_v45  ;;  %v6718_v52 = vpack.c.bf16 %v6708_v46, %v6708_v46  ;;  %v6722_v53 = vpack.c.bf16 %v6710_v47, %v6710_v47  ;;  %v5469_v38 = vld [vmem:[#allocation10 + $0x3ac] ss:$16 sps:$4 sm:$0xff]   ;;  %v5464_v39 = vld [vmem:[#allocation10 + $0x1a8] ss:$16 sps:$4 sm:$0xff]  }
 0x272   : > { %v5467_v10 = vld [vmem:[#allocation10 + $0x3a8] ss:$16 sps:$4 sm:$0xff]   ;;  %v5472_v40 = vld [vmem:[#allocation10 + $0x18c] ss:$16 sps:$4 sm:$0xff]  }
 0x273   : > { %1836 = vmatprep.mubr.bf16.mxu0 %v1010_v48  ;;  %1877 = vmatprep.mubr.bf16.mxu1 %v1012_v49  ;;  %v5475_v15 = vld [vmem:[#allocation10 + $0x38c] ss:$16 sps:$4 sm:$0xff]   ;;  %v5470_v41 = vld [vmem:[#allocation10 + $0x188] ss:$16 sps:$4 sm:$0xff]  }
 0x274   : > { %1837 = vmatmul.mubr.bf16.vlgmr.msra.gmra.mxu0 %v6718_v52  ;;  %1878 = vmatmul.mubr.bf16.vlgmr.msra.gmra.mxu1 %v6722_v53  ;;  %v5473_v17 = vld [vmem:[#allocation10 + $0x388] ss:$16 sps:$4 sm:$0xff]   ;;  %v5478_v42 = vld [vmem:[#allocation10 + $0x16c] ss:$16 sps:$4 sm:$0xff]  }
 0x275   : > { %1887 = vmatpush1.bf16.msra.mxu0 %v5404_v50  ;;  %1928 = vmatpush1.bf16.msra.mxu1 %v5407_v51  ;;  %v5481_v25 = vld [vmem:[#allocation10 + $0x36c] ss:$16 sps:$4 sm:$0xff]   ;;  %v5476_v43 = vld [vmem:[#allocation10 + $0x168] ss:$16 sps:$4 sm:$0xff]  }
 0x276   : > { %1918 = vmatprep.mubr.bf16.mxu0 %v1010_v48  ;;  %1959 = vmatprep.mubr.bf16.mxu1 %v1012_v49  ;;  %v5479_v48 = vld [vmem:[#allocation10 + $0x368] ss:$16 sps:$4 sm:$0xff]   ;;  %v5484_v49 = vld [vmem:[#allocation10 + $0x14c] ss:$16 sps:$4 sm:$0xff]  }
 0x277   : > { %1888 = vmatprep.subr.bf16.mxu0 %v5412_v54  ;;  %1929 = vmatprep.subr.bf16.mxu1 %v5415_v56  ;;  %v5487_v50 = vld [vmem:[#allocation10 + $0x34c] ss:$16 sps:$4 sm:$0xff]   ;;  %v5482_v51 = vld [vmem:[#allocation10 + $0x148] ss:$16 sps:$4 sm:$0xff]  }
 0x278   : > { %v5485_v54 = vld [vmem:[#allocation10 + $0x348] ss:$16 sps:$4 sm:$0xff]   ;;  %v5490_v56 = vld [vmem:[#allocation10 + $0x12c] ss:$16 sps:$4 sm:$0xff]  }
 0x279   : > { %1889 = vmatpush1.bf16.msra.mxu0 %v5410_v57  ;;  %1930 = vmatpush1.bf16.msra.mxu1 %v5413_v58  ;;  %v5493_v57 = vld [vmem:[#allocation10 + $0x32c] ss:$16 sps:$4 sm:$0xff]   ;;  %v5488_v58 = vld [vmem:[#allocation10 + $0x128] ss:$16 sps:$4 sm:$0xff]  }
 0x27a   : > { %1890 = vmatprep.subr.bf16.mxu0 %v5418_v61  ;;  %1931 = vmatprep.subr.bf16.mxu1 %v5421_v62  ;;  %v5491_v61 = vld [vmem:[#allocation10 + $0x328] ss:$16 sps:$4 sm:$0xff]   ;;  %v5496_v62 = vld [vmem:[#allocation10 + $0x10c] ss:$16 sps:$4 sm:$0xff]  }
 0x27d   : > { %1891 = vmatpush1.bf16.msra.mxu0 %v5416_v63  ;;  %1932 = vmatpush1.bf16.msra.mxu1 %v5419_v0  ;;  %v5499_v63 = vld [vmem:[#allocation10 + $0x30c] ss:$16 sps:$4 sm:$0xff]   ;;  %v5494_v0 = vld [vmem:[#allocation10 + $0x108] ss:$16 sps:$4 sm:$0xff]  }
 0x27e   : > { %1892 = vmatprep.subr.bf16.mxu0 %v5424_v1  ;;  %1933 = vmatprep.subr.bf16.mxu1 %v5427_v3  ;;  %v5497_v1 = vld [vmem:[#allocation10 + $0x308] ss:$16 sps:$4 sm:$0xff]  }
 0x27f   : > { %v5500_v3 = vld [vmem:[#allocation11 + $0x70] ss:$8 sps:$4 sm:$0xff]  }
 0x281   : > { %1893 = vmatpush1.bf16.msra.mxu0 %v5422_v4  ;;  %1934 = vmatpush1.bf16.msra.mxu1 %v5425_v5  ;;  %v5502_v4 = vld [vmem:[#allocation11 + $0x74] ss:$8 sps:$4 sm:$0xff]   ;;  %v5503_v5 = vld [vmem:[#allocation11 + $0x170] ss:$8 sps:$4 sm:$0xff]  }
 0x282   : > { %1894 = vmatprep.subr.bf16.mxu0 %v5430_v6  ;;  %1935 = vmatprep.subr.bf16.mxu1 %v5433_v8  ;;  %v5505_v6 = vld [vmem:[#allocation11 + $0x174] ss:$8 sps:$4 sm:$0xff]   ;;  %v5508_v8 = vld [vmem:[#allocation11 + $0x64] ss:$8 sps:$4 sm:$0xff]  }
 0x285   : > { %1895 = vmatpush1.bf16.msra.mxu0 %v5428_v9  ;;  %1936 = vmatpush1.bf16.msra.mxu1 %v5431_v12  ;;  %v5511_v9 = vld [vmem:[#allocation11 + $0x164] ss:$8 sps:$4 sm:$0xff]   ;;  %v5506_v12 = vld [vmem:[#allocation11 + $0x60] ss:$8 sps:$4 sm:$0xff]  }
 0x286   : > { %1896 = vmatprep.subr.bf16.mxu0 %v5436_v13  ;;  %1937 = vmatprep.subr.bf16.mxu1 %v5439_v14  ;;  %v5509_v13 = vld [vmem:[#allocation11 + $0x160] ss:$8 sps:$4 sm:$0xff]   ;;  %v5514_v14 = vld [vmem:[#allocation11 + $0x54] ss:$8 sps:$4 sm:$0xff]  }
 0x289   : > { %1897 = vmatpush1.bf16.msra.mxu0 %v5434_v18  ;;  %1938 = vmatpush1.bf16.msra.mxu1 %v5437_v19  ;;  %v5517_v18 = vld [vmem:[#allocation11 + $0x154] ss:$8 sps:$4 sm:$0xff]   ;;  %v5520_v19 = vld [vmem:[#allocation11 + $0x44] ss:$8 sps:$4 sm:$0xff]  }
 0x28a   : > { %1898 = vmatprep.subr.bf16.mxu0 %v5442_v20  ;;  %1939 = vmatprep.subr.bf16.mxu1 %v5445_v21  ;;  %v5523_v20 = vld [vmem:[#allocation11 + $0x144] ss:$8 sps:$4 sm:$0xff]   ;;  %v5518_v21 = vld [vmem:[#allocation11 + $0x40] ss:$8 sps:$4 sm:$0xff]  }
 0x28d   : > { %1899 = vmatpush1.bf16.msra.mxu0 %v5440_v22  ;;  %1940 = vmatpush1.bf16.msra.mxu1 %v5443_v23  ;;  %v5521_v22 = vld [vmem:[#allocation11 + $0x140] ss:$8 sps:$4 sm:$0xff]   ;;  %v5526_v23 = vld [vmem:[#allocation11 + $0x34] ss:$8 sps:$4 sm:$0xff]  }
 0x28e   : > { %1900 = vmatprep.subr.bf16.mxu0 %v5448_v24  ;;  %1941 = vmatprep.subr.bf16.mxu1 %v5451_v26  ;;  %v5529_v24 = vld [vmem:[#allocation11 + $0x134] ss:$8 sps:$4 sm:$0xff]   ;;  %v5524_v26 = vld [vmem:[#allocation11 + $0x30] ss:$8 sps:$4 sm:$0xff]  }
 0x291   : > { %1901 = vmatpush1.bf16.msra.mxu0 %v5446_v27  ;;  %1942 = vmatpush1.bf16.msra.mxu1 %v5449_v28  ;;  %v5527_v27 = vld [vmem:[#allocation11 + $0x130] ss:$8 sps:$4 sm:$0xff]   ;;  %v5532_v28 = vld [vmem:[#allocation11 + $0x24] ss:$8 sps:$4 sm:$0xff]  }
 0x292   : > { %1902 = vmatprep.subr.bf16.mxu0 %v5454_v29  ;;  %1943 = vmatprep.subr.bf16.mxu1 %v5457_v30  ;;  %v5535_v29 = vld [vmem:[#allocation11 + $0x124] ss:$8 sps:$4 sm:$0xff]   ;;  %v5530_v30 = vld [vmem:[#allocation11 + $0x20] ss:$8 sps:$4 sm:$0xff]  }
 0x295   : > { %1903 = vmatpush2.bf16.msra.mxu0 %v5452_v31  ;;  %1944 = vmatpush2.bf16.msra.mxu1 %v5455_v32  ;;  %v5533_v31 = vld [vmem:[#allocation11 + $0x120] ss:$8 sps:$4 sm:$0xff]   ;;  %v5538_v32 = vld [vmem:[#allocation11 + $0x14] ss:$8 sps:$4 sm:$0xff]  }
 0x296   : > { %1904 = vmatprep.subr.bf16.mxu0 %v5460_v33  ;;  %1945 = vmatprep.subr.bf16.mxu1 %v5463_v34  ;;  %v5541_v33 = vld [vmem:[#allocation11 + $0x114] ss:$8 sps:$4 sm:$0xff]   ;;  %v5536_v34 = vld [vmem:[#allocation11 + $0x10] ss:$8 sps:$4 sm:$0xff]  }
 0x299   : > { %1905 = vmatpush2.bf16.msra.mxu0 %v5458_v35  ;;  %1946 = vmatpush2.bf16.msra.mxu1 %v5461_v36  ;;  %v5539_v35 = vld [vmem:[#allocation11 + $0x110] ss:$8 sps:$4 sm:$0xff]  }
 0x29a   : > { %1906 = vmatprep.subr.bf16.mxu0 %v5466_v37  ;;  %1947 = vmatprep.subr.bf16.mxu1 %v5469_v38 }
 0x29d   : > { %1907 = vmatpush2.bf16.msra.mxu0 %v5464_v39  ;;  %1948 = vmatpush2.bf16.msra.mxu1 %v5467_v10 }
 0x29e   : > { %1908 = vmatprep.subr.bf16.mxu0 %v5472_v40  ;;  %1949 = vmatprep.subr.bf16.mxu1 %v5475_v15 }
 0x2a1   : > { %1909 = vmatpush2.bf16.msra.mxu0 %v5470_v41  ;;  %1950 = vmatpush2.bf16.msra.mxu1 %v5473_v17  ;;  %v1142_v17 = vld [vmem:[#allocation19 + $0x3] ss:$8 sm:$0xf] }
 0x2a2   : > { %1910 = vmatprep.subr.bf16.mxu0 %v5478_v42  ;;  %1951 = vmatprep.subr.bf16.mxu1 %v5481_v25  ;;  %v1151_v42 = vrot.slane %v1142_v17, %v6664_v60  ;;  %v1147_v25 = vrot.slane %v1142_v17, %v6660_v55 }
 0x2a5   : > { %1911 = vmatpush2.bf16.msra.mxu0 %v5476_v43  ;;  %1952 = vmatpush2.bf16.msra.mxu1 %v5479_v48 }
 0x2a6   : > { %1912 = vmatprep.subr.bf16.mxu0 %v5484_v49  ;;  %1953 = vmatprep.subr.bf16.mxu1 %v5487_v50  ;;  %v1155_v50 = vrot.slane %v1142_v17, %v6662_v59 }
 0x2a9   : > { %1913 = vmatpush2.bf16.msra.mxu0 %v5482_v51  ;;  %1954 = vmatpush2.bf16.msra.mxu1 %v5485_v54  ;;  %v1159_v54 = vrot.slane %v1142_v17, %v6669_v7  ;;  %v5572_v17 = vld [vmem:[#allocation11 + $0xb0] ss:$8 sps:$4 sm:$0xff]  }
 0x2aa   : > { %1914 = vmatprep.subr.bf16.mxu0 %v5490_v56  ;;  %1955 = vmatprep.subr.bf16.mxu1 %v5493_v57 }
 0x2ad   : > { %1915 = vmatpush2.bf16.msra.mxu0 %v5488_v58  ;;  %1956 = vmatpush2.bf16.msra.mxu1 %v5491_v61 }
 0x2ae   : > { %1916 = vmatprep.subr.bf16.mxu0 %v5496_v62  ;;  %1957 = vmatprep.subr.bf16.mxu1 %v5499_v63 }
 0x2b1   : > { %1917 = vmatpush2.bf16.msra.mxu0 %v5494_v0  ;;  %1958 = vmatpush2.bf16.msra.mxu1 %v5497_v1 }
 0x2b2   : > { %2459 = vmatprep.subr.bf16.mxu0 %v5502_v4  ;;  %2500 = vmatprep.subr.bf16.mxu1 %v5505_v6 }
 0x2b4   : > { %1919 = vmatmul.mubr.bf16.vlgmr.msra.gmra.mxu0 %v6718_v52  ;;  %1960 = vmatmul.mubr.bf16.vlgmr.msra.gmra.mxu1 %v6722_v53  ;;  %v5512_v52 = vld [vmem:[#allocation11 + $0x50] ss:$8 sps:$4 sm:$0xff]  }
 0x2b5   : > { %2460 = vmatpush1.bf16.msra.mxu0 %v5500_v3  ;;  %2501 = vmatpush1.bf16.msra.mxu1 %v5503_v5  ;;  %v5515_v53 = vld [vmem:[#allocation11 + $0x150] ss:$8 sps:$4 sm:$0xff]  }
 0x2b6   : > { %2461 = vmatprep.subr.bf16.mxu0 %v5508_v8  ;;  %2502 = vmatprep.subr.bf16.mxu1 %v5511_v9 }
 0x2b9   : > { %2462 = vmatpush1.bf16.msra.mxu0 %v5506_v12  ;;  %2503 = vmatpush1.bf16.msra.mxu1 %v5509_v13 }
 0x2ba   : > { %2463 = vmatprep.subr.bf16.mxu0 %v5514_v14  ;;  %2504 = vmatprep.subr.bf16.mxu1 %v5517_v18 }
 0x2bd   : > { %2464 = vmatpush1.bf16.msra.mxu0 %v5512_v52  ;;  %2505 = vmatpush1.bf16.msra.mxu1 %v5515_v53 }
 0x2be   : > { %2465 = vmatprep.subr.bf16.mxu0 %v5520_v19  ;;  %2506 = vmatprep.subr.bf16.mxu1 %v5523_v20 }
 0x2c1   : > { %2466 = vmatpush1.bf16.msra.mxu0 %v5518_v21  ;;  %2507 = vmatpush1.bf16.msra.mxu1 %v5521_v22  ;;  %v5544_v21 = vld [vmem:[#allocation11 + $0x4] ss:$8 sps:$4 sm:$0xff]  }
 0x2c2   : > { %2467 = vmatprep.subr.bf16.mxu0 %v5526_v23  ;;  %2508 = vmatprep.subr.bf16.mxu1 %v5529_v24  ;;  %v5547_v22 = vld [vmem:[#allocation11 + $0x104] ss:$8 sps:$4 sm:$0xff]   ;;  %v5542_v23 = vld [vmem:[#allocation11] ss:$8 sps:$4 sm:$0xff]  }
 0x2c3   : > { %v5545_v24 = vld [vmem:[#allocation11 + $0x100] ss:$8 sps:$4 sm:$0xff]  }
 0x2c5   : > { %2468 = vmatpush1.bf16.msra.mxu0 %v5524_v26  ;;  %2509 = vmatpush1.bf16.msra.mxu1 %v5527_v27  ;;  %v5550_v26 = vld [vmem:[#allocation11 + $0xf4] ss:$8 sps:$4 sm:$0xff]  }
 0x2c6   : > { %2469 = vmatprep.subr.bf16.mxu0 %v5532_v28  ;;  %2510 = vmatprep.subr.bf16.mxu1 %v5535_v29  ;;  %v5553_v27 = vld [vmem:[#allocation11 + $0x1f4] ss:$8 sps:$4 sm:$0xff]   ;;  %v5548_v28 = vld [vmem:[#allocation11 + $0xf0] ss:$8 sps:$4 sm:$0xff]  }
 0x2c7   : > { %v5551_v29 = vld [vmem:[#allocation11 + $0x1f0] ss:$8 sps:$4 sm:$0xff]  }
 0x2c9   : > { %2470 = vmatpush1.bf16.msra.mxu0 %v5530_v30  ;;  %2511 = vmatpush1.bf16.msra.mxu1 %v5533_v31  ;;  %v5556_v30 = vld [vmem:[#allocation11 + $0xe4] ss:$8 sps:$4 sm:$0xff]  }
 0x2ca   : > { %2471 = vmatprep.subr.bf16.mxu0 %v5538_v32  ;;  %2512 = vmatprep.subr.bf16.mxu1 %v5541_v33  ;;  %v5559_v31 = vld [vmem:[#allocation11 + $0x1e4] ss:$8 sps:$4 sm:$0xff]   ;;  %v5554_v32 = vld [vmem:[#allocation11 + $0xe0] ss:$8 sps:$4 sm:$0xff]  }
 0x2cb   : > { %v5557_v33 = vld [vmem:[#allocation11 + $0x1e0] ss:$8 sps:$4 sm:$0xff]  }
 0x2cd   : > { %2472 = vmatpush1.bf16.msra.mxu0 %v5536_v34  ;;  %2513 = vmatpush1.bf16.msra.mxu1 %v5539_v35  ;;  %v5560_v34 = vld [vmem:[#allocation11 + $0xd0] ss:$8 sps:$4 sm:$0xff]   ;;  %v5562_v35 = vld [vmem:[#allocation11 + $0xd4] ss:$8 sps:$4 sm:$0xff]  }
 0x2ce   : > { %2473 = vmatprep.subr.bf16.mxu0 %v5544_v21  ;;  %2514 = vmatprep.subr.bf16.mxu1 %v5547_v22 }
 0x2d1   : > { %2474 = vmatpush1.bf16.msra.mxu0 %v5542_v23  ;;  %2515 = vmatpush1.bf16.msra.mxu1 %v5545_v24 }
 0x2d2   : > { %2475 = vmatprep.subr.bf16.mxu0 %v5550_v26  ;;  %2516 = vmatprep.subr.bf16.mxu1 %v5553_v27 }
 0x2d5   : > { %2476 = vmatpush2.bf16.msra.mxu0 %v5548_v28  ;;  %2517 = vmatpush2.bf16.msra.mxu1 %v5551_v29 }
 0x2d6   : > { %2477 = vmatprep.subr.bf16.mxu0 %v5556_v30  ;;  %2518 = vmatprep.subr.bf16.mxu1 %v5559_v31 }
 0x2d9   : > { %2478 = vmatpush2.bf16.msra.mxu0 %v5554_v32  ;;  %2519 = vmatpush2.bf16.msra.mxu1 %v5557_v33 }
 0x2da   : > { %2479 = vmatprep.subr.bf16.mxu0 %v5562_v35 }
 0x2dd   : > { %2480 = vmatpush2.bf16.msra.mxu0 %v5560_v34 }
 0x334   : > { %v1838_v36 = vpop.f32.mrf.mxu0  ;;  %v1879_v37 = vpop.f32.mrf.mxu1 }
 0x335   : > { %v1839_v48 = vadd.f32 %v1838_v36, %v1147_v25  ;;  %v5563_v36 = vld [vmem:[#allocation11 + $0x1d0] ss:$8 sps:$4 sm:$0xff]   ;;  %v5580_v25 = vld [vmem:[#allocation11 + $0xa4] ss:$8 sps:$4 sm:$0xff]  }
 0x336   : > { %v1840_v38 = vpop.f32.mrf.mxu0  ;;  %v1881_v39 = vpop.f32.mrf.mxu1 }
 0x337   : > { %v1841_v43 = vadd.f32 %v1840_v38, %v1151_v42  ;;  %v6733_v51 = vadd.f32 %v1879_v37, %v1839_v48  ;;  %v5565_v37 = vld [vmem:[#allocation11 + $0x1d4] ss:$8 sps:$4 sm:$0xff]   ;;  %v5568_v38 = vld [vmem:[#allocation11 + $0xc4] ss:$8 sps:$4 sm:$0xff]   ;;  %v5575_v42 = vld [vmem:[#allocation11 + $0x1b0] ss:$8 sps:$4 sm:$0xff]  }
 0x338   : > { %v1842_v10 = vpop.f32.mrf.mxu0  ;;  %v1883_v40 = vpop.f32.mrf.mxu1  ;;  %2520 = vmatprep.subr.bf16.mxu1 %v5565_v37  ;;  %2481 = vmatprep.subr.bf16.mxu0 %v5568_v38  ;;  %v5578_v48 = vld [vmem:[#allocation11 + $0xa0] ss:$8 sps:$4 sm:$0xff]  }
 0x339   : > { %v6730_v49 = vadd.f32 %v1881_v39, %v1841_v43  ;;  %v1978_v0 = vmul.f32 %v6733_v51, %v6733_v51  ;;  %v5571_v39 = vld [vmem:[#allocation11 + $0x1c4] ss:$8 sps:$4 sm:$0xff]   ;;  %2521 = vmatpush2.bf16.msra.mxu1 %v5563_v36  ;;  %v5566_v10 = vld [vmem:[#allocation11 + $0xc0] ss:$8 sps:$4 sm:$0xff]  }
 0x33a   : > { %v1843_v15 = vpop.f32.mrf.mxu0  ;;  %v1884_v41 = vpop.f32.mrf.mxu1  ;;  %v5569_v40 = vld [vmem:[#allocation11 + $0x1c0] ss:$8 sps:$4 sm:$0xff]   ;;  %2522 = vmatprep.subr.bf16.mxu1 %v5571_v39  ;;  %2482 = vmatpush2.bf16.msra.mxu0 %v5566_v10  ;;  %v5583_v43 = vld [vmem:[#allocation11 + $0x1a4] ss:$8 sps:$4 sm:$0xff]  }
 0x33b   : > { %v1979_v58 = vmul.f32 %v6730_v49, %v6730_v49  ;;  %v1972_v4 = vadd.f32 %v6730_v49, %v6733_v51  ;;  %v5574_v15 = vld [vmem:[#allocation11 + $0xb4] ss:$8 sps:$4 sm:$0xff]  }
 0x33c   : > { %v5577_v41 = vld [vmem:[#allocation11 + $0x1b4] ss:$8 sps:$4 sm:$0xff]   ;;  %2483 = vmatprep.subr.bf16.mxu0 %v5574_v15 }
 0x33d   : > { %v1982_v13 = vadd.f32 %v1979_v58, %v1978_v0  ;;  %2523 = vmatpush2.bf16.msra.mxu1 %v5569_v40  ;;  %v5587_v58 = vld [vmem:[#allocation11 + $0x190] ss:$8 sps:$4 sm:$0xff]   ;;  %v5593_v0 = vld [vmem:[#allocation11 + $0x180] ss:$8 sps:$4 sm:$0xff]  }
 0x33e   : > { %2524 = vmatprep.subr.bf16.mxu1 %v5577_v41  ;;  %2484 = vmatpush2.bf16.msra.mxu0 %v5572_v17 }
 0x33f   : > { %2485 = vmatprep.subr.bf16.mxu0 %v5580_v25 }
 0x341   : > { %2525 = vmatpush2.bf16.msra.mxu1 %v5575_v42 }
 0x342   : > { %2526 = vmatprep.subr.bf16.mxu1 %v5583_v43  ;;  %2486 = vmatpush2.bf16.msra.mxu0 %v5578_v48 }
 0x374   : > { %v1920_v56 = vpop.f32.mrf.mxu0  ;;  %v1961_v57 = vpop.f32.mrf.mxu1 }
 0x375   : > { %v1921_v61 = vadd.f32 %v1920_v56, %v1155_v50  ;;  %v5581_v50 = vld [vmem:[#allocation11 + $0x1a0] ss:$8 sps:$4 sm:$0xff]   ;;  %v5589_v56 = vld [vmem:[#allocation11 + $0x194] ss:$8 sps:$4 sm:$0xff]  }
 0x376   : > { %v1922_v62 = vpop.f32.mrf.mxu0  ;;  %v1963_v63 = vpop.f32.mrf.mxu1  ;;  %2527 = vmatpush2.bf16.msra.mxu1 %v5581_v50 }
 0x377   : > { %v6740_v1 = vadd.f32 %v1961_v57, %v1921_v61  ;;  %v1923_v3 = vadd.f32 %v1922_v62, %v1159_v54  ;;  %v5586_v54 = vld [vmem:[#allocation11 + $0x94] ss:$8 sps:$4 sm:$0xff]   ;;  %v5584_v57 = vld [vmem:[#allocation11 + $0x90] ss:$8 sps:$4 sm:$0xff]   ;;  %2528 = vmatprep.subr.bf16.mxu1 %v5589_v56  ;;  %v5592_v61 = vld [vmem:[#allocation11 + $0x84] ss:$8 sps:$4 sm:$0xff]  }
 0x378   : > { %v1924_v5 = vpop.f32.mrf.mxu0  ;;  %v1965_v6 = vpop.f32.mrf.mxu1  ;;  %2487 = vmatprep.subr.bf16.mxu0 %v5586_v54  ;;  %v5595_v62 = vld [vmem:[#allocation11 + $0x184] ss:$8 sps:$4 sm:$0xff]  }
 0x379   : > { %v1980_v8 = vmul.f32 %v6740_v1, %v6740_v1  ;;  %v6746_v9 = vadd.f32 %v1963_v63, %v1923_v3  ;;  %v1973_v12 = vadd.f32 %v1972_v4, %v6740_v1  ;;  %2488 = vmatpush2.bf16.msra.mxu0 %v5584_v57  ;;  %v5590_v63 = vld [vmem:[#allocation11 + $0x80] ss:$8 sps:$4 sm:$0xff]   ;;  %v5598_v3 = vld [vmem:[#allocation14 + $0x24] ss:$16 sps:$4 sm:$0xff]   ;;  %v5601_v4 = vld [vmem:[#allocation14 + $0x2c] ss:$16 sps:$4 sm:$0xff]  }
 0x37a   : > { %v1925_v14 = vpop.f32.mrf.mxu0  ;;  %v1966_v18 = vpop.f32.mrf.mxu1  ;;  %2529 = vmatpush2.bf16.msra.mxu1 %v5587_v58  ;;  %2489 = vmatprep.subr.bf16.mxu0 %v5592_v61  ;;  %v5596_v58 = vld [vmem:[#allocation14 + $0x20] ss:$16 sps:$4 sm:$0xff]   ;;  %v5599_v61 = vld [vmem:[#allocation14 + $0x28] ss:$16 sps:$4 sm:$0xff]  }
 0x37b   : > { %v1974_v52 = vadd.f32 %v1973_v12, %v6746_v9  ;;  %v1981_v53 = vmul.f32 %v6746_v9, %v6746_v9  ;;  %v1983_v19 = vadd.f32 %v1982_v13, %v1980_v8  ;;  %2530 = vmatprep.subr.bf16.mxu1 %v5595_v62  ;;  %v5604_v62 = vld [vmem:[#allocation14 + $0x4] ss:$16 sps:$4 sm:$0xff]  }
 0x37d   : > { %1975 = vadd.xlane.f32.xlu1 %v1974_v52  ;;  %v1984_v20 = vadd.f32 %v1983_v19, %v1981_v53  ;;  %2490 = vmatpush2.bf16.msra.mxu0 %v5590_v63  ;;  %v1969_v52 = vld [vmem:[#allocation19 + $0x4] ss:$8 sm:$0xf]  ;;  %v1971_v53 = vld [vmem:[#allocation19 + $0x5] ss:$8 sm:$0xf] }
 0x37e   : > { %2531 = vmatpush2.bf16.msra.mxu1 %v5593_v0  ;;  %2630 = vmatprep.subr.bf16.mxu0 %v5598_v3  ;;  %v2008_v19 = vrot.slane %v1969_v52, %v6664_v60  ;;  %v2004_v21 = vrot.slane %v1969_v52, %v6660_v55  ;;  %v2012_v22 = vrot.slane %v1969_v52, %v6662_v59  ;;  %v5607_v63 = vld [vmem:[#allocation14 + $0xc] ss:$16 sps:$4 sm:$0xff]   ;;  %v5608_v0 = vld [vmem:[#allocation13] ss:$16 sps:$4 sm:$0xff]   ;;  %v5611_v3 = vld [vmem:[#allocation13 + $0x8] ss:$16 sps:$4 sm:$0xff]  }
 0x37f   : > { %2671 = vmatprep.subr.bf16.mxu1 %v5601_v4  ;;  %v2033_v29 = vrot.slane %v1971_v53, %v6664_v60  ;;  %v2041_v30 = vrot.slane %v1971_v53, %v6669_v7  ;;  %v2029_v31 = vrot.slane %v1971_v53, %v6660_v55  ;;  %v2037_v32 = vrot.slane %v1971_v53, %v6662_v59  ;;  %v5614_v4 = vld [vmem:[#allocation16 + $0xe0] ss:$16 sps:$4 sm:$0xff]   ;;  %v5634_v53 = vld [vmem:[#allocation16 + $0x84] ss:$16 sps:$4 sm:$0xff]  }
 0x381   : > { %1985 = vadd.xlane.f32.xlu1 %v1984_v20  ;;  %v2016_v20 = vrot.slane %v1969_v52, %v6669_v7  ;;  %v5626_v52 = vld [vmem:[#allocation16 + $0xa0] ss:$16 sps:$4 sm:$0xff]  }
 0x406   : > { %v1976_v5 = vpop.xlane.xlu1 %1975 }
 0x407   : > { %v1977_v6 = vmul.f32 0.001953125, %v1976_v5  ;;  %v5616_v5 = vld [vmem:[#allocation16 + $0xe4] ss:$16 sps:$4 sm:$0xff]  }
 0x409   : > { %v1988_v12 = vmul.f32 %v1977_v6, %v1977_v6  ;;  %v1990_v23 = vsub.f32 %v6733_v51, %v1977_v6  ;;  %v1992_v24 = vsub.f32 %v6740_v1, %v1977_v6  ;;  %v1991_v26 = vsub.f32 %v6730_v49, %v1977_v6 }
 0x40a   : > { %v1986_v8 = vpop.xlane.xlu1 %1985  ;;  %v1993_v27 = vsub.f32 %v6746_v9, %v1977_v6  ;;  %v5617_v6 = vld [vmem:[#allocation16 + $0x2e0] ss:$16 sps:$4 sm:$0xff]  }
 0x40b   : > { %v1987_v13 = vmul.f32 0.001953125, %v1986_v8  ;;  %v5619_v8 = vld [vmem:[#allocation16 + $0x2e4] ss:$16 sps:$4 sm:$0xff]  }
 0x40d   : > { %v1989_v14 = vsub.f32 %v1987_v13, %v1988_v12  ;;  %v5622_v12 = vld [vmem:[#allocation16 + $0xc4] ss:$16 sps:$4 sm:$0xff]  }
 0x40e   : > { %v5625_v13 = vld [vmem:[#allocation16 + $0x2c4] ss:$16 sps:$4 sm:$0xff]  }
 0x40f   : > { %v1994_v18 = vadd.f32 1e-05, %v1989_v14  ;;  %v5623_v14 = vld [vmem:[#allocation16 + $0x2c0] ss:$16 sps:$4 sm:$0xff]  }
 0x411   : > { %5904 = vrsqrt.f32 %v1994_v18  ;;  %v5631_v18 = vld [vmem:[#allocation16 + $0x2a4] ss:$16 sps:$4 sm:$0xff]  }
 0x41e   : > { %v5905_v28 = vpop.eup %5904 }
 0x41f   : > { %v1997_v33 = vmul.f32 %v5905_v28, %v1991_v26  ;;  %v1999_v34 = vmul.f32 %v5905_v28, %v1993_v27  ;;  %v1996_v35 = vmul.f32 %v5905_v28, %v1990_v23  ;;  %v1998_v36 = vmul.f32 %v5905_v28, %v1992_v24  ;;  %v5643_v23 = vld [vmem:[#allocation16 + $0x264] ss:$16 sps:$4 sm:$0xff]   ;;  %v5638_v24 = vld [vmem:[#allocation16 + $0x60] ss:$16 sps:$4 sm:$0xff]  }
 0x420   : > { %v5641_v26 = vld [vmem:[#allocation16 + $0x260] ss:$16 sps:$4 sm:$0xff]   ;;  %v5646_v27 = vld [vmem:[#allocation16 + $0x44] ss:$16 sps:$4 sm:$0xff]  }
 0x421   : > { %v2022_v51 = vmul.f32 %v2008_v19, %v1997_v33  ;;  %v2024_v37 = vmul.f32 %v2016_v20, %v1999_v34  ;;  %v2021_v1 = vmul.f32 %v2004_v21, %v1996_v35  ;;  %v2023_v38 = vmul.f32 %v2012_v22, %v1998_v36  ;;  %v5637_v19 = vld [vmem:[#allocation16 + $0x284] ss:$16 sps:$4 sm:$0xff]   ;;  %v5632_v20 = vld [vmem:[#allocation16 + $0x80] ss:$16 sps:$4 sm:$0xff]  }
 0x422   : > { %v5635_v21 = vld [vmem:[#allocation16 + $0x280] ss:$16 sps:$4 sm:$0xff]   ;;  %v5640_v22 = vld [vmem:[#allocation16 + $0x64] ss:$16 sps:$4 sm:$0xff]  }
 0x423   : > { %v2047_v49 = vadd.f32 %v2033_v29, %v2022_v51  ;;  %v2049_v39 = vadd.f32 %v2041_v30, %v2024_v37  ;;  %v2046_v9 = vadd.f32 %v2029_v31, %v2021_v1  ;;  %v2048_v10 = vadd.f32 %v2037_v32, %v2023_v38  ;;  %v5649_v28 = vld [vmem:[#allocation16 + $0x244] ss:$16 sps:$4 sm:$0xff]   ;;  %v5644_v29 = vld [vmem:[#allocation16 + $0x40] ss:$16 sps:$4 sm:$0xff]  }
 0x424   : > { %v5647_v30 = vld [vmem:[#allocation16 + $0x240] ss:$16 sps:$4 sm:$0xff]   ;;  %v5652_v31 = vld [vmem:[#allocation16 + $0x24] ss:$16 sps:$4 sm:$0xff]  }
 0x425   : > { %v2051_v40 = vmax.f32 %v2047_v49, 0.0  ;;  %v2053_v15 = vmax.f32 %v2049_v39, 0.0  ;;  %v2050_v41 = vmax.f32 %v2046_v9, 0.0  ;;  %v2052_v17 = vmax.f32 %v2048_v10, 0.0  ;;  %v5655_v32 = vld [vmem:[#allocation16 + $0x224] ss:$16 sps:$4 sm:$0xff]  }
 0x426   : > { %v5650_v33 = vld [vmem:[#allocation16 + $0x20] ss:$16 sps:$4 sm:$0xff]   ;;  %v5658_v35 = vld [vmem:[#allocation16 + $0x4] ss:$16 sps:$4 sm:$0xff]  }
 0x427   : > { %v2055_v42 = vadd.f32 %v2051_v40, %v6704_v44  ;;  %v2057_v25 = vadd.f32 %v2053_v15, %v6706_v45  ;;  %v2054_v43 = vadd.f32 %v2050_v41, %v6708_v46  ;;  %v2056_v48 = vadd.f32 %v2052_v17, %v6710_v47  ;;  %v5602_v44 = vld [vmem:[#allocation14] ss:$16 sps:$4 sm:$0xff]   ;;  %v5605_v45 = vld [vmem:[#allocation14 + $0x8] ss:$16 sps:$4 sm:$0xff]   ;;  %v5610_v46 = vld [vmem:[#allocation13 + $0x4] ss:$16 sps:$4 sm:$0xff]  }
 0x428   : > { %v5613_v47 = vld [vmem:[#allocation13 + $0xc] ss:$16 sps:$4 sm:$0xff]   ;;  %v5653_v34 = vld [vmem:[#allocation16 + $0x220] ss:$16 sps:$4 sm:$0xff]   ;;  %v5661_v36 = vld [vmem:[#allocation16 + $0x204] ss:$16 sps:$4 sm:$0xff]  }
 0x429   : > { %v2059_v50 = vpack.c.bf16 %v2055_v42, %v2055_v42  ;;  %v2061_v54 = vpack.c.bf16 %v2057_v25, %v2057_v25  ;;  %v2058_v56 = vpack.c.bf16 %v2054_v43, %v2054_v43  ;;  %v2060_v57 = vpack.c.bf16 %v2056_v48, %v2056_v48  ;;  %v5656_v51 = vld [vmem:[#allocation16] ss:$16 sps:$4 sm:$0xff]   ;;  %v2127_v1 = vld [vmem:[#allocation19 + $0x24] ss:$8 sm:$0x3] }
 0x42a   : > { %v5659_v37 = vld [vmem:[#allocation16 + $0x200] ss:$16 sps:$4 sm:$0xff]   ;;  %v2132_v38 = vrot.slane %v2127_v1, %v6660_v55  ;;  %v2136_v49 = vrot.slane %v2127_v1, %v6664_v60  ;;  %v2544_v40 = vld [vmem:[#allocation19 + $0x26] ss:$8 sm:$0x3] }
 0x42b   : > { %2491 = vmatprep.mubr.bf16.mxu0 %v2059_v50  ;;  %2532 = vmatprep.mubr.bf16.mxu1 %v2061_v54  ;;  %v2549_v50 = vrot.slane %v2544_v40, %v6660_v55 }
 0x42c   : > { %2492 = vmatmul.mubr.bf16.vlgmr.msra.gmra.mxu0 %v2058_v56  ;;  %2533 = vmatmul.mubr.bf16.vlgmr.msra.gmra.mxu1 %v2060_v57  ;;  %v2553_v56 = vrot.slane %v2544_v40, %v6664_v60  ;;  %v5670_v40 = vld [vmem:[#allocation16 + $0x1c4] ss:$16 sps:$4 sm:$0xff]  }
 0x42d   : > { %2631 = vmatpush1.bf16.msra.mxu0 %v5596_v58  ;;  %2672 = vmatpush1.bf16.msra.mxu1 %v5599_v61 }
 0x42e   : > { %2632 = vmatprep.subr.bf16.mxu0 %v5604_v62  ;;  %2673 = vmatprep.subr.bf16.mxu1 %v5607_v63 }
 0x42f   : > { %2650 = vmatprep.mubr.bf16.mxu0 %v6297_v2  ;;  %2691 = vmatprep.mubr.bf16.mxu1 %v6297_v2 }
 0x431   : > { %2633 = vmatpush1.bf16.msra.mxu0 %v5602_v44  ;;  %2674 = vmatpush1.bf16.msra.mxu1 %v5605_v45 }
 0x432   : > { %2734 = vmatprep.subr.bf16.mxu0 %v5610_v46  ;;  %2775 = vmatprep.subr.bf16.mxu1 %v5613_v47 }
 0x434   : > { %4935 = vmatmul.mubr.msk.bf16.vlgmr.msra.gmra.mxu0 %vm705_vm0, %v6644_v11  ;;  %4936 = vmatmul.mubr.msk.bf16.vlgmr.msra.gmra.mxu1 %vm705_vm0, %v6644_v11  ;;  %v5620_v11 = vld [vmem:[#allocation16 + $0xc0] ss:$16 sps:$4 sm:$0xff]  }
 0x435   : > { %2735 = vmatpush1.bf16.msra.mxu0 %v5608_v0  ;;  %2776 = vmatpush1.bf16.msra.mxu1 %v5611_v3 }
 0x436   : > { %2752 = vmatprep.mubr.bf16.mxu0 %v6297_v2  ;;  %2793 = vmatprep.mubr.bf16.mxu1 %v6297_v2  ;;  %v5628_v2 = vld [vmem:[#allocation16 + $0xa4] ss:$16 sps:$4 sm:$0xff]  }
 0x437   : > { %3710 = vmatprep.subr.bf16.mxu0 %v5616_v5  ;;  %3751 = vmatprep.subr.bf16.mxu1 %v5619_v8  ;;  %v2803_v5 = vld [vmem:[#allocation19 + $0x6] ss:$8 sm:$0xf] }
 0x43c   : > { %4941 = vmatmul.mubr.msk.bf16.vlgmr.msra.gmra.mxu0 %vm811_vm1, %v6654_v16  ;;  %4942 = vmatmul.mubr.msk.bf16.vlgmr.msra.gmra.mxu1 %vm811_vm1, %v6654_v16  ;;  %v5629_v16 = vld [vmem:[#allocation16 + $0x2a0] ss:$16 sps:$4 sm:$0xff]  }
 0x43d   : > { %3711 = vmatpush1.bf16.msra.mxu0 %v5614_v4  ;;  %3752 = vmatpush1.bf16.msra.mxu1 %v5617_v6 }
 0x43e   : > { %3712 = vmatprep.subr.bf16.mxu0 %v5622_v12  ;;  %3753 = vmatprep.subr.bf16.mxu1 %v5625_v13  ;;  %v2808_v12 = vrot.slane %v2803_v5, %v6660_v55 }
 0x441   : > { %3713 = vmatpush1.bf16.msra.mxu0 %v5620_v11  ;;  %3754 = vmatpush1.bf16.msra.mxu1 %v5623_v14 }
 0x442   : > { %3714 = vmatprep.subr.bf16.mxu0 %v5628_v2  ;;  %3755 = vmatprep.subr.bf16.mxu1 %v5631_v18  ;;  %v2816_v18 = vrot.slane %v2803_v5, %v6662_v59 }
 0x445   : > { %3715 = vmatpush1.bf16.msra.mxu0 %v5626_v52  ;;  %3756 = vmatpush1.bf16.msra.mxu1 %v5629_v16  ;;  %v2812_v52 = vrot.slane %v2803_v5, %v6664_v60 }
 0x446   : > { %3716 = vmatprep.subr.bf16.mxu0 %v5634_v53  ;;  %3757 = vmatprep.subr.bf16.mxu1 %v5637_v19 }
 0x449   : > { %3717 = vmatpush1.bf16.msra.mxu0 %v5632_v20  ;;  %3758 = vmatpush1.bf16.msra.mxu1 %v5635_v21 }
 0x44a   : > { %3718 = vmatprep.subr.bf16.mxu0 %v5640_v22  ;;  %3759 = vmatprep.subr.bf16.mxu1 %v5643_v23  ;;  %v2820_v22 = vrot.slane %v2803_v5, %v6669_v7  ;;  %v5698_v5 = vld [vmem:[#allocation16 + $0x120] ss:$16 sps:$4 sm:$0xff]  }
 0x44d   : > { %3719 = vmatpush1.bf16.msra.mxu0 %v5638_v24  ;;  %3760 = vmatpush1.bf16.msra.mxu1 %v5641_v26 }
 0x44e   : > { %3720 = vmatprep.subr.bf16.mxu0 %v5646_v27  ;;  %3761 = vmatprep.subr.bf16.mxu1 %v5649_v28 }
 0x451   : > { %3721 = vmatpush1.bf16.msra.mxu0 %v5644_v29  ;;  %3762 = vmatpush1.bf16.msra.mxu1 %v5647_v30 }
 0x452   : > { %3722 = vmatprep.subr.bf16.mxu0 %v5652_v31  ;;  %3763 = vmatprep.subr.bf16.mxu1 %v5655_v32 }
 0x455   : > { %3723 = vmatpush1.bf16.msra.mxu0 %v5650_v33  ;;  %3764 = vmatpush1.bf16.msra.mxu1 %v5653_v34 }
 0x456   : > { %3724 = vmatprep.subr.bf16.mxu0 %v5658_v35  ;;  %3765 = vmatprep.subr.bf16.mxu1 %v5661_v36 }
 0x459   : > { %3725 = vmatpush1.bf16.msra.mxu0 %v5656_v51  ;;  %3766 = vmatpush1.bf16.msra.mxu1 %v5659_v37 }
 0x4ec   : > { %v2493_v39 = vpop.f32.mrf.mxu0  ;;  %v2534_v9 = vpop.f32.mrf.mxu1 }
 0x4ed   : > { %v2494_v10 = vadd.f32 %v2493_v39, %v2132_v38  ;;  %v5667_v39 = vld [vmem:[#allocation16 + $0x3e4] ss:$16 sps:$4 sm:$0xff]  }
 0x4ee   : > { %v2495_v15 = vpop.f32.mrf.mxu0  ;;  %v2536_v41 = vpop.f32.mrf.mxu1  ;;  %3767 = vmatprep.subr.bf16.mxu1 %v5667_v39 }
 0x4ef   : > { %v2535_v17 = vadd.f32 %v2534_v9, %v2494_v10  ;;  %v2496_v42 = vadd.f32 %v2495_v15, %v2136_v49  ;;  %v5664_v49 = vld [vmem:[#allocation16 + $0x1e4] ss:$16 sps:$4 sm:$0xff]   ;;  %v5662_v9 = vld [vmem:[#allocation16 + $0x1e0] ss:$16 sps:$4 sm:$0xff]  }
 0x4f0   : > { %v2497_v25 = vpop.f32.mrf.mxu0  ;;  %v2538_v43 = vpop.f32.mrf.mxu1  ;;  %v5665_v10 = vld [vmem:[#allocation16 + $0x3e0] ss:$16 sps:$4 sm:$0xff]   ;;  %3726 = vmatprep.subr.bf16.mxu0 %v5664_v49  ;;  %v5673_v15 = vld [vmem:[#allocation16 + $0x3c4] ss:$16 sps:$4 sm:$0xff]  }
 0x4f1   : > { %v2541_v48 = vmax.f32 %v2535_v17, 0.0  ;;  %v2537_v54 = vadd.f32 %v2536_v41, %v2496_v42  ;;  %3727 = vmatpush2.bf16.msra.mxu0 %v5662_v9  ;;  %3768 = vmatpush2.bf16.msra.mxu1 %v5665_v10  ;;  %v5668_v41 = vld [vmem:[#allocation16 + $0x1c0] ss:$16 sps:$4 sm:$0xff]   ;;  %v5676_v42 = vld [vmem:[#allocation16 + $0x1a4] ss:$16 sps:$4 sm:$0xff]  }
 0x4f2   : > { %v2498_v57 = vpop.f32.mrf.mxu0  ;;  %v2539_v58 = vpop.f32.mrf.mxu1  ;;  %v5671_v17 = vld [vmem:[#allocation16 + $0x3c0] ss:$16 sps:$4 sm:$0xff]   ;;  %3728 = vmatprep.subr.bf16.mxu0 %v5670_v40  ;;  %3769 = vmatprep.subr.bf16.mxu1 %v5673_v15  ;;  %v5679_v25 = vld [vmem:[#allocation16 + $0x3a4] ss:$16 sps:$4 sm:$0xff]  }
 0x4f3   : > { %v2542_v61 = vmax.f32 %v2537_v54, 0.0  ;;  %v2556_v44 = vmul.f32 %v2549_v50, %v2541_v48  ;;  %v5674_v43 = vld [vmem:[#allocation16 + $0x1a0] ss:$16 sps:$4 sm:$0xff]   ;;  %v5682_v50 = vld [vmem:[#allocation16 + $0x184] ss:$16 sps:$4 sm:$0xff]  }
 0x4f4   : > { %v2652_v62 = vpop.f32.mrf.mxu0  ;;  %v2693_v63 = vpop.f32.mrf.mxu1  ;;  %v5677_v48 = vld [vmem:[#allocation16 + $0x3a0] ss:$16 sps:$4 sm:$0xff]   ;;  %v5685_v54 = vld [vmem:[#allocation16 + $0x384] ss:$16 sps:$4 sm:$0xff]  }
 0x4f5   : > { %v2557_v45 = vmul.f32 %v2553_v56, %v2542_v61  ;;  %3729 = vmatpush2.bf16.msra.mxu0 %v5668_v41  ;;  %3770 = vmatpush2.bf16.msra.mxu1 %v5671_v17  ;;  %v5680_v56 = vld [vmem:[#allocation16 + $0x180] ss:$16 sps:$4 sm:$0xff]   ;;  %v5688_v58 = vld [vmem:[#allocation16 + $0x164] ss:$16 sps:$4 sm:$0xff]  }
 0x4f6   : > { %v2654_v46 = vpop.f32.mrf.mxu0  ;;  %v2695_v47 = vpop.f32.mrf.mxu1  ;;  %3730 = vmatprep.subr.bf16.mxu0 %v5676_v42  ;;  %3771 = vmatprep.subr.bf16.mxu1 %v5679_v25  ;;  %v5683_v57 = vld [vmem:[#allocation16 + $0x380] ss:$16 sps:$4 sm:$0xff]   ;;  %v5691_v61 = vld [vmem:[#allocation16 + $0x364] ss:$16 sps:$4 sm:$0xff]  }
 0x4f7   : > { %v6784_v0 = vadd.f32 %v2557_v45, %v2556_v44  ;;  %v5694_v44 = vld [vmem:[#allocation16 + $0x144] ss:$16 sps:$4 sm:$0xff]  }
 0x4f8   : > { %v2656_v3 = vpop.f32.mrf.mxu0  ;;  %v2697_v4 = vpop.f32.mrf.mxu1  ;;  %v5697_v45 = vld [vmem:[#allocation16 + $0x344] ss:$16 sps:$4 sm:$0xff]  }
 0x4f9   : > { %3731 = vmatpush2.bf16.msra.mxu0 %v5674_v43  ;;  %3772 = vmatpush2.bf16.msra.mxu1 %v5677_v48  ;;  %v5700_v3 = vld [vmem:[#allocation16 + $0x124] ss:$16 sps:$4 sm:$0xff]  }
 0x4fa   : > { %v2657_v6 = vpop.f32.mrf.mxu0  ;;  %v2698_v8 = vpop.f32.mrf.mxu1  ;;  %3732 = vmatprep.subr.bf16.mxu0 %v5682_v50  ;;  %3773 = vmatprep.subr.bf16.mxu1 %v5685_v54  ;;  %v5703_v4 = vld [vmem:[#allocation16 + $0x324] ss:$16 sps:$4 sm:$0xff]  }
 0x4fb   : > { %v5701_v6 = vld [vmem:[#allocation16 + $0x320] ss:$16 sps:$4 sm:$0xff]   ;;  %v5706_v8 = vld [vmem:[#allocation16 + $0x104] ss:$16 sps:$4 sm:$0xff]  }
 0x4fc   : > { %v2754_v13 = vpop.f32.mrf.mxu0  ;;  %v2795_v11 = vpop.f32.mrf.mxu1 }
 0x4fd   : > { %v2755_v14 = vadd.f32 %v2754_v13, %v2652_v62  ;;  %v2796_v2 = vadd.f32 %v2795_v11, %v2693_v63  ;;  %3733 = vmatpush2.bf16.msra.mxu0 %v5680_v56  ;;  %3774 = vmatpush2.bf16.msra.mxu1 %v5683_v57  ;;  %v5686_v62 = vld [vmem:[#allocation16 + $0x160] ss:$16 sps:$4 sm:$0xff]   ;;  %v5710_v57 = vld [vmem:[#allocation16 + $0xe8] ss:$16 sps:$4 sm:$0xff]  }
 0x4fe   : > { %v2756_v16 = vpop.f32.mrf.mxu0  ;;  %v2797_v53 = vpop.f32.mrf.mxu1  ;;  %v5689_v63 = vld [vmem:[#allocation16 + $0x360] ss:$16 sps:$4 sm:$0xff]   ;;  %3734 = vmatprep.subr.bf16.mxu0 %v5688_v58  ;;  %3775 = vmatprep.subr.bf16.mxu1 %v5691_v61  ;;  %v5713_v58 = vld [vmem:[#allocation16 + $0x2e8] ss:$16 sps:$4 sm:$0xff]  }
 0x4ff   : > { %v6789_v19 = vadd.f32 %v2808_v12, %v2755_v14  ;;  %v2757_v20 = vadd.f32 %v2756_v16, %v2654_v46  ;;  %v2798_v21 = vadd.f32 %v2797_v53, %v2695_v47  ;;  %v6792_v26 = vadd.f32 %v2816_v18, %v2796_v2  ;;  %v5692_v46 = vld [vmem:[#allocation16 + $0x140] ss:$16 sps:$4 sm:$0xff]   ;;  %v5709_v12 = vld [vmem:[#allocation16 + $0x304] ss:$16 sps:$4 sm:$0xff]   ;;  %v5712_v14 = vld [vmem:[#allocation16 + $0xec] ss:$16 sps:$4 sm:$0xff]  }
 0x500   : > { %v2758_v23 = vpop.f32.mrf.mxu0  ;;  %v2799_v24 = vpop.f32.mrf.mxu1  ;;  %v5695_v47 = vld [vmem:[#allocation16 + $0x340] ss:$16 sps:$4 sm:$0xff]   ;;  %v5715_v2 = vld [vmem:[#allocation16 + $0x2ec] ss:$16 sps:$4 sm:$0xff]  }
 0x501   : > { %v6794_v27 = vadd.f32 %v2812_v52, %v2757_v20  ;;  %v2839_v30 = vmul.f32 %v6789_v19, %v6789_v19  ;;  %v6800_v32 = vadd.f32 %v2820_v22, %v2798_v21  ;;  %v2841_v35 = vmul.f32 %v6792_v26, %v6792_v26  ;;  %3735 = vmatpush2.bf16.msra.mxu0 %v5686_v62  ;;  %v5704_v13 = vld [vmem:[#allocation16 + $0x100] ss:$16 sps:$4 sm:$0xff]   ;;  %v2830_v23 = vld [vmem:[#allocation19 + $0x7] ss:$8 sm:$0xf] }
 0x502   : > { %v2759_v28 = vpop.f32.mrf.mxu0  ;;  %v2800_v29 = vpop.f32.mrf.mxu1  ;;  %3776 = vmatpush2.bf16.msra.mxu1 %v5689_v63  ;;  %3736 = vmatprep.subr.bf16.mxu0 %v5694_v44  ;;  %v5707_v11 = vld [vmem:[#allocation16 + $0x300] ss:$16 sps:$4 sm:$0xff]   ;;  %v5718_v63 = vld [vmem:[#allocation16 + $0xcc] ss:$16 sps:$4 sm:$0xff]  }
 0x503   : > { %v2840_v31 = vmul.f32 %v6794_v27, %v6794_v27  ;;  %v2833_v33 = vadd.f32 %v6794_v27, %v6789_v19  ;;  %v2842_v37 = vmul.f32 %v6800_v32, %v6800_v32  ;;  %3777 = vmatprep.subr.bf16.mxu1 %v5697_v45  ;;  %v2832_v24 = vld [vmem:[#allocation19 + $0x20] ss:$8 sm:$0xf]  ;;  %v2869_v28 = vrot.slane %v2830_v23, %v6664_v60  ;;  %v5721_v44 = vld [vmem:[#allocation16 + $0x2cc] ss:$16 sps:$4 sm:$0xff]  }
 0x504   : > { %v2877_v29 = vrot.slane %v2830_v23, %v6669_v7  ;;  %v2898_v49 = vrot.slane %v2832_v24, %v6662_v59  ;;  %v5716_v45 = vld [vmem:[#allocation16 + $0xc8] ss:$16 sps:$4 sm:$0xff]  }
 0x505   : > { %v2834_v34 = vadd.f32 %v2833_v33, %v6792_v26  ;;  %v2843_v36 = vadd.f32 %v2840_v31, %v2839_v30  ;;  %3737 = vmatpush2.bf16.msra.mxu0 %v5692_v46  ;;  %v2865_v30 = vrot.slane %v2830_v23, %v6660_v55  ;;  %v2873_v31 = vrot.slane %v2830_v23, %v6662_v59  ;;  %v5719_v46 = vld [vmem:[#allocation16 + $0x2c8] ss:$16 sps:$4 sm:$0xff]  }
 0x506   : > { %3778 = vmatpush2.bf16.msra.mxu1 %v5695_v47  ;;  %3738 = vmatprep.subr.bf16.mxu0 %v5700_v3  ;;  %v5724_v47 = vld [vmem:[#allocation16 + $0xac] ss:$16 sps:$4 sm:$0xff]   ;;  %v5746_v23 = vld [vmem:[#allocation16 + $0x28] ss:$16 sps:$4 sm:$0xff]  }
 0x507   : > { %v2835_v51 = vadd.f32 %v2834_v34, %v6800_v32  ;;  %v2844_v1 = vadd.f32 %v2843_v36, %v2841_v35  ;;  %3779 = vmatprep.subr.bf16.mxu1 %v5703_v4  ;;  %v5727_v3 = vld [vmem:[#allocation16 + $0x2ac] ss:$16 sps:$4 sm:$0xff]   ;;  %v5722_v4 = vld [vmem:[#allocation16 + $0xa8] ss:$16 sps:$4 sm:$0xff]  }
 0x509   : > { %2836 = vadd.xlane.f32.xlu0 %v2835_v51  ;;  %v2845_v38 = vadd.f32 %v2844_v1, %v2842_v37  ;;  %3739 = vmatpush2.bf16.msra.mxu0 %v5698_v5  ;;  %v2894_v37 = vrot.slane %v2832_v24, %v6664_v60  ;;  %v2902_v1 = vrot.slane %v2832_v24, %v6669_v7  ;;  %v5725_v5 = vld [vmem:[#allocation16 + $0x2a8] ss:$16 sps:$4 sm:$0xff]  }
 0x50a   : > { %3780 = vmatpush2.bf16.msra.mxu1 %v5701_v6  ;;  %3740 = vmatprep.subr.bf16.mxu0 %v5706_v8  ;;  %v5730_v6 = vld [vmem:[#allocation16 + $0x8c] ss:$16 sps:$4 sm:$0xff]  }
 0x50b   : > { %2846 = vadd.xlane.f32.xlu1 %v2845_v38  ;;  %3781 = vmatprep.subr.bf16.mxu1 %v5709_v12  ;;  %v2890_v38 = vrot.slane %v2832_v24, %v6660_v55  ;;  %v5733_v8 = vld [vmem:[#allocation16 + $0x28c] ss:$16 sps:$4 sm:$0xff]   ;;  %v5728_v12 = vld [vmem:[#allocation16 + $0x88] ss:$16 sps:$4 sm:$0xff]  }
 0x50c   : > { %v5749_v24 = vld [vmem:[#allocation16 + $0x228] ss:$16 sps:$4 sm:$0xff]  }
 0x50d   : > { %3741 = vmatpush2.bf16.msra.mxu0 %v5704_v13  ;;  %v5731_v13 = vld [vmem:[#allocation16 + $0x288] ss:$16 sps:$4 sm:$0xff]  }
 0x50e   : > { %3782 = vmatpush2.bf16.msra.mxu1 %v5707_v11  ;;  %3792 = vmatprep.subr.bf16.mxu0 %v5712_v14  ;;  %v5736_v11 = vld [vmem:[#allocation16 + $0x6c] ss:$16 sps:$4 sm:$0xff]  }
 0x50f   : > { %3833 = vmatprep.subr.bf16.mxu1 %v5715_v2  ;;  %v5739_v14 = vld [vmem:[#allocation16 + $0x26c] ss:$16 sps:$4 sm:$0xff]   ;;  %v5734_v2 = vld [vmem:[#allocation16 + $0x68] ss:$16 sps:$4 sm:$0xff]  }
 0x592   : > { %v2837_v18 = vpop.xlane.xlu0 %2836 }
 0x593   : > { %v2838_v52 = vmul.f32 0.001953125, %v2837_v18  ;;  %v5737_v18 = vld [vmem:[#allocation16 + $0x268] ss:$16 sps:$4 sm:$0xff]  }
 0x594   : > { %v2847_v16 = vpop.xlane.xlu1 %2846 }
 0x595   : > { %v2848_v53 = vmul.f32 0.001953125, %v2847_v16  ;;  %v2849_v20 = vmul.f32 %v2838_v52, %v2838_v52  ;;  %v2851_v33 = vsub.f32 %v6789_v19, %v2838_v52  ;;  %v2853_v34 = vsub.f32 %v6792_v26, %v2838_v52  ;;  %v5745_v16 = vld [vmem:[#allocation16 + $0x24c] ss:$16 sps:$4 sm:$0xff]  }
 0x596   : > { %v2852_v35 = vsub.f32 %v6794_v27, %v2838_v52  ;;  %v2854_v36 = vsub.f32 %v6800_v32, %v2838_v52  ;;  %v5742_v52 = vld [vmem:[#allocation16 + $0x4c] ss:$16 sps:$4 sm:$0xff]  }
 0x597   : > { %v2850_v21 = vsub.f32 %v2848_v53, %v2849_v20  ;;  %v5740_v53 = vld [vmem:[#allocation16 + $0x48] ss:$16 sps:$4 sm:$0xff]  }
 0x598   : > { %v5743_v20 = vld [vmem:[#allocation16 + $0x248] ss:$16 sps:$4 sm:$0xff]  }
 0x599   : > { %v2855_v22 = vadd.f32 1e-05, %v2850_v21  ;;  %v5748_v21 = vld [vmem:[#allocation16 + $0x2c] ss:$16 sps:$4 sm:$0xff]  }
 0x59b   : > { %5906 = vrsqrt.f32 %v2855_v22  ;;  %v5751_v22 = vld [vmem:[#allocation16 + $0x22c] ss:$16 sps:$4 sm:$0xff]  }
 0x5a8   : > { %v5907_v51 = vpop.eup %5906 }
 0x5a9   : > { %v2858_v39 = vmul.f32 %v5907_v51, %v2852_v35  ;;  %v2860_v9 = vmul.f32 %v5907_v51, %v2854_v36  ;;  %v2857_v10 = vmul.f32 %v5907_v51, %v2851_v33  ;;  %v2859_v40 = vmul.f32 %v5907_v51, %v2853_v34  ;;  %v5760_v33 = vld [vmem:[#allocation16 + $0x1ec] ss:$16 sps:$4 sm:$0xff]   ;;  %v5758_v35 = vld [vmem:[#allocation16 + $0x1e8] ss:$16 sps:$4 sm:$0xff]  }
 0x5aa   : > { %v5763_v34 = vld [vmem:[#allocation16 + $0x3ec] ss:$16 sps:$4 sm:$0xff]   ;;  %v5761_v36 = vld [vmem:[#allocation16 + $0x3e8] ss:$16 sps:$4 sm:$0xff]  }
 0x5ab   : > { %v2883_v19 = vmul.f32 %v2869_v28, %v2858_v39  ;;  %v2885_v15 = vmul.f32 %v2877_v29, %v2860_v9  ;;  %v2882_v26 = vmul.f32 %v2865_v30, %v2857_v10  ;;  %v2884_v41 = vmul.f32 %v2873_v31, %v2859_v40  ;;  %v5754_v28 = vld [vmem:[#allocation16 + $0xc] ss:$16 sps:$4 sm:$0xff]   ;;  %v5752_v30 = vld [vmem:[#allocation16 + $0x8] ss:$16 sps:$4 sm:$0xff]  }
 0x5ac   : > { %v5757_v29 = vld [vmem:[#allocation16 + $0x20c] ss:$16 sps:$4 sm:$0xff]   ;;  %v5755_v31 = vld [vmem:[#allocation16 + $0x208] ss:$16 sps:$4 sm:$0xff]  }
 0x5ad   : > { %v2908_v27 = vadd.f32 %v2894_v37, %v2883_v19  ;;  %v2910_v17 = vadd.f32 %v2902_v1, %v2885_v15  ;;  %v2907_v32 = vadd.f32 %v2890_v38, %v2882_v26  ;;  %v2909_v42 = vadd.f32 %v2898_v49, %v2884_v41  ;;  %v5766_v51 = vld [vmem:[#allocation16 + $0x1cc] ss:$16 sps:$4 sm:$0xff]   ;;  %v5764_v1 = vld [vmem:[#allocation16 + $0x1c8] ss:$16 sps:$4 sm:$0xff]  }
 0x5ae   : > { %v5769_v37 = vld [vmem:[#allocation16 + $0x3cc] ss:$16 sps:$4 sm:$0xff]   ;;  %v5767_v38 = vld [vmem:[#allocation16 + $0x3c8] ss:$16 sps:$4 sm:$0xff]  }
 0x5af   : > { %v6822_v25 = vmax.f32 %v2908_v27, 0.0  ;;  %v6824_v43 = vmax.f32 %v2910_v17, 0.0  ;;  %v6826_v48 = vmax.f32 %v2907_v32, 0.0  ;;  %v6828_v50 = vmax.f32 %v2909_v42, 0.0  ;;  %v5772_v49 = vld [vmem:[#allocation16 + $0x1ac] ss:$16 sps:$4 sm:$0xff]  }
 0x5b0   : > { %v5775_v39 = vld [vmem:[#allocation16 + $0x3ac] ss:$16 sps:$4 sm:$0xff]   ;;  %v5770_v9 = vld [vmem:[#allocation16 + $0x1a8] ss:$16 sps:$4 sm:$0xff]  }
 0x5b1   : > { %v2916_v54 = vpack.c.bf16 %v6822_v25, %v6822_v25  ;;  %v2918_v56 = vpack.c.bf16 %v6824_v43, %v6824_v43  ;;  %v6836_v61 = vpack.c.bf16 %v6826_v48, %v6826_v48  ;;  %v6840_v62 = vpack.c.bf16 %v6828_v50, %v6828_v50  ;;  %v5773_v10 = vld [vmem:[#allocation16 + $0x3a8] ss:$16 sps:$4 sm:$0xff]   ;;  %v5778_v40 = vld [vmem:[#allocation16 + $0x18c] ss:$16 sps:$4 sm:$0xff]  }
 0x5b2   : > { %v5781_v19 = vld [vmem:[#allocation16 + $0x38c] ss:$16 sps:$4 sm:$0xff]   ;;  %v5776_v15 = vld [vmem:[#allocation16 + $0x188] ss:$16 sps:$4 sm:$0xff]  }
 0x5b3   : > { %3742 = vmatprep.mubr.bf16.mxu0 %v2916_v54  ;;  %3783 = vmatprep.mubr.bf16.mxu1 %v2918_v56  ;;  %v5779_v26 = vld [vmem:[#allocation16 + $0x388] ss:$16 sps:$4 sm:$0xff]   ;;  %v5784_v41 = vld [vmem:[#allocation16 + $0x16c] ss:$16 sps:$4 sm:$0xff]  }
 0x5b4   : > { %3743 = vmatmul.mubr.bf16.vlgmr.msra.gmra.mxu0 %v6836_v61  ;;  %3784 = vmatmul.mubr.bf16.vlgmr.msra.gmra.mxu1 %v6840_v62  ;;  %v5787_v27 = vld [vmem:[#allocation16 + $0x36c] ss:$16 sps:$4 sm:$0xff]   ;;  %v5782_v17 = vld [vmem:[#allocation16 + $0x168] ss:$16 sps:$4 sm:$0xff]  }
 0x5b5   : > { %3793 = vmatpush1.bf16.msra.mxu0 %v5710_v57  ;;  %3834 = vmatpush1.bf16.msra.mxu1 %v5713_v58  ;;  %v5785_v32 = vld [vmem:[#allocation16 + $0x368] ss:$16 sps:$4 sm:$0xff]   ;;  %v5790_v42 = vld [vmem:[#allocation16 + $0x14c] ss:$16 sps:$4 sm:$0xff]  }
 0x5b6   : > { %3824 = vmatprep.mubr.bf16.mxu0 %v2916_v54  ;;  %3865 = vmatprep.mubr.bf16.mxu1 %v2918_v56  ;;  %v5793_v54 = vld [vmem:[#allocation16 + $0x34c] ss:$16 sps:$4 sm:$0xff]   ;;  %v5788_v56 = vld [vmem:[#allocation16 + $0x148] ss:$16 sps:$4 sm:$0xff]  }
 0x5b7   : > { %3794 = vmatprep.subr.bf16.mxu0 %v5718_v63  ;;  %3835 = vmatprep.subr.bf16.mxu1 %v5721_v44  ;;  %v5791_v57 = vld [vmem:[#allocation16 + $0x348] ss:$16 sps:$4 sm:$0xff]   ;;  %v5796_v58 = vld [vmem:[#allocation16 + $0x12c] ss:$16 sps:$4 sm:$0xff]  }
 0x5b8   : > { %v5799_v63 = vld [vmem:[#allocation16 + $0x32c] ss:$16 sps:$4 sm:$0xff]   ;;  %v5794_v44 = vld [vmem:[#allocation16 + $0x128] ss:$16 sps:$4 sm:$0xff]  }
 0x5b9   : > { %3795 = vmatpush1.bf16.msra.mxu0 %v5716_v45  ;;  %3836 = vmatpush1.bf16.msra.mxu1 %v5719_v46  ;;  %v5797_v45 = vld [vmem:[#allocation16 + $0x328] ss:$16 sps:$4 sm:$0xff]   ;;  %v5802_v46 = vld [vmem:[#allocation16 + $0x10c] ss:$16 sps:$4 sm:$0xff]  }
 0x5ba   : > { %3796 = vmatprep.subr.bf16.mxu0 %v5724_v47  ;;  %3837 = vmatprep.subr.bf16.mxu1 %v5727_v3  ;;  %v5805_v47 = vld [vmem:[#allocation16 + $0x30c] ss:$16 sps:$4 sm:$0xff]   ;;  %v5800_v3 = vld [vmem:[#allocation16 + $0x108] ss:$16 sps:$4 sm:$0xff]  }
 0x5bd   : > { %3797 = vmatpush1.bf16.msra.mxu0 %v5722_v4  ;;  %3838 = vmatpush1.bf16.msra.mxu1 %v5725_v5  ;;  %v5803_v4 = vld [vmem:[#allocation16 + $0x308] ss:$16 sps:$4 sm:$0xff]  }
 0x5be   : > { %3798 = vmatprep.subr.bf16.mxu0 %v5730_v6  ;;  %3839 = vmatprep.subr.bf16.mxu1 %v5733_v8  ;;  %v5806_v5 = vld [vmem:[#allocation17 + $0x70] ss:$8 sps:$4 sm:$0xff]   ;;  %v5808_v6 = vld [vmem:[#allocation17 + $0x74] ss:$8 sps:$4 sm:$0xff]  }
 0x5bf   : > { %v5809_v8 = vld [vmem:[#allocation17 + $0x170] ss:$8 sps:$4 sm:$0xff]  }
 0x5c1   : > { %3799 = vmatpush1.bf16.msra.mxu0 %v5728_v12  ;;  %3840 = vmatpush1.bf16.msra.mxu1 %v5731_v13  ;;  %v5811_v12 = vld [vmem:[#allocation17 + $0x174] ss:$8 sps:$4 sm:$0xff]   ;;  %v5814_v13 = vld [vmem:[#allocation17 + $0x64] ss:$8 sps:$4 sm:$0xff]  }
 0x5c2   : > { %3800 = vmatprep.subr.bf16.mxu0 %v5736_v11  ;;  %3841 = vmatprep.subr.bf16.mxu1 %v5739_v14  ;;  %v5817_v11 = vld [vmem:[#allocation17 + $0x164] ss:$8 sps:$4 sm:$0xff]   ;;  %v5812_v14 = vld [vmem:[#allocation17 + $0x60] ss:$8 sps:$4 sm:$0xff]  }
 0x5c5   : > { %3801 = vmatpush1.bf16.msra.mxu0 %v5734_v2  ;;  %3842 = vmatpush1.bf16.msra.mxu1 %v5737_v18  ;;  %v5815_v2 = vld [vmem:[#allocation17 + $0x160] ss:$8 sps:$4 sm:$0xff]   ;;  %v5820_v18 = vld [vmem:[#allocation17 + $0x54] ss:$8 sps:$4 sm:$0xff]  }
 0x5c6   : > { %3802 = vmatprep.subr.bf16.mxu0 %v5742_v52  ;;  %3843 = vmatprep.subr.bf16.mxu1 %v5745_v16  ;;  %v5823_v52 = vld [vmem:[#allocation17 + $0x154] ss:$8 sps:$4 sm:$0xff]   ;;  %v5826_v16 = vld [vmem:[#allocation17 + $0x44] ss:$8 sps:$4 sm:$0xff]  }
 0x5c9   : > { %3803 = vmatpush1.bf16.msra.mxu0 %v5740_v53  ;;  %3844 = vmatpush1.bf16.msra.mxu1 %v5743_v20  ;;  %v5829_v53 = vld [vmem:[#allocation17 + $0x144] ss:$8 sps:$4 sm:$0xff]   ;;  %v5824_v20 = vld [vmem:[#allocation17 + $0x40] ss:$8 sps:$4 sm:$0xff]  }
 0x5ca   : > { %3804 = vmatprep.subr.bf16.mxu0 %v5748_v21  ;;  %3845 = vmatprep.subr.bf16.mxu1 %v5751_v22  ;;  %v5827_v21 = vld [vmem:[#allocation17 + $0x140] ss:$8 sps:$4 sm:$0xff]   ;;  %v5832_v22 = vld [vmem:[#allocation17 + $0x34] ss:$8 sps:$4 sm:$0xff]  }
 0x5cd   : > { %3805 = vmatpush1.bf16.msra.mxu0 %v5746_v23  ;;  %3846 = vmatpush1.bf16.msra.mxu1 %v5749_v24  ;;  %v5835_v23 = vld [vmem:[#allocation17 + $0x134] ss:$8 sps:$4 sm:$0xff]   ;;  %v5830_v24 = vld [vmem:[#allocation17 + $0x30] ss:$8 sps:$4 sm:$0xff]  }
 0x5ce   : > { %3806 = vmatprep.subr.bf16.mxu0 %v5754_v28  ;;  %3847 = vmatprep.subr.bf16.mxu1 %v5757_v29  ;;  %v5833_v28 = vld [vmem:[#allocation17 + $0x130] ss:$8 sps:$4 sm:$0xff]   ;;  %v5838_v29 = vld [vmem:[#allocation17 + $0x24] ss:$8 sps:$4 sm:$0xff]  }
 0x5d1   : > { %3807 = vmatpush1.bf16.msra.mxu0 %v5752_v30  ;;  %3848 = vmatpush1.bf16.msra.mxu1 %v5755_v31  ;;  %v5841_v30 = vld [vmem:[#allocation17 + $0x124] ss:$8 sps:$4 sm:$0xff]   ;;  %v5836_v31 = vld [vmem:[#allocation17 + $0x20] ss:$8 sps:$4 sm:$0xff]  }
 0x5d2   : > { %3808 = vmatprep.subr.bf16.mxu0 %v5760_v33  ;;  %3849 = vmatprep.subr.bf16.mxu1 %v5763_v34  ;;  %v5839_v33 = vld [vmem:[#allocation17 + $0x120] ss:$8 sps:$4 sm:$0xff]   ;;  %v5844_v34 = vld [vmem:[#allocation17 + $0x14] ss:$8 sps:$4 sm:$0xff]  }
 0x5d5   : > { %3809 = vmatpush2.bf16.msra.mxu0 %v5758_v35  ;;  %3850 = vmatpush2.bf16.msra.mxu1 %v5761_v36  ;;  %v5847_v35 = vld [vmem:[#allocation17 + $0x114] ss:$8 sps:$4 sm:$0xff]   ;;  %v5842_v36 = vld [vmem:[#allocation17 + $0x10] ss:$8 sps:$4 sm:$0xff]  }
 0x5d6   : > { %3810 = vmatprep.subr.bf16.mxu0 %v5766_v51  ;;  %3851 = vmatprep.subr.bf16.mxu1 %v5769_v37  ;;  %v5845_v51 = vld [vmem:[#allocation17 + $0x110] ss:$8 sps:$4 sm:$0xff]   ;;  %v5850_v37 = vld [vmem:[#allocation17 + $0x4] ss:$8 sps:$4 sm:$0xff]  }
 0x5d9   : > { %3811 = vmatpush2.bf16.msra.mxu0 %v5764_v1  ;;  %3852 = vmatpush2.bf16.msra.mxu1 %v5767_v38  ;;  %v5853_v1 = vld [vmem:[#allocation17 + $0x104] ss:$8 sps:$4 sm:$0xff]   ;;  %v5848_v38 = vld [vmem:[#allocation17] ss:$8 sps:$4 sm:$0xff]  }
 0x5da   : > { %3812 = vmatprep.subr.bf16.mxu0 %v5772_v49  ;;  %3853 = vmatprep.subr.bf16.mxu1 %v5775_v39  ;;  %v5851_v49 = vld [vmem:[#allocation17 + $0x100] ss:$8 sps:$4 sm:$0xff]  }
 0x5dd   : > { %3813 = vmatpush2.bf16.msra.mxu0 %v5770_v9  ;;  %3854 = vmatpush2.bf16.msra.mxu1 %v5773_v10 }
 0x5de   : > { %3814 = vmatprep.subr.bf16.mxu0 %v5778_v40  ;;  %3855 = vmatprep.subr.bf16.mxu1 %v5781_v19 }
 0x5e1   : > { %3815 = vmatpush2.bf16.msra.mxu0 %v5776_v15  ;;  %3856 = vmatpush2.bf16.msra.mxu1 %v5779_v26 }
 0x5e2   : > { %3816 = vmatprep.subr.bf16.mxu0 %v5784_v41  ;;  %3857 = vmatprep.subr.bf16.mxu1 %v5787_v27  ;;  %v3048_v27 = vld [vmem:[#allocation19 + $0x21] ss:$8 sm:$0xf] }
 0x5e5   : > { %3817 = vmatpush2.bf16.msra.mxu0 %v5782_v17  ;;  %3858 = vmatpush2.bf16.msra.mxu1 %v5785_v32  ;;  %v3057_v17 = vrot.slane %v3048_v27, %v6664_v60  ;;  %v3053_v32 = vrot.slane %v3048_v27, %v6660_v55 }
 0x5e6   : > { %3818 = vmatprep.subr.bf16.mxu0 %v5790_v42  ;;  %3859 = vmatprep.subr.bf16.mxu1 %v5793_v54 }
 0x5e9   : > { %3819 = vmatpush2.bf16.msra.mxu0 %v5788_v56  ;;  %3860 = vmatpush2.bf16.msra.mxu1 %v5791_v57  ;;  %v3061_v57 = vrot.slane %v3048_v27, %v6662_v59 }
 0x5ea   : > { %3820 = vmatprep.subr.bf16.mxu0 %v5796_v58  ;;  %3861 = vmatprep.subr.bf16.mxu1 %v5799_v63  ;;  %v3065_v63 = vrot.slane %v3048_v27, %v6669_v7  ;;  %v5895_v27 = vld [vmem:[#allocation17 + $0x194] ss:$8 sps:$4 sm:$0xff]  }
 0x5ed   : > { %3821 = vmatpush2.bf16.msra.mxu0 %v5794_v44  ;;  %3862 = vmatpush2.bf16.msra.mxu1 %v5797_v45 }
 0x5ee   : > { %3822 = vmatprep.subr.bf16.mxu0 %v5802_v46  ;;  %3863 = vmatprep.subr.bf16.mxu1 %v5805_v47 }
 0x5f1   : > { %3823 = vmatpush2.bf16.msra.mxu0 %v5800_v3  ;;  %3864 = vmatpush2.bf16.msra.mxu1 %v5803_v4 }
 0x5f2   : > { %4365 = vmatprep.subr.bf16.mxu0 %v5808_v6  ;;  %4406 = vmatprep.subr.bf16.mxu1 %v5811_v12 }
 0x5f4   : > { %3825 = vmatmul.mubr.bf16.vlgmr.msra.gmra.mxu0 %v6836_v61  ;;  %3866 = vmatmul.mubr.bf16.vlgmr.msra.gmra.mxu1 %v6840_v62  ;;  %v5818_v61 = vld [vmem:[#allocation17 + $0x50] ss:$8 sps:$4 sm:$0xff]  }
 0x5f5   : > { %4366 = vmatpush1.bf16.msra.mxu0 %v5806_v5  ;;  %4407 = vmatpush1.bf16.msra.mxu1 %v5809_v8  ;;  %v5821_v62 = vld [vmem:[#allocation17 + $0x150] ss:$8 sps:$4 sm:$0xff]  }
 0x5f6   : > { %4367 = vmatprep.subr.bf16.mxu0 %v5814_v13  ;;  %4408 = vmatprep.subr.bf16.mxu1 %v5817_v11 }
 0x5f9   : > { %4368 = vmatpush1.bf16.msra.mxu0 %v5812_v14  ;;  %4409 = vmatpush1.bf16.msra.mxu1 %v5815_v2 }
 0x5fa   : > { %4369 = vmatprep.subr.bf16.mxu0 %v5820_v18  ;;  %4410 = vmatprep.subr.bf16.mxu1 %v5823_v52 }
 0x5fd   : > { %4370 = vmatpush1.bf16.msra.mxu0 %v5818_v61  ;;  %4411 = vmatpush1.bf16.msra.mxu1 %v5821_v62 }
 0x5fe   : > { %4371 = vmatprep.subr.bf16.mxu0 %v5826_v16  ;;  %4412 = vmatprep.subr.bf16.mxu1 %v5829_v53 }
 0x601   : > { %4372 = vmatpush1.bf16.msra.mxu0 %v5824_v20  ;;  %4413 = vmatpush1.bf16.msra.mxu1 %v5827_v21 }
 0x602   : > { %4373 = vmatprep.subr.bf16.mxu0 %v5832_v22  ;;  %4414 = vmatprep.subr.bf16.mxu1 %v5835_v23  ;;  %v5856_v22 = vld [vmem:[#allocation17 + $0xf4] ss:$8 sps:$4 sm:$0xff]  }
 0x603   : > { %v5859_v23 = vld [vmem:[#allocation17 + $0x1f4] ss:$8 sps:$4 sm:$0xff]  }
 0x605   : > { %4374 = vmatpush1.bf16.msra.mxu0 %v5830_v24  ;;  %4415 = vmatpush1.bf16.msra.mxu1 %v5833_v28  ;;  %v5854_v24 = vld [vmem:[#allocation17 + $0xf0] ss:$8 sps:$4 sm:$0xff]  }
 0x606   : > { %4375 = vmatprep.subr.bf16.mxu0 %v5838_v29  ;;  %4416 = vmatprep.subr.bf16.mxu1 %v5841_v30  ;;  %v5857_v28 = vld [vmem:[#allocation17 + $0x1f0] ss:$8 sps:$4 sm:$0xff]   ;;  %v5862_v29 = vld [vmem:[#allocation17 + $0xe4] ss:$8 sps:$4 sm:$0xff]  }
 0x607   : > { %v5865_v30 = vld [vmem:[#allocation17 + $0x1e4] ss:$8 sps:$4 sm:$0xff]  }
 0x609   : > { %4376 = vmatpush1.bf16.msra.mxu0 %v5836_v31  ;;  %4417 = vmatpush1.bf16.msra.mxu1 %v5839_v33  ;;  %v5860_v31 = vld [vmem:[#allocation17 + $0xe0] ss:$8 sps:$4 sm:$0xff]  }
 0x60a   : > { %4377 = vmatprep.subr.bf16.mxu0 %v5844_v34  ;;  %4418 = vmatprep.subr.bf16.mxu1 %v5847_v35  ;;  %v5863_v33 = vld [vmem:[#allocation17 + $0x1e0] ss:$8 sps:$4 sm:$0xff]   ;;  %v5866_v34 = vld [vmem:[#allocation17 + $0xd0] ss:$8 sps:$4 sm:$0xff]   ;;  %v5868_v35 = vld [vmem:[#allocation17 + $0xd4] ss:$8 sps:$4 sm:$0xff]  }
 0x60d   : > { %4378 = vmatpush1.bf16.msra.mxu0 %v5842_v36  ;;  %4419 = vmatpush1.bf16.msra.mxu1 %v5845_v51  ;;  %v5869_v36 = vld [vmem:[#allocation17 + $0x1d0] ss:$8 sps:$4 sm:$0xff]   ;;  %v5874_v51 = vld [vmem:[#allocation17 + $0xc4] ss:$8 sps:$4 sm:$0xff]  }
 0x60e   : > { %4379 = vmatprep.subr.bf16.mxu0 %v5850_v37  ;;  %4420 = vmatprep.subr.bf16.mxu1 %v5853_v1  ;;  %v5877_v37 = vld [vmem:[#allocation17 + $0x1c4] ss:$8 sps:$4 sm:$0xff]   ;;  %v5872_v1 = vld [vmem:[#allocation17 + $0xc0] ss:$8 sps:$4 sm:$0xff]  }
 0x611   : > { %4380 = vmatpush1.bf16.msra.mxu0 %v5848_v38  ;;  %4421 = vmatpush1.bf16.msra.mxu1 %v5851_v49  ;;  %v5875_v38 = vld [vmem:[#allocation17 + $0x1c0] ss:$8 sps:$4 sm:$0xff]   ;;  %v5880_v49 = vld [vmem:[#allocation17 + $0xb4] ss:$8 sps:$4 sm:$0xff]  }
 0x612   : > { %4381 = vmatprep.subr.bf16.mxu0 %v5856_v22  ;;  %4422 = vmatprep.subr.bf16.mxu1 %v5859_v23 }
 0x615   : > { %4382 = vmatpush2.bf16.msra.mxu0 %v5854_v24  ;;  %4423 = vmatpush2.bf16.msra.mxu1 %v5857_v28 }
 0x616   : > { %4383 = vmatprep.subr.bf16.mxu0 %v5862_v29  ;;  %4424 = vmatprep.subr.bf16.mxu1 %v5865_v30 }
 0x619   : > { %4384 = vmatpush2.bf16.msra.mxu0 %v5860_v31  ;;  %4425 = vmatpush2.bf16.msra.mxu1 %v5863_v33 }
 0x61a   : > { %4385 = vmatprep.subr.bf16.mxu0 %v5868_v35 }
 0x61d   : > { %4386 = vmatpush2.bf16.msra.mxu0 %v5866_v34 }
 0x61e   : > { %4387 = vmatprep.subr.bf16.mxu0 %v5874_v51 }
 0x621   : > { %4388 = vmatpush2.bf16.msra.mxu0 %v5872_v1 }
 0x622   : > { %4389 = vmatprep.subr.bf16.mxu0 %v5880_v49 }
 0x674   : > { %v3744_v39 = vpop.f32.mrf.mxu0  ;;  %v3785_v9 = vpop.f32.mrf.mxu1 }
 0x675   : > { %v3745_v54 = vadd.f32 %v3744_v39, %v3053_v32  ;;  %v5883_v39 = vld [vmem:[#allocation17 + $0x1b4] ss:$8 sps:$4 sm:$0xff]   ;;  %v5893_v32 = vld [vmem:[#allocation17 + $0x190] ss:$8 sps:$4 sm:$0xff]  }
 0x676   : > { %v3746_v10 = vpop.f32.mrf.mxu0  ;;  %v3787_v40 = vpop.f32.mrf.mxu1 }
 0x677   : > { %v3747_v42 = vadd.f32 %v3746_v10, %v3057_v17  ;;  %v6851_v58 = vadd.f32 %v3785_v9, %v3745_v54  ;;  %v5878_v9 = vld [vmem:[#allocation17 + $0xb0] ss:$8 sps:$4 sm:$0xff]   ;;  %v5901_v54 = vld [vmem:[#allocation17 + $0x184] ss:$8 sps:$4 sm:$0xff]  }
 0x678   : > { %v3748_v19 = vpop.f32.mrf.mxu0  ;;  %v3789_v15 = vpop.f32.mrf.mxu1  ;;  %v5881_v10 = vld [vmem:[#allocation17 + $0x1b0] ss:$8 sps:$4 sm:$0xff]   ;;  %4390 = vmatpush2.bf16.msra.mxu0 %v5878_v9 }
 0x679   : > { %v6848_v56 = vadd.f32 %v3787_v40, %v3747_v42  ;;  %v3884_v5 = vmul.f32 %v6851_v58, %v6851_v58  ;;  %v5886_v40 = vld [vmem:[#allocation17 + $0xa4] ss:$8 sps:$4 sm:$0xff]   ;;  %v5884_v15 = vld [vmem:[#allocation17 + $0xa0] ss:$8 sps:$4 sm:$0xff]   ;;  %v5890_v17 = vld [vmem:[#allocation17 + $0x90] ss:$8 sps:$4 sm:$0xff]  }
 0x67a   : > { %v3749_v26 = vpop.f32.mrf.mxu0  ;;  %v3790_v41 = vpop.f32.mrf.mxu1  ;;  %v5889_v19 = vld [vmem:[#allocation17 + $0x1a4] ss:$8 sps:$4 sm:$0xff]   ;;  %4391 = vmatprep.subr.bf16.mxu0 %v5886_v40 }
 0x67b   : > { %v3885_v46 = vmul.f32 %v6848_v56, %v6848_v56  ;;  %v3878_v6 = vadd.f32 %v6848_v56, %v6851_v58  ;;  %v5887_v26 = vld [vmem:[#allocation17 + $0x1a0] ss:$8 sps:$4 sm:$0xff]   ;;  %v5892_v41 = vld [vmem:[#allocation17 + $0x94] ss:$8 sps:$4 sm:$0xff]   ;;  %v5898_v42 = vld [vmem:[#allocation17 + $0x84] ss:$8 sps:$4 sm:$0xff]  }
 0x67c   : > { %4392 = vmatpush2.bf16.msra.mxu0 %v5884_v15 }
 0x67d   : > { %v3888_v52 = vadd.f32 %v3885_v46, %v3884_v5  ;;  %4393 = vmatprep.subr.bf16.mxu0 %v5892_v41 }
 0x680   : > { %4394 = vmatpush2.bf16.msra.mxu0 %v5890_v17 }
 0x681   : > { %4395 = vmatprep.subr.bf16.mxu0 %v5898_v42 }
 0x6b4   : > { %v3826_v44 = vpop.f32.mrf.mxu0  ;;  %v3867_v45 = vpop.f32.mrf.mxu1 }
 0x6b5   : > { %v3827_v47 = vadd.f32 %v3826_v44, %v3061_v57  ;;  %v5896_v57 = vld [vmem:[#allocation17 + $0x80] ss:$8 sps:$4 sm:$0xff]  }
 0x6b6   : > { %v3828_v3 = vpop.f32.mrf.mxu0  ;;  %v3869_v4 = vpop.f32.mrf.mxu1  ;;  %4396 = vmatpush2.bf16.msra.mxu0 %v5896_v57 }
 0x6b7   : > { %v6860_v8 = vadd.f32 %v3867_v45, %v3827_v47  ;;  %v3829_v12 = vadd.f32 %v3828_v3, %v3065_v63  ;;  %v5899_v63 = vld [vmem:[#allocation17 + $0x180] ss:$8 sps:$4 sm:$0xff]   ;;  %v2562_v47 = vstv %s2561_s24 }
 0x6b8   : > { %v3830_v13 = vpop.f32.mrf.mxu0  ;;  %v3871_v11 = vpop.f32.mrf.mxu1 }
 0x6b9   : > { %v3886_v14 = vmul.f32 %v6860_v8, %v6860_v8  ;;  %v6864_v2 = vadd.f32 %v3869_v4, %v3829_v12  ;;  %v3879_v18 = vadd.f32 %v3878_v6, %v6860_v8  ;;  %v3875_v11 = vld [vmem:[#allocation19 + $0x22] ss:$8 sm:$0xf] }
 0x6ba   : > { %v3831_v61 = vpop.f32.mrf.mxu0  ;;  %v3872_v62 = vpop.f32.mrf.mxu1 }
 0x6bb   : > { %v3880_v16 = vadd.f32 %v3879_v18, %v6864_v2  ;;  %v3887_v53 = vmul.f32 %v6864_v2, %v6864_v2  ;;  %v3889_v20 = vadd.f32 %v3888_v52, %v3886_v14  ;;  %v3877_v14 = vld [vmem:[#allocation19 + $0x23] ss:$8 sm:$0xf]  ;;  %v3914_v18 = vrot.slane %v3875_v11, %v6664_v60 }
 0x6bc   : > { %v3922_v52 = vrot.slane %v3875_v11, %v6669_v7  ;;  %v3910_v61 = vrot.slane %v3875_v11, %v6660_v55  ;;  %v3918_v62 = vrot.slane %v3875_v11, %v6662_v59  ;;  %v3939_v23 = vrot.slane %v3877_v14, %v6664_v60 }
 0x6bd   : > { %3881 = vadd.xlane.f32.xlu0 %v3880_v16  ;;  %v3890_v21 = vadd.f32 %v3889_v20, %v3887_v53  ;;  %v3947_v24 = vrot.slane %v3877_v14, %v6669_v7  ;;  %v3935_v28 = vrot.slane %v3877_v14, %v6660_v55  ;;  %v3943_v29 = vrot.slane %v3877_v14, %v6662_v59 }
 0x6be   : > { %v4468_v11 = vstv %s5135_s19 }
 0x6bf   : > { %3891 = vadd.xlane.f32.xlu1 %v3890_v21 }
 0x6c1   : > { %2559 = vadd.xlane.f32.xlu0 %v6784_v0  ;;  %v5871_v0 = vld [vmem:[#allocation17 + $0x1d4] ss:$8 sps:$4 sm:$0xff]  }
 0x6c2   : > { %4426 = vmatprep.subr.bf16.mxu1 %v5871_v0 }
 0x6c3   : > { %4427 = vmatpush2.bf16.msra.mxu1 %v5869_v36 }
 0x6c4   : > { %4428 = vmatprep.subr.bf16.mxu1 %v5877_v37 }
 0x6c7   : > { %4429 = vmatpush2.bf16.msra.mxu1 %v5875_v38 }
 0x6c8   : > { %4430 = vmatprep.subr.bf16.mxu1 %v5883_v39 }
 0x6cb   : > { %4431 = vmatpush2.bf16.msra.mxu1 %v5881_v10 }
 0x6cc   : > { %4432 = vmatprep.subr.bf16.mxu1 %v5889_v19 }
 0x6cf   : > { %4433 = vmatpush2.bf16.msra.mxu1 %v5887_v26  ;;  %v4033_v26 = vld [vmem:[#allocation19 + $0x25] ss:$8 sm:$0x3] }
 0x6d0   : > { %4434 = vmatprep.subr.bf16.mxu1 %v5895_v27  ;;  %v4038_v41 = vrot.slane %v4033_v26, %v6660_v55  ;;  %v4042_v27 = vrot.slane %v4033_v26, %v6664_v60 }
 0x6d3   : > { %4435 = vmatpush2.bf16.msra.mxu1 %v5893_v32  ;;  %v4450_v32 = vld [vmem:[#allocation19 + $0x27] ss:$8 sm:$0x3] }
 0x6d4   : > { %4436 = vmatprep.subr.bf16.mxu1 %v5901_v54 }
 0x6d7   : > { %4437 = vmatpush2.bf16.msra.mxu1 %v5899_v63 }
 0x746   : > { %v3882_v44 = vpop.xlane.xlu0 %3881 }
 0x747   : > { %v3883_v45 = vmul.f32 0.001953125, %v3882_v44 }
 0x748   : > { %v3892_v46 = vpop.xlane.xlu1 %3891 }
 0x749   : > { %v3893_v3 = vmul.f32 0.001953125, %v3892_v46  ;;  %v3894_v4 = vmul.f32 %v3883_v45, %v3883_v45  ;;  %v3896_v16 = vsub.f32 %v6851_v58, %v3883_v45  ;;  %v3898_v53 = vsub.f32 %v6860_v8, %v3883_v45 }
 0x74a   : > { %v2560_v5 = vpop.xlane.xlu0 %2559  ;;  %v3897_v20 = vsub.f32 %v6848_v56, %v3883_v45  ;;  %v3899_v21 = vsub.f32 %v6864_v2, %v3883_v45  ;;  %v4455_v45 = vrot.slane %v4450_v32, %v6660_v55 }
 0x74b   : > { %v3895_v6 = vsub.f32 %v3893_v3, %v3894_v4  ;;  %v2563_v12 = vadd.f32 %v2562_v47, %v2560_v5  ;;  %v4459_v47 = vrot.slane %v4450_v32, %v6664_v60 }
 0x74d   : > { %v3900_v13 = vadd.f32 1e-05, %v3895_v6  ;;  %2565 = vst.msk [vmem:[%s643_s16] sm:$0xff] %vm2564_vm2, %v2563_v12 }
 0x74f   : > { %5908 = vrsqrt.f32 %v3900_v13 }
 0x75c   : > { %v5909_v22 = vpop.eup %5908 }
 0x75d   : > { %v3903_v30 = vmul.f32 %v5909_v22, %v3897_v20  ;;  %v3905_v31 = vmul.f32 %v5909_v22, %v3899_v21  ;;  %v3902_v33 = vmul.f32 %v5909_v22, %v3896_v16  ;;  %v3904_v34 = vmul.f32 %v5909_v22, %v3898_v53 }
 0x75f   : > { %v3928_v58 = vmul.f32 %v3914_v18, %v3903_v30  ;;  %v3930_v35 = vmul.f32 %v3922_v52, %v3905_v31  ;;  %v3927_v8 = vmul.f32 %v3910_v61, %v3902_v33  ;;  %v3929_v36 = vmul.f32 %v3918_v62, %v3904_v34 }
 0x761   : > { %v3953_v56 = vadd.f32 %v3939_v23, %v3928_v58  ;;  %v3955_v0 = vadd.f32 %v3947_v24, %v3930_v35  ;;  %v3952_v2 = vadd.f32 %v3935_v28, %v3927_v8  ;;  %v3954_v51 = vadd.f32 %v3943_v29, %v3929_v36 }
 0x763   : > { %v3957_v37 = vmax.f32 %v3953_v56, 0.0  ;;  %v3959_v1 = vmax.f32 %v3955_v0, 0.0  ;;  %v3956_v38 = vmax.f32 %v3952_v2, 0.0  ;;  %v3958_v7 = vmax.f32 %v3954_v51, 0.0 }
 0x765   : > { %v3961_v49 = vadd.f32 %v3957_v37, %v6822_v25  ;;  %v3963_v59 = vadd.f32 %v3959_v1, %v6824_v43  ;;  %v3960_v39 = vadd.f32 %v3956_v38, %v6826_v48  ;;  %v3962_v9 = vadd.f32 %v3958_v7, %v6828_v50 }
 0x767   : > { %v3965_v10 = vpack.c.bf16 %v3961_v49, %v3961_v49  ;;  %v3967_v40 = vpack.c.bf16 %v3963_v59, %v3963_v59  ;;  %v3964_v19 = vpack.c.bf16 %v3960_v39, %v3960_v39  ;;  %v3966_v15 = vpack.c.bf16 %v3962_v9, %v3962_v9 }
 0x769   : > { %4397 = vmatprep.mubr.bf16.mxu0 %v3965_v10  ;;  %4438 = vmatprep.mubr.bf16.mxu1 %v3967_v40 }
 0x76a   : > { %4398 = vmatmul.mubr.bf16.vlgmr.msra.gmra.mxu0 %v3964_v19  ;;  %4439 = vmatmul.mubr.bf16.vlgmr.msra.gmra.mxu1 %v3966_v15 }
 0x82a   : > { %v4399_v25 = vpop.f32.mrf.mxu0  ;;  %v4440_v17 = vpop.f32.mrf.mxu1 }
 0x82b   : > { %v4400_v43 = vadd.f32 %v4399_v25, %v4038_v41 }
 0x82c   : > { %v4401_v48 = vpop.f32.mrf.mxu0  ;;  %v4442_v42 = vpop.f32.mrf.mxu1 }
 0x82d   : > { %v4441_v50 = vadd.f32 %v4440_v17, %v4400_v43  ;;  %v4402_v54 = vadd.f32 %v4401_v48, %v4042_v27 }
 0x82e   : > { %v4403_v57 = vpop.f32.mrf.mxu0  ;;  %v4444_v63 = vpop.f32.mrf.mxu1 }
 0x82f   : > { %v4447_v44 = vmax.f32 %v4441_v50, 0.0  ;;  %v4443_v46 = vadd.f32 %v4442_v42, %v4402_v54 }
 0x830   : > { %v4404_v3 = vpop.f32.mrf.mxu0  ;;  %v4445_v4 = vpop.f32.mrf.mxu1 }
 0x831   : > { %v4448_v5 = vmax.f32 %v4443_v46, 0.0  ;;  %v4462_v6 = vmul.f32 %v4455_v45, %v4447_v44 }
 0x833   : > { %v4463_v12 = vmul.f32 %v4459_v47, %v4448_v5 }
 0x835   : > { %v4464_v13 = vadd.f32 %v4463_v12, %v4462_v6 }
 0x837   : > { %4465 = vadd.xlane.f32.xlu1 %v4464_v13 }
 0x8c0   : > { %v4466_v14 = vpop.xlane.xlu1 %4465 }
 0x8c1   : > { %v4469_v18 = vadd.f32 %v4468_v11, %v4466_v14 }
 0x8c3   : > { %4470 = vst.msk [vmem:[%s647_s28] sm:$0xff] %vm2564_vm2, %v4469_v18 }
 0x8c4 PF: > { %p32_p0 = scmp.ge.s32.totalorder %s6521_s21, 4   ;;  %s6977_s25 = smov %s6269_s26 }
 0x8c5   : > { %s6978_s26 = smov %s6273_s27  ;;  %s6979_s27 = smov %s6533_s18 }
 0x8c6   : > { %s6980_s28 = smov %s6521_s21  ;;  %34 = sbr.rel (!%p32_p0) target bundleno = 18 (0x12), region = 189 }
 0x8cb   :  { %4504 = vsyncpa [#allocation3], 1 }
 0x8cc   :  { %4506 = vsyncpa [#allocation3 + $0x1], 1 }
 0x8cd   :  { %4507 = vsyncpa [#allocation6], 1 }
 0x8ce   :  { %4509 = vsyncpa [#allocation6 + $0x1], 1 }
 0x8cf   :  { %4510 = vsyncpa [#allocation9], 1 }
 0x8d0   :  { %4511 = vsyncpa [#allocation12], 1 }
 0x8d1   :  { %4512 = vsyncpa [#allocation15], 1 }
 0x8d2   :  { %4513 = vsyncpa [#allocation18], 1 }
 0x8d3   :  { %4514 = vsyncpa [#allocation4], 1 }
 0x8d4   :  { %4516 = vsyncpa [#allocation4 + $0x1], 1 }

</bundles_post_ra>
